<compile_context>
chip_gen: v5e
topology: v5e:2x2
jax: 0.10.0
libtpu: 0.0.40
codegen_flags: <defaults>
</compile_context>

<pallas_src>
import jax
import jax.numpy as jnp
from jax.experimental import pallas as pl
from jax.experimental.pallas import tpu as pltpu

_TAPS = tuple((dd, dh, dw) for dd in (-1, 0, 1) for dh in (-1, 0, 1) for dw in (-1, 0, 1))


def _make_fused_kernel(D, H, W, Cp, C_out, num_layers, B0, eps=1e-5, neg_slope=0.01):
    """Fused kernel: all ConvBlock layers for one batch element."""
    S = D * H * W
    HW = H * W
    offs = [dd * HW + dh * W + dw for (dd, dh, dw) in _TAPS]

    def kernel(xe_ref, w_ref, g_ref, b_ref, mask_ref, o_ref, act_ref):
        # xe_ref  : (Cp, Le)        bf16  layer-0 flattened input, zero guard lanes
        # w_ref   : (L, Cp, 27*Cp)  bf16  lane-dense weights, column index = tap*Cp + c_in
        # g_ref   : (L, Cp, 1)      f32   InstanceNorm gamma (zero-padded channels)
        # b_ref   : (L, Cp, 1)      f32   InstanceNorm beta
        # mask_ref: (27*Cp, S)      bf16  {0,1} conv boundary masks (precomputed)
        # o_ref   : (C_out, S)      f32   final output (lane-dense)
        # act_ref : (Cp, Le)        bf16  VMEM scratch: intermediate activation
        mask = mask_ref[...]
        inv_s = 1.0 / S

        def one_layer(xv, l):
            # In-VMEM im2col: 27 statically shifted views stacked along sublanes,
            # boundary-masked once, then a single K = 27*Cp matmul on the MXU.
            xcol = jnp.concatenate(
                [xv[:, B0 + off: B0 + off + S] for off in offs], axis=0)     # (27*Cp, S)
            xcol = xcol * mask
            acc = jnp.dot(w_ref[l], xcol, preferred_element_type=jnp.float32)  # (Cp, S) f32
            # InstanceNorm3d (biased variance, eps) folded with the affine params.
            mean = jnp.sum(acc, axis=1, keepdims=True) * inv_s
            cen = acc - mean
            var = jnp.sum(cen * cen, axis=1, keepdims=True) * inv_s
            scale = g_ref[l] * jax.lax.rsqrt(var + eps)          # rsqrt -> EUP slot
            y = cen * scale + b_ref[l]
            # LeakyReLU(negative_slope)
            return jnp.where(y >= 0.0, y, neg_slope * y)

        y = one_layer(xe_ref[...], 0)
        for l in range(1, num_layers):
            # Re-pack the activation for the next layer entirely in VMEM
            # (guard lanes zeroed -> implements the depth zero-padding).
            zeros_g = jnp.zeros((Cp, B0), jnp.bfloat16)
            act_ref[:, :B0] = zeros_g
            act_ref[:, B0 + S:] = zeros_g
            act_ref[:, B0:B0 + S] = y.astype(jnp.bfloat16)
            y = one_layer(act_ref[...], l)

        o_ref[...] = y[:C_out].astype(o_ref.dtype)

    return kernel


def conv_blocks(x, params, *, eps=1e-5, neg_slope=0.01):
    """ConvBlocks forward.

    x: (N, C_in, D, H, W) f32; params: list of (weight, bias, gamma, beta) with
    weight (C_out_l, C_in_l, 3, 3, 3), the rest (C_out_l,).
    `bias` is accepted for interface parity with Conv3d but is mathematically a
    no-op here: a per-channel constant is cancelled by InstanceNorm's mean
    subtraction (valid only because the norm immediately follows the conv).
    """
    N, C_in, D, H, W = x.shape
    L = len(params)
    S = D * H * W
    HW = H * W
    n_taps = len(_TAPS)

    c_outs = [p[0].shape[0] for p in params]
    c_ins = [p[0].shape[1] for p in params]
    assert c_ins[0] == C_in, "first layer in_channels mismatch"
    for l in range(1, L):
        assert c_ins[l] == c_outs[l - 1], "layer channel chaining mismatch"
    for p in params:
        assert p[0].shape[2:] == (3, 3, 3), "kernel assumes 3x3x3 conv"
    C_out = c_outs[-1]
    Cmax = max([C_in] + c_outs)
    Cp = ((Cmax + 7) // 8) * 8            # pad channels to a full sublane tile (no clipping)
    Kdim = n_taps * Cp

    B0 = ((HW + W + 1 + 127) // 128) * 128  # lane-aligned guard >= max |tap offset|
    Le = S + 2 * B0

    # layer-0 input: flattened volume in bf16 with zero guard lanes
    x_flat = x.reshape(N, C_in, S).astype(jnp.bfloat16)
    xe = jnp.zeros((N, Cp, Le), jnp.bfloat16).at[:, :C_in, B0:B0 + S].set(x_flat)

    # lane-dense weights (L, Cp, 27*Cp); column index = tap*Cp + c_in, tap = kd*9+kh*3+kw
    w_all = jnp.zeros((L, Cp, n_taps, Cp), jnp.float32)
    g_all = jnp.zeros((L, Cp, 1), jnp.float32)
    b_all = jnp.zeros((L, Cp, 1), jnp.float32)
    for l, (w, _bias, g, be) in enumerate(params):
        co, ci = w.shape[0], w.shape[1]
        w_l = jnp.transpose(w, (0, 2, 3, 4, 1)).reshape(co, n_taps, ci)   # (co, 27, ci)
        w_all = w_all.at[l, :co, :, :ci].set(w_l.astype(jnp.float32))
        g_all = g_all.at[l, :co, 0].set(g.astype(jnp.float32))
        b_all = b_all.at[l, :co, 0].set(be.astype(jnp.float32))
    w_all = w_all.reshape(L, Cp, Kdim).astype(jnp.bfloat16)

    # {0,1} boundary masks for the flattened-shift conv trick (h/w wrap-around;
    # d handled by the zero guard but included for robustness). Constant under jit.
    lin = jnp.arange(S)
    d_i, h_i, w_i = lin // HW, (lin // W) % H, lin % W
    mrows = []
    for (dd, dh, dw) in _TAPS:
        valid = ((d_i + dd >= 0) & (d_i + dd < D) &
                 (h_i + dh >= 0) & (h_i + dh < H) &
                 (w_i + dw >= 0) & (w_i + dw < W))
        mrows.append(valid)
    mask = jnp.stack(mrows, axis=0).astype(jnp.bfloat16)                   # (27, S)
    mask = jnp.broadcast_to(mask[:, None, :], (n_taps, Cp, S)).reshape(Kdim, S)

    kernel = _make_fused_kernel(D, H, W, Cp, C_out, L, B0, eps, neg_slope)

    out = pl.pallas_call(
        kernel,
        out_shape=jax.ShapeDtypeStruct((N, C_out, S), jnp.float32),
        grid=(N,),
        in_specs=[
            pl.BlockSpec((None, Cp, Le), lambda n: (n, 0, 0)),     # guarded flat input (batch squeezed)
            pl.BlockSpec((L, Cp, Kdim), lambda n: (0, 0, 0)),      # lane-dense weights (resident)
            pl.BlockSpec((L, Cp, 1), lambda n: (0, 0, 0)),         # gamma
            pl.BlockSpec((L, Cp, 1), lambda n: (0, 0, 0)),         # beta
            pl.BlockSpec((Kdim, S), lambda n: (0, 0)),             # conv boundary masks
        ],
        out_specs=pl.BlockSpec((None, C_out, S), lambda n: (n, 0, 0)),  # lane-dense output
        scratch_shapes=[pltpu.VMEM((Cp, Le), jnp.bfloat16)],            # inter-layer activation
        compiler_params=pltpu.CompilerParams(dimension_semantics=("parallel",)),
    )(xe, w_all, g_all, b_all, mask)

    return out.reshape(N, C_out, D, H, W)


def _conv_blocks_ref(x, params, eps=1e-5, ns=0.01):
    """Pure-JAX reference matching the PyTorch module (f32)."""
    y = x
    for (w, b, g, be) in params:
        y = jax.lax.conv_general_dilated(
            y, w, window_strides=(1, 1, 1),
            padding=((1, 1), (1, 1), (1, 1)),
            dimension_numbers=("NCDHW", "OIDHW", "NCDHW"))
        y = y + b[None, :, None, None, None]
        mean = y.mean(axis=(2, 3, 4), keepdims=True)
        var = y.var(axis=(2, 3, 4), keepdims=True)
        y = (y - mean) / jnp.sqrt(var + eps)
        y = y * g[None, :, None, None, None] + be[None, :, None, None, None]
        y = jnp.where(y >= 0.0, y, ns * y)
    return y


if __name__ == "__main__":
    key = jax.random.PRNGKey(0)

    N, C_in, C_out, D, H, W = 2, 4, 5, 8, 8, 8
    num_blocks = 2

    # deterministic synthetic parameters (shapes match the PyTorch module)
    params = []
    cin = C_in
    for _ in range(num_blocks):
        key, kw, kb, kg, kbe = jax.random.split(key, 5)
        fan_in = cin * 27
        w = jax.random.normal(kw, (C_out, cin, 3, 3, 3), dtype=jnp.float32) / jnp.sqrt(fan_in)
        b = 0.1 * jax.random.normal(kb, (C_out,), dtype=jnp.float32)
        g = 1.0 + 0.1 * jax.random.normal(kg, (C_out,), dtype=jnp.float32)
        be = 0.1 * jax.random.normal(kbe, (C_out,), dtype=jnp.float32)
        params.append((w, b, g, be))
        cin = C_out

    key, kx = jax.random.split(key)
    x = jax.random.normal(kx, (N, C_in, D, H, W), dtype=jnp.float32)

    fwd = jax.jit(conv_blocks)
    y = fwd(x, params)
    jax.block_until_ready(y)

    assert y.shape == (N, C_out, D, H, W), y.shape
    assert bool(jnp.isfinite(y).all())

    # loose tolerance: inputs/weights are cast to bf16 inside the kernel
    y_ref = _conv_blocks_ref(x, params)
    max_err = float(jnp.max(jnp.abs(y - y_ref)))
    assert max_err < 0.15, f"max abs error vs reference too large: {max_err}"

    print("KERNEL_OK")
</pallas_src>

<mosaic_0001>
module attributes {stable_mosaic.version = 11 : i64} {
  func.func @kernel(%arg0: i32, %arg1: memref<1x8x768xbf16, #tpu.memory_space<vmem>>, %arg2: memref<2x8x216xbf16, #tpu.memory_space<vmem>>, %arg3: memref<2x8x1xf32, #tpu.memory_space<vmem>>, %arg4: memref<2x8x1xf32, #tpu.memory_space<vmem>>, %arg5: memref<216x512xbf16, #tpu.memory_space<vmem>>, %arg6: memref<1x5x512xf32, #tpu.memory_space<vmem>>, %arg7: memref<8x768xbf16, #tpu.memory_space<vmem>>) attributes {dimension_semantics = [#tpu.dimension_semantics<parallel>], iteration_bounds = array<i64: 2>, scalar_prefetch = 0 : i64, scratch_operands = 1 : i64, tpu.core_type = #tpu.core_type<tc>, window_params = [{transform_indices = @transform_0, window_bounds = array<i64: 1, 8, 768>}, {pipeline_mode = #tpu.pipeline_mode<synchronous>, transform_indices = @transform_1, window_bounds = array<i64: 2, 8, 216>}, {pipeline_mode = #tpu.pipeline_mode<synchronous>, transform_indices = @transform_2, window_bounds = array<i64: 2, 8, 1>}, {pipeline_mode = #tpu.pipeline_mode<synchronous>, transform_indices = @transform_3, window_bounds = array<i64: 2, 8, 1>}, {pipeline_mode = #tpu.pipeline_mode<synchronous>, transform_indices = @transform_4, window_bounds = array<i64: 216, 512>}, {transform_indices = @transform_5, window_bounds = array<i64: 1, 5, 512>}]} {
    %c0 = arith.constant 0 : index
    %c0_0 = arith.constant 0 : index
    %0 = vector.load %arg5[%c0, %c0_0] : memref<216x512xbf16, #tpu.memory_space<vmem>>, vector<216x512xbf16>
    %c0_1 = arith.constant 0 : index
    %c0_2 = arith.constant 0 : index
    %c0_3 = arith.constant 0 : index
    %1 = vector.load %arg1[%c0_1, %c0_2, %c0_3] : memref<1x8x768xbf16, #tpu.memory_space<vmem>>, vector<1x8x768xbf16>
    %2 = vector.shape_cast %1 : vector<1x8x768xbf16> to vector<8x768xbf16>
    %3 = vector.extract_strided_slice %2 {offsets = [0, 55], sizes = [8, 512], strides = [1, 1]} : vector<8x768xbf16> to vector<8x512xbf16>
    %4 = vector.extract_strided_slice %2 {offsets = [0, 56], sizes = [8, 512], strides = [1, 1]} : vector<8x768xbf16> to vector<8x512xbf16>
    %5 = vector.extract_strided_slice %2 {offsets = [0, 57], sizes = [8, 512], strides = [1, 1]} : vector<8x768xbf16> to vector<8x512xbf16>
    %6 = vector.extract_strided_slice %2 {offsets = [0, 63], sizes = [8, 512], strides = [1, 1]} : vector<8x768xbf16> to vector<8x512xbf16>
    %7 = vector.extract_strided_slice %2 {offsets = [0, 64], sizes = [8, 512], strides = [1, 1]} : vector<8x768xbf16> to vector<8x512xbf16>
    %8 = vector.extract_strided_slice %2 {offsets = [0, 65], sizes = [8, 512], strides = [1, 1]} : vector<8x768xbf16> to vector<8x512xbf16>
    %9 = vector.extract_strided_slice %2 {offsets = [0, 71], sizes = [8, 512], strides = [1, 1]} : vector<8x768xbf16> to vector<8x512xbf16>
    %10 = vector.extract_strided_slice %2 {offsets = [0, 72], sizes = [8, 512], strides = [1, 1]} : vector<8x768xbf16> to vector<8x512xbf16>
    %11 = vector.extract_strided_slice %2 {offsets = [0, 73], sizes = [8, 512], strides = [1, 1]} : vector<8x768xbf16> to vector<8x512xbf16>
    %12 = vector.extract_strided_slice %2 {offsets = [0, 119], sizes = [8, 512], strides = [1, 1]} : vector<8x768xbf16> to vector<8x512xbf16>
    %13 = vector.extract_strided_slice %2 {offsets = [0, 120], sizes = [8, 512], strides = [1, 1]} : vector<8x768xbf16> to vector<8x512xbf16>
    %14 = vector.extract_strided_slice %2 {offsets = [0, 121], sizes = [8, 512], strides = [1, 1]} : vector<8x768xbf16> to vector<8x512xbf16>
    %15 = vector.extract_strided_slice %2 {offsets = [0, 127], sizes = [8, 512], strides = [1, 1]} : vector<8x768xbf16> to vector<8x512xbf16>
    %16 = vector.extract_strided_slice %2 {offsets = [0, 128], sizes = [8, 512], strides = [1, 1]} : vector<8x768xbf16> to vector<8x512xbf16>
    %17 = vector.extract_strided_slice %2 {offsets = [0, 129], sizes = [8, 512], strides = [1, 1]} : vector<8x768xbf16> to vector<8x512xbf16>
    %18 = vector.extract_strided_slice %2 {offsets = [0, 135], sizes = [8, 512], strides = [1, 1]} : vector<8x768xbf16> to vector<8x512xbf16>
    %19 = vector.extract_strided_slice %2 {offsets = [0, 136], sizes = [8, 512], strides = [1, 1]} : vector<8x768xbf16> to vector<8x512xbf16>
    %20 = vector.extract_strided_slice %2 {offsets = [0, 137], sizes = [8, 512], strides = [1, 1]} : vector<8x768xbf16> to vector<8x512xbf16>
    %21 = vector.extract_strided_slice %2 {offsets = [0, 183], sizes = [8, 512], strides = [1, 1]} : vector<8x768xbf16> to vector<8x512xbf16>
    %22 = vector.extract_strided_slice %2 {offsets = [0, 184], sizes = [8, 512], strides = [1, 1]} : vector<8x768xbf16> to vector<8x512xbf16>
    %23 = vector.extract_strided_slice %2 {offsets = [0, 185], sizes = [8, 512], strides = [1, 1]} : vector<8x768xbf16> to vector<8x512xbf16>
    %24 = vector.extract_strided_slice %2 {offsets = [0, 191], sizes = [8, 512], strides = [1, 1]} : vector<8x768xbf16> to vector<8x512xbf16>
    %25 = vector.extract_strided_slice %2 {offsets = [0, 192], sizes = [8, 512], strides = [1, 1]} : vector<8x768xbf16> to vector<8x512xbf16>
    %26 = vector.extract_strided_slice %2 {offsets = [0, 193], sizes = [8, 512], strides = [1, 1]} : vector<8x768xbf16> to vector<8x512xbf16>
    %27 = vector.extract_strided_slice %2 {offsets = [0, 199], sizes = [8, 512], strides = [1, 1]} : vector<8x768xbf16> to vector<8x512xbf16>
    %28 = vector.extract_strided_slice %2 {offsets = [0, 200], sizes = [8, 512], strides = [1, 1]} : vector<8x768xbf16> to vector<8x512xbf16>
    %29 = vector.extract_strided_slice %2 {offsets = [0, 201], sizes = [8, 512], strides = [1, 1]} : vector<8x768xbf16> to vector<8x512xbf16>
    %30 = tpu.concatenate %3, %4, %5, %6, %7, %8, %9, %10, %11, %12, %13, %14, %15, %16, %17, %18 in 0 : vector<8x512xbf16>, vector<8x512xbf16>, vector<8x512xbf16>, vector<8x512xbf16>, vector<8x512xbf16>, vector<8x512xbf16>, vector<8x512xbf16>, vector<8x512xbf16>, vector<8x512xbf16>, vector<8x512xbf16>, vector<8x512xbf16>, vector<8x512xbf16>, vector<8x512xbf16>, vector<8x512xbf16>, vector<8x512xbf16>, vector<8x512xbf16> -> vector<128x512xbf16>
    %31 = tpu.concatenate %19, %20, %21, %22, %23, %24, %25, %26, %27, %28, %29 in 0 : vector<8x512xbf16>, vector<8x512xbf16>, vector<8x512xbf16>, vector<8x512xbf16>, vector<8x512xbf16>, vector<8x512xbf16>, vector<8x512xbf16>, vector<8x512xbf16>, vector<8x512xbf16>, vector<8x512xbf16>, vector<8x512xbf16> -> vector<88x512xbf16>
    %32 = tpu.concatenate %30, %31 in 0 : vector<128x512xbf16>, vector<88x512xbf16> -> vector<216x512xbf16>
    %33 = arith.mulf %32, %0 : vector<216x512xbf16>
    %c0_4 = arith.constant 0 : index
    %c0_5 = arith.constant 0 : index
    %c0_6 = arith.constant 0 : index
    %34 = vector.load %arg2[%c0_4, %c0_5, %c0_6] : memref<2x8x216xbf16, #tpu.memory_space<vmem>>, vector<1x8x216xbf16>
    %35 = vector.shape_cast %34 : vector<1x8x216xbf16> to vector<8x216xbf16>
    %cst = arith.constant dense<0.000000e+00> : vector<8x512xf32>
    %36 = tpu.matmul %35, %33, %cst {dimension_numbers = #tpu.dot_dimension_numbers<[1], [0], [0], [1], [0, 0, 1, 1], [], []>} : vector<8x216xbf16>, vector<216x512xbf16>, vector<8x512xf32> -> vector<8x512xf32>
    %cst_7 = arith.constant dense<0.000000e+00> : vector<8xf32>
    %37 = vector.multi_reduction <add>, %36, %cst_7 [1] : vector<8x512xf32> to vector<8xf32>
    %38 = vector.shape_cast %37 : vector<8xf32> to vector<8x1xf32>
    %cst_8 = arith.constant 0.001953125 : f32
    %39 = vector.broadcast %cst_8 : f32 to vector<8x1xf32>
    %40 = arith.mulf %38, %39 : vector<8x1xf32>
    %41 = vector.broadcast %40 : vector<8x1xf32> to vector<8x512xf32>
    %42 = arith.subf %36, %41 : vector<8x512xf32>
    %43 = arith.mulf %42, %42 : vector<8x512xf32>
    %cst_9 = arith.constant dense<0.000000e+00> : vector<8xf32>
    %44 = vector.multi_reduction <add>, %43, %cst_9 [1] : vector<8x512xf32> to vector<8xf32>
    %45 = vector.shape_cast %44 : vector<8xf32> to vector<8x1xf32>
    %cst_10 = arith.constant 0.001953125 : f32
    %46 = vector.broadcast %cst_10 : f32 to vector<8x1xf32>
    %47 = arith.mulf %45, %46 : vector<8x1xf32>
    %c0_11 = arith.constant 0 : index
    %c0_12 = arith.constant 0 : index
    %c0_13 = arith.constant 0 : index
    %48 = vector.load %arg3[%c0_11, %c0_12, %c0_13] : memref<2x8x1xf32, #tpu.memory_space<vmem>>, vector<1x8x1xf32>
    %49 = vector.shape_cast %48 : vector<1x8x1xf32> to vector<8x1xf32>
    %cst_14 = arith.constant 9.99999974E-6 : f32
    %50 = vector.broadcast %cst_14 : f32 to vector<8x1xf32>
    %51 = arith.addf %47, %50 : vector<8x1xf32>
    %52 = math.rsqrt %51 : vector<8x1xf32>
    %53 = arith.mulf %49, %52 : vector<8x1xf32>
    %54 = vector.broadcast %53 : vector<8x1xf32> to vector<8x512xf32>
    %55 = arith.mulf %42, %54 : vector<8x512xf32>
    %c0_15 = arith.constant 0 : index
    %c0_16 = arith.constant 0 : index
    %c0_17 = arith.constant 0 : index
    %56 = vector.load %arg4[%c0_15, %c0_16, %c0_17] : memref<2x8x1xf32, #tpu.memory_space<vmem>>, vector<1x8x1xf32>
    %57 = vector.shape_cast %56 : vector<1x8x1xf32> to vector<8x1xf32>
    %58 = vector.broadcast %57 : vector<8x1xf32> to vector<8x512xf32>
    %59 = arith.addf %55, %58 : vector<8x512xf32>
    %cst_18 = arith.constant 0.000000e+00 : f32
    %60 = vector.broadcast %cst_18 : f32 to vector<8x512xf32>
    %61 = arith.cmpf oge, %59, %60 : vector<8x512xf32>
    %cst_19 = arith.constant 0.00999999977 : f32
    %62 = vector.broadcast %cst_19 : f32 to vector<8x512xf32>
    %63 = arith.mulf %62, %59 : vector<8x512xf32>
    %64 = arith.select %61, %59, %63 : vector<8x512xi1>, vector<8x512xf32>
    %cst_20 = arith.constant 0.000000e+00 : bf16
    %65 = vector.broadcast %cst_20 : bf16 to vector<8x128xbf16>
    %c0_21 = arith.constant 0 : index
    %c0_22 = arith.constant 0 : index
    %66 = vector.load %arg7[%c0_21, %c0_22] : memref<8x768xbf16, #tpu.memory_space<vmem>>, vector<8x128xbf16>
    tpu.vector_store %arg7[%c0_21, %c0_22], %65 {strides = array<i32>} : memref<8x768xbf16, #tpu.memory_space<vmem>>, vector<8x128xbf16>,
    %c0_23 = arith.constant 0 : index
    %c640 = arith.constant 640 : index
    %67 = vector.load %arg7[%c0_23, %c640] : memref<8x768xbf16, #tpu.memory_space<vmem>>, vector<8x128xbf16>
    tpu.vector_store %arg7[%c0_23, %c640], %65 {strides = array<i32>} : memref<8x768xbf16, #tpu.memory_space<vmem>>, vector<8x128xbf16>,
    %68 = arith.truncf %64 : vector<8x512xf32> to vector<8x512xbf16>
    %c0_24 = arith.constant 0 : index
    %c128 = arith.constant 128 : index
    %69 = vector.load %arg7[%c0_24, %c128] : memref<8x768xbf16, #tpu.memory_space<vmem>>, vector<8x512xbf16>
    tpu.vector_store %arg7[%c0_24, %c128], %68 {strides = array<i32>} : memref<8x768xbf16, #tpu.memory_space<vmem>>, vector<8x512xbf16>,
    %c0_25 = arith.constant 0 : index
    %c0_26 = arith.constant 0 : index
    %70 = vector.load %arg7[%c0_25, %c0_26] : memref<8x768xbf16, #tpu.memory_space<vmem>>, vector<8x768xbf16>
    %71 = vector.extract_strided_slice %70 {offsets = [0, 55], sizes = [8, 512], strides = [1, 1]} : vector<8x768xbf16> to vector<8x512xbf16>
    %72 = vector.extract_strided_slice %70 {offsets = [0, 56], sizes = [8, 512], strides = [1, 1]} : vector<8x768xbf16> to vector<8x512xbf16>
    %73 = vector.extract_strided_slice %70 {offsets = [0, 57], sizes = [8, 512], strides = [1, 1]} : vector<8x768xbf16> to vector<8x512xbf16>
    %74 = vector.extract_strided_slice %70 {offsets = [0, 63], sizes = [8, 512], strides = [1, 1]} : vector<8x768xbf16> to vector<8x512xbf16>
    %75 = vector.extract_strided_slice %70 {offsets = [0, 64], sizes = [8, 512], strides = [1, 1]} : vector<8x768xbf16> to vector<8x512xbf16>
    %76 = vector.extract_strided_slice %70 {offsets = [0, 65], sizes = [8, 512], strides = [1, 1]} : vector<8x768xbf16> to vector<8x512xbf16>
    %77 = vector.extract_strided_slice %70 {offsets = [0, 71], sizes = [8, 512], strides = [1, 1]} : vector<8x768xbf16> to vector<8x512xbf16>
    %78 = vector.extract_strided_slice %70 {offsets = [0, 72], sizes = [8, 512], strides = [1, 1]} : vector<8x768xbf16> to vector<8x512xbf16>
    %79 = vector.extract_strided_slice %70 {offsets = [0, 73], sizes = [8, 512], strides = [1, 1]} : vector<8x768xbf16> to vector<8x512xbf16>
    %80 = vector.extract_strided_slice %70 {offsets = [0, 119], sizes = [8, 512], strides = [1, 1]} : vector<8x768xbf16> to vector<8x512xbf16>
    %81 = vector.extract_strided_slice %70 {offsets = [0, 120], sizes = [8, 512], strides = [1, 1]} : vector<8x768xbf16> to vector<8x512xbf16>
    %82 = vector.extract_strided_slice %70 {offsets = [0, 121], sizes = [8, 512], strides = [1, 1]} : vector<8x768xbf16> to vector<8x512xbf16>
    %83 = vector.extract_strided_slice %70 {offsets = [0, 127], sizes = [8, 512], strides = [1, 1]} : vector<8x768xbf16> to vector<8x512xbf16>
    %84 = vector.extract_strided_slice %70 {offsets = [0, 128], sizes = [8, 512], strides = [1, 1]} : vector<8x768xbf16> to vector<8x512xbf16>
    %85 = vector.extract_strided_slice %70 {offsets = [0, 129], sizes = [8, 512], strides = [1, 1]} : vector<8x768xbf16> to vector<8x512xbf16>
    %86 = vector.extract_strided_slice %70 {offsets = [0, 135], sizes = [8, 512], strides = [1, 1]} : vector<8x768xbf16> to vector<8x512xbf16>
    %87 = vector.extract_strided_slice %70 {offsets = [0, 136], sizes = [8, 512], strides = [1, 1]} : vector<8x768xbf16> to vector<8x512xbf16>
    %88 = vector.extract_strided_slice %70 {offsets = [0, 137], sizes = [8, 512], strides = [1, 1]} : vector<8x768xbf16> to vector<8x512xbf16>
    %89 = vector.extract_strided_slice %70 {offsets = [0, 183], sizes = [8, 512], strides = [1, 1]} : vector<8x768xbf16> to vector<8x512xbf16>
    %90 = vector.extract_strided_slice %70 {offsets = [0, 184], sizes = [8, 512], strides = [1, 1]} : vector<8x768xbf16> to vector<8x512xbf16>
    %91 = vector.extract_strided_slice %70 {offsets = [0, 185], sizes = [8, 512], strides = [1, 1]} : vector<8x768xbf16> to vector<8x512xbf16>
    %92 = vector.extract_strided_slice %70 {offsets = [0, 191], sizes = [8, 512], strides = [1, 1]} : vector<8x768xbf16> to vector<8x512xbf16>
    %93 = vector.extract_strided_slice %70 {offsets = [0, 192], sizes = [8, 512], strides = [1, 1]} : vector<8x768xbf16> to vector<8x512xbf16>
    %94 = vector.extract_strided_slice %70 {offsets = [0, 193], sizes = [8, 512], strides = [1, 1]} : vector<8x768xbf16> to vector<8x512xbf16>
    %95 = vector.extract_strided_slice %70 {offsets = [0, 199], sizes = [8, 512], strides = [1, 1]} : vector<8x768xbf16> to vector<8x512xbf16>
    %96 = vector.extract_strided_slice %70 {offsets = [0, 200], sizes = [8, 512], strides = [1, 1]} : vector<8x768xbf16> to vector<8x512xbf16>
    %97 = vector.extract_strided_slice %70 {offsets = [0, 201], sizes = [8, 512], strides = [1, 1]} : vector<8x768xbf16> to vector<8x512xbf16>
    %98 = tpu.concatenate %71, %72, %73, %74, %75, %76, %77, %78, %79, %80, %81, %82, %83, %84, %85, %86 in 0 : vector<8x512xbf16>, vector<8x512xbf16>, vector<8x512xbf16>, vector<8x512xbf16>, vector<8x512xbf16>, vector<8x512xbf16>, vector<8x512xbf16>, vector<8x512xbf16>, vector<8x512xbf16>, vector<8x512xbf16>, vector<8x512xbf16>, vector<8x512xbf16>, vector<8x512xbf16>, vector<8x512xbf16>, vector<8x512xbf16>, vector<8x512xbf16> -> vector<128x512xbf16>
    %99 = tpu.concatenate %87, %88, %89, %90, %91, %92, %93, %94, %95, %96, %97 in 0 : vector<8x512xbf16>, vector<8x512xbf16>, vector<8x512xbf16>, vector<8x512xbf16>, vector<8x512xbf16>, vector<8x512xbf16>, vector<8x512xbf16>, vector<8x512xbf16>, vector<8x512xbf16>, vector<8x512xbf16>, vector<8x512xbf16> -> vector<88x512xbf16>
    %100 = tpu.concatenate %98, %99 in 0 : vector<128x512xbf16>, vector<88x512xbf16> -> vector<216x512xbf16>
    %101 = arith.mulf %100, %0 : vector<216x512xbf16>
    %c1 = arith.constant 1 : index
    %c0_27 = arith.constant 0 : index
    %c0_28 = arith.constant 0 : index
    %102 = vector.load %arg2[%c1, %c0_27, %c0_28] : memref<2x8x216xbf16, #tpu.memory_space<vmem>>, vector<1x8x216xbf16>
    %103 = vector.shape_cast %102 : vector<1x8x216xbf16> to vector<8x216xbf16>
    %cst_29 = arith.constant dense<0.000000e+00> : vector<8x512xf32>
    %104 = tpu.matmul %103, %101, %cst_29 {dimension_numbers = #tpu.dot_dimension_numbers<[1], [0], [0], [1], [0, 0, 1, 1], [], []>} : vector<8x216xbf16>, vector<216x512xbf16>, vector<8x512xf32> -> vector<8x512xf32>
    %cst_30 = arith.constant dense<0.000000e+00> : vector<8xf32>
    %105 = vector.multi_reduction <add>, %104, %cst_30 [1] : vector<8x512xf32> to vector<8xf32>
    %106 = vector.shape_cast %105 : vector<8xf32> to vector<8x1xf32>
    %cst_31 = arith.constant 0.001953125 : f32
    %107 = vector.broadcast %cst_31 : f32 to vector<8x1xf32>
    %108 = arith.mulf %106, %107 : vector<8x1xf32>
    %109 = vector.broadcast %108 : vector<8x1xf32> to vector<8x512xf32>
    %110 = arith.subf %104, %109 : vector<8x512xf32>
    %111 = arith.mulf %110, %110 : vector<8x512xf32>
    %cst_32 = arith.constant dense<0.000000e+00> : vector<8xf32>
    %112 = vector.multi_reduction <add>, %111, %cst_32 [1] : vector<8x512xf32> to vector<8xf32>
    %113 = vector.shape_cast %112 : vector<8xf32> to vector<8x1xf32>
    %cst_33 = arith.constant 0.001953125 : f32
    %114 = vector.broadcast %cst_33 : f32 to vector<8x1xf32>
    %115 = arith.mulf %113, %114 : vector<8x1xf32>
    %c1_34 = arith.constant 1 : index
    %c0_35 = arith.constant 0 : index
    %c0_36 = arith.constant 0 : index
    %116 = vector.load %arg3[%c1_34, %c0_35, %c0_36] : memref<2x8x1xf32, #tpu.memory_space<vmem>>, vector<1x8x1xf32>
    %117 = vector.shape_cast %116 : vector<1x8x1xf32> to vector<8x1xf32>
    %cst_37 = arith.constant 9.99999974E-6 : f32
    %118 = vector.broadcast %cst_37 : f32 to vector<8x1xf32>
    %119 = arith.addf %115, %118 : vector<8x1xf32>
    %120 = math.rsqrt %119 : vector<8x1xf32>
    %121 = arith.mulf %117, %120 : vector<8x1xf32>
    %122 = vector.broadcast %121 : vector<8x1xf32> to vector<8x512xf32>
    %123 = arith.mulf %110, %122 : vector<8x512xf32>
    %c1_38 = arith.constant 1 : index
    %c0_39 = arith.constant 0 : index
    %c0_40 = arith.constant 0 : index
    %124 = vector.load %arg4[%c1_38, %c0_39, %c0_40] : memref<2x8x1xf32, #tpu.memory_space<vmem>>, vector<1x8x1xf32>
    %125 = vector.shape_cast %124 : vector<1x8x1xf32> to vector<8x1xf32>
    %126 = vector.broadcast %125 : vector<8x1xf32> to vector<8x512xf32>
    %127 = arith.addf %123, %126 : vector<8x512xf32>
    %cst_41 = arith.constant 0.000000e+00 : f32
    %128 = vector.broadcast %cst_41 : f32 to vector<8x512xf32>
    %129 = arith.cmpf oge, %127, %128 : vector<8x512xf32>
    %cst_42 = arith.constant 0.00999999977 : f32
    %130 = vector.broadcast %cst_42 : f32 to vector<8x512xf32>
    %131 = arith.mulf %130, %127 : vector<8x512xf32>
    %132 = arith.select %129, %127, %131 : vector<8x512xi1>, vector<8x512xf32>
    %133 = vector.extract_strided_slice %132 {offsets = [0, 0], sizes = [5, 512], strides = [1, 1]} : vector<8x512xf32> to vector<5x512xf32>
    %c0_43 = arith.constant 0 : index
    %c0_44 = arith.constant 0 : index
    %c0_45 = arith.constant 0 : index
    %134 = vector.load %arg6[%c0_43, %c0_44, %c0_45] : memref<1x5x512xf32, #tpu.memory_space<vmem>>, vector<1x5x512xf32>
    %135 = vector.shape_cast %134 : vector<1x5x512xf32> to vector<5x512xf32>
    %136 = vector.shape_cast %133 : vector<5x512xf32> to vector<1x5x512xf32>
    tpu.vector_store %arg6[%c0_43, %c0_44, %c0_45], %136 {strides = array<i32>} : memref<1x5x512xf32, #tpu.memory_space<vmem>>, vector<1x5x512xf32>,
    return
  }
  func.func @transform_0(%arg0: i32) -> (i32, i32, i32) {
    %c0_i32 = arith.constant 0 : i32
    %c0_i32_0 = arith.constant 0 : i32
    %c0_i32_1 = arith.constant 0 : i32
    return %arg0, %c0_i32, %c0_i32_0 : i32, i32, i32
  }
  func.func @transform_1(%arg0: i32) -> (i32, i32, i32) {
    %c0_i32 = arith.constant 0 : i32
    %c0_i32_0 = arith.constant 0 : i32
    %c0_i32_1 = arith.constant 0 : i32
    %c0_i32_2 = arith.constant 0 : i32
    return %c0_i32, %c0_i32_0, %c0_i32_1 : i32, i32, i32
  }
  func.func @transform_2(%arg0: i32) -> (i32, i32, i32) {
    %c0_i32 = arith.constant 0 : i32
    %c0_i32_0 = arith.constant 0 : i32
    %c0_i32_1 = arith.constant 0 : i32
    %c0_i32_2 = arith.constant 0 : i32
    return %c0_i32, %c0_i32_0, %c0_i32_1 : i32, i32, i32
  }
  func.func @transform_3(%arg0: i32) -> (i32, i32, i32) {
    %c0_i32 = arith.constant 0 : i32
    %c0_i32_0 = arith.constant 0 : i32
    %c0_i32_1 = arith.constant 0 : i32
    %c0_i32_2 = arith.constant 0 : i32
    return %c0_i32, %c0_i32_0, %c0_i32_1 : i32, i32, i32
  }
  func.func @transform_4(%arg0: i32) -> (i32, i32) {
    %c0_i32 = arith.constant 0 : i32
    %c0_i32_0 = arith.constant 0 : i32
    %c0_i32_1 = arith.constant 0 : i32
    return %c0_i32, %c0_i32_0 : i32, i32
  }
  func.func @transform_5(%arg0: i32) -> (i32, i32, i32) {
    %c0_i32 = arith.constant 0 : i32
    %c0_i32_0 = arith.constant 0 : i32
    %c0_i32_1 = arith.constant 0 : i32
    return %arg0, %c0_i32, %c0_i32_0 : i32, i32, i32
  }
}

</mosaic_0001>

<bundles_post_ra>
// kernel: conv_blocks.1
= control target key start
LH: loop header
LB: loop body
LE: loop exit
PB: predicated region body
PF: predicated region fallthrough
CT: control target
= control target key end

     0   :  { %s4369_s18 = smov 0   ;;  %s7794_s0 = inlined_call_operand.vmem [shape: bf16[2,8,768], index: 0, kind: input, shape index: {}]   ;;  %s7795_s1 = inlined_call_operand.vmem [shape: bf16[2,8,216], index: 1, kind: input, shape index: {}]   ;;  %s7796_s2 = inlined_call_operand.vmem [shape: f32[2,8,1], index: 2, kind: input, shape index: {}]   ;;  %s7797_s3 = inlined_call_operand.vmem [shape: f32[2,8,1], index: 3, kind: input, shape index: {}]   ;;  %s7798_s4 = inlined_call_operand.vmem [shape: bf16[216,512], index: 4, kind: input, shape index: {}]   ;;  %s7799_s5 = inlined_call_operand.vmem [shape: f32[2,5,512], index: 5, kind: output, shape index: {}]  }
   0x1 LB: > { %s3983_s19 = sadd.s32 4294967295, %s4316_s18   ;;  %p3987_p0 = scmp.ge.s32.totalorder %s4316_s18, 1  ;;  %s4316_s18 = sphi %s4369_s18, %s15_s18  }
   0x2   : > { %p187_p1 = scmp.lt.s32.totalorder %s4316_s18, 3 }
   0x4   : > { %p188_p2 = pnand %p3987_p0, %p187_p1 }
   0x6   : > { %191 = sbr.rel (%p188_p2) target bundleno = 2730 (0xaaa), region = 40 }
   0xb   : > { %p215_p3 = scmp.lt.s32.totalorder %s3983_s19, 1  ;;  %s4318_s24 = smov 127   ;;  %vm351_vm0 = vcmask 973824   ;;  %vm7892_vm1 = vcmask 982016   ;;  %vm520_vm2 = vcmask 1043456   ;;  %vm7893_vm3 = vcmask 588800  }
   0xc   : > { %s4319_s25 = smov 126   ;;  %s4320_s26 = smov 120   ;;  %vm697_vm4 = vcmask 596992   ;;  %vm7894_vm5 = vcmask 580608   ;;  %vm7917_vm6 = vcmask 531456   ;;  %vm441_vm7 = vcmask 515072  }
   0xd   : > { %s8690_s19 = smov (!%p215_p3, %s3983_s19), 1  ;;  %s4321_s27 = smov 119   ;;  %vm426_vm8 = vcmask 523264   ;;  %vm763_vm9 = vcmask 465920   ;;  %vm471_vm10 = vcmask 457728   ;;  %vm484_vm11 = vcmask 449536  }
   0xe   : > { %s4005_s20 = smul.u32 24, %s8690_s19  ;;  %s4322_s28 = smov 118   ;;  %vm7891_vm12 = vcmask 1039360   ;;  %vm8015_vm13 = vcmask 1031168   ;;  %vm515_vm14 = vcmask 392192   ;;  %vm8022_vm15 = vcmask 441344  }
   0xf   : > { %s4323_s29 = smov 112   ;;  %s4324_s30 = smov 111  }
  0x10   : > { %s219_s23 = scalar_lea.vmem %s7794_s0, %s4005_s20  ;;  %s4325_s6 = smov 110  }
  0x11   : > { %v4383_v0 = vld [vmem:[%s219_s23 + $0x10] sm:$0xff]  ;;  %v281_v1 = vld [vmem:[%s219_s23 + $0x8] sm:$0xff]  ;;  %v280_v2 = vld [vmem:[%s219_s23] sm:$0xff]  ;;  %s4326_s7 = smov 64   ;;  %s4327_s8 = smov 63  }
  0x12   : > { %v290_v3 = vunpack.c.l.b16 %v4383_v0  ;;  %v288_v4 = vunpack.c.l.b16 %v281_v1  ;;  %v286_v5 = vunpack.c.l.b16 %v280_v2  ;;  %v289_v9 = vunpack.c.h.b16 %v281_v1  ;;  %s4328_s9 = smov 62   ;;  %s4329_s10 = smov 56  }
  0x13   : > { %v287_v10 = vunpack.c.h.b16 %v280_v2  ;;  %s4330_s11 = smov 55   ;;  %s7829_s12 = smov 54   ;;  %v488_v37 = vunpack.c.h.b16 %v4383_v0 }
  0x14   : > { %v4386_v6 = vpack.c.b16 %v290_v3, %v290_v3  ;;  %v4388_v7 = vpack.c.b16 %v288_v4, %v288_v4  ;;  %v4390_v8 = vpack.c.b16 %v286_v5, %v286_v5  ;;  %v4398_v11 = vpack.c.b16 %v289_v9, %v289_v9  ;;  %s7827_s13 = smov 48   ;;  %s4333_s14 = smov 73  }
  0x15   : > { %v4400_v12 = vpack.c.b16 %v287_v10, %v287_v10  ;;  %v4583_v41 = vpack.c.b16 %v488_v37, %v488_v37  ;;  %s7831_s15 = smov 72   ;;  %s4335_s16 = smov 71  }
  0x16   : > { %304 = vrot.lane.b32.xlu2 %v4386_v6, %s4318_s24  ;;  %300 = vrot.lane.b32.xlu1 %v4388_v7, %s4318_s24  ;;  %s4336_s17 = smov 65   ;;  %s4337_s20 = smov 57  }
  0x17   : > { %296 = vrot.lane.b32.xlu0 %v4390_v8, %s4318_s24 }
  0x1e   : > { %302 = vrot.lane.b32.xlu1 %v4398_v11, %s4318_s24  ;;  %311 = vrot.lane.b32.xlu2 %v4390_v8, %s4319_s25 }
  0x1f   : > { %298 = vrot.lane.b32.xlu0 %v4400_v12, %s4318_s24 }
  0x26   : > { %315 = vrot.lane.b32.xlu1 %v4388_v7, %s4319_s25  ;;  %317 = vrot.lane.b32.xlu2 %v4398_v11, %s4319_s25 }
  0x27   : > { %313 = vrot.lane.b32.xlu0 %v4400_v12, %s4319_s25 }
  0x2e   : > { %326 = vrot.lane.b32.xlu1 %v4390_v8, %s4320_s26  ;;  %328 = vrot.lane.b32.xlu2 %v4400_v12, %s4320_s26 }
  0x2f   : > { %319 = vrot.lane.b32.xlu0 %v4386_v6, %s4319_s25 }
  0x36   : > { %332 = vrot.lane.b32.xlu1 %v4398_v11, %s4320_s26  ;;  %334 = vrot.lane.b32.xlu2 %v4386_v6, %s4320_s26 }
  0x37   : > { %330 = vrot.lane.b32.xlu0 %v4388_v7, %s4320_s26 }
  0x3e   : > { %343 = vrot.lane.b32.xlu1 %v4400_v12, %s4321_s27  ;;  %345 = vrot.lane.b32.xlu2 %v4388_v7, %s4321_s27 }
  0x3f   : > { %341 = vrot.lane.b32.xlu0 %v4390_v8, %s4321_s27 }
  0x46   : > { %349 = vrot.lane.b32.xlu1 %v4386_v6, %s4321_s27  ;;  %356 = vrot.lane.b32.xlu2 %v4390_v8, %s4322_s28 }
  0x47   : > { %347 = vrot.lane.b32.xlu0 %v4398_v11, %s4321_s27 }
  0x4e   : > { %360 = vrot.lane.b32.xlu1 %v4388_v7, %s4322_s28  ;;  %362 = vrot.lane.b32.xlu2 %v4398_v11, %s4322_s28 }
  0x4f   : > { %358 = vrot.lane.b32.xlu0 %v4400_v12, %s4322_s28 }
  0x56   : > { %371 = vrot.lane.b32.xlu1 %v4390_v8, %s4323_s29  ;;  %373 = vrot.lane.b32.xlu2 %v4400_v12, %s4323_s29 }
  0x57   : > { %364 = vrot.lane.b32.xlu0 %v4386_v6, %s4322_s28 }
  0x5e   : > { %377 = vrot.lane.b32.xlu1 %v4398_v11, %s4323_s29  ;;  %379 = vrot.lane.b32.xlu2 %v4386_v6, %s4323_s29 }
  0x5f   : > { %375 = vrot.lane.b32.xlu0 %v4388_v7, %s4323_s29 }
  0x66   : > { %388 = vrot.lane.b32.xlu1 %v4400_v12, %s4324_s30  ;;  %390 = vrot.lane.b32.xlu2 %v4388_v7, %s4324_s30 }
  0x67   : > { %386 = vrot.lane.b32.xlu0 %v4390_v8, %s4324_s30 }
  0x6e   : > { %394 = vrot.lane.b32.xlu1 %v4386_v6, %s4324_s30  ;;  %401 = vrot.lane.b32.xlu2 %v4390_v8, %s4325_s6 }
  0x6f   : > { %392 = vrot.lane.b32.xlu0 %v4398_v11, %s4324_s30 }
  0x70   : > { %v4468_v13 = vpop.permute.xlu2 %304 }
  0x76   : > { %405 = vrot.lane.b32.xlu1 %v4388_v7, %s4325_s6  ;;  %407 = vrot.lane.b32.xlu2 %v4398_v11, %s4325_s6 }
  0x77   : > { %403 = vrot.lane.b32.xlu0 %v4400_v12, %s4325_s6 }
  0x78   : > { %v4476_v14 = vpop.permute.xlu2 %311 }
  0x7e   : > { %416 = vrot.lane.b32.xlu1 %v4390_v8, %s4326_s7  ;;  %418 = vrot.lane.b32.xlu2 %v4400_v12, %s4326_s7 }
  0x7f   : > { %409 = vrot.lane.b32.xlu0 %v4386_v6, %s4325_s6 }
  0x80   : > { %v4484_v15 = vpop.permute.xlu2 %317 }
  0x81   : > { %8078 = vst [vmem:[#allocation3_spill] sm:$0xff] %v4484_v15 }
  0x86   : > { %422 = vrot.lane.b32.xlu1 %v4398_v11, %s4326_s7  ;;  %424 = vrot.lane.b32.xlu2 %v4386_v6, %s4326_s7 }
  0x87   : > { %420 = vrot.lane.b32.xlu0 %v4388_v7, %s4326_s7 }
  0x88   : > { %v4492_v16 = vpop.permute.xlu1 %300  ;;  %v4494_v17 = vpop.permute.xlu2 %328 }
  0x89   : > { %v4496_v18 = vpop.permute.xlu0 %296 }
  0x8e   : > { %433 = vrot.lane.b32.xlu1 %v4400_v12, %s4327_s8  ;;  %435 = vrot.lane.b32.xlu2 %v4388_v7, %s4327_s8 }
  0x8f   : > { %431 = vrot.lane.b32.xlu0 %v4390_v8, %s4327_s8 }
  0x90   : > { %v4504_v19 = vpop.permute.xlu1 %302  ;;  %v4506_v20 = vpop.permute.xlu2 %334 }
  0x91   : > { %8079 = vst [vmem:[#allocation4_spill] sm:$0xff] %v4506_v20  ;;  %v4508_v21 = vpop.permute.xlu0 %298 }
  0x96   : > { %439 = vrot.lane.b32.xlu1 %v4386_v6, %s4327_s8  ;;  %446 = vrot.lane.b32.xlu2 %v4390_v8, %s4328_s9 }
  0x97   : > { %437 = vrot.lane.b32.xlu0 %v4398_v11, %s4327_s8 }
  0x98   : > { %v4516_v22 = vpop.permute.xlu1 %315  ;;  %v4518_v23 = vpop.permute.xlu2 %345 }
  0x99   : > { %v4520_v24 = vpop.permute.xlu0 %313 }
  0x9e   : > { %450 = vrot.lane.b32.xlu1 %v4388_v7, %s4328_s9  ;;  %452 = vrot.lane.b32.xlu2 %v4398_v11, %s4328_s9 }
  0x9f   : > { %448 = vrot.lane.b32.xlu0 %v4400_v12, %s4328_s9 }
  0xa0   : > { %v4528_v25 = vpop.permute.xlu1 %326  ;;  %v4530_v26 = vpop.permute.xlu2 %356 }
  0xa1   : > { %8080 = vst [vmem:[#allocation5_spill] sm:$0xff] %v4530_v26  ;;  %v4532_v27 = vpop.permute.xlu0 %319 }
  0xa2   : > { %8081 = vst [vmem:[#allocation6_spill] sm:$0xff] %v4532_v27 }
  0xa6   : > { %461 = vrot.lane.b32.xlu1 %v4390_v8, %s4329_s10  ;;  %463 = vrot.lane.b32.xlu2 %v4400_v12, %s4329_s10 }
  0xa7   : > { %454 = vrot.lane.b32.xlu0 %v4386_v6, %s4328_s9 }
  0xa8   : > { %v4540_v28 = vpop.permute.xlu1 %332  ;;  %v4542_v29 = vpop.permute.xlu2 %362 }
  0xa9   : > { %8082 = vst [vmem:[#allocation7_spill] sm:$0xff] %v4542_v29  ;;  %v4544_v30 = vpop.permute.xlu0 %330  ;;  %v4757_v26 = vsel %vm7892_vm1, %v4540_v28, %v4506_v20 }
  0xaa   : > { %8117 = vst [vmem:[#allocation42_spill] sm:$0xff] %v4757_v26  ;;  %v4762_v29 = vsel %vm7892_vm1, %v4544_v30, %v4540_v28 }
  0xae   : > { %467 = vrot.lane.b32.xlu1 %v4398_v11, %s4329_s10  ;;  %469 = vrot.lane.b32.xlu2 %v4386_v6, %s4329_s10 }
  0xaf   : > { %465 = vrot.lane.b32.xlu0 %v4388_v7, %s4329_s10 }
  0xb0   : > { %v4552_v31 = vpop.permute.xlu1 %343  ;;  %v4554_v32 = vpop.permute.xlu2 %373 }
  0xb1   : > { %8083 = vst [vmem:[#allocation8_spill] sm:$0xff] %v4552_v31  ;;  %v4556_v33 = vpop.permute.xlu0 %341 }
  0xb2   : > { %8084 = vst [vmem:[#allocation9_spill] sm:$0xff] %v4554_v32 }
  0xb3   : > { %8085 = vst [vmem:[#allocation10_spill] sm:$0xff] %v4556_v33 }
  0xb6   : > { %478 = vrot.lane.b32.xlu1 %v4388_v7, %s4330_s11  ;;  %480 = vrot.lane.b32.xlu2 %v4398_v11, %s4330_s11 }
  0xb7   : > { %476 = vrot.lane.b32.xlu0 %v4400_v12, %s4330_s11 }
  0xb8   : > { %v4564_v34 = vpop.permute.xlu1 %349  ;;  %v4566_v35 = vpop.permute.xlu2 %379 }
  0xb9   : > { %8086 = vst [vmem:[#allocation11_spill] sm:$0xff] %v4564_v34  ;;  %v4568_v36 = vpop.permute.xlu0 %347 }
  0xba   : > { %8087 = vst [vmem:[#allocation12_spill] sm:$0xff] %v4566_v35  ;;  %v4742_v33 = vsel %vm351_vm0, %v4518_v23, %v4568_v36 }
  0xbb   : > { %8114 = vst [vmem:[#allocation39_spill] sm:$0xff] %v4742_v33 }
  0xbe   : > { %490 = vrot.lane.b32.xlu1 %v4400_v12, %s7829_s12  ;;  %492 = vrot.lane.b32.xlu2 %v4388_v7, %s7829_s12 }
  0xbf   : > { %482 = vrot.lane.b32.xlu0 %v4386_v6, %s4330_s11 }
  0xc0   : > { %v4577_v38 = vpop.permute.xlu1 %360  ;;  %v4579_v39 = vpop.permute.xlu2 %390 }
  0xc1   : > { %8088 = vst [vmem:[#allocation13_spill] sm:$0xff] %v4577_v38  ;;  %v4581_v40 = vpop.permute.xlu0 %358 }
  0xc2   : > { %8089 = vst [vmem:[#allocation14_spill] sm:$0xff] %v4581_v40 }
  0xc6   : > { %496 = vrot.lane.b32.xlu1 %v4386_v6, %s7829_s12  ;;  %498 = vrot.lane.b32.xlu2 %v4583_v41, %s7829_s12 }
  0xc7   : > { %494 = vrot.lane.b32.xlu0 %v4398_v11, %s7829_s12 }
  0xc8   : > { %v4591_v42 = vpop.permute.xlu1 %371  ;;  %v4593_v43 = vpop.permute.xlu2 %401 }
  0xc9   : > { %8090 = vst [vmem:[#allocation15_spill] sm:$0xff] %v4591_v42  ;;  %v4595_v44 = vpop.permute.xlu0 %364 }
  0xca   : > { %8091 = vst [vmem:[#allocation16_spill] sm:$0xff] %v4593_v43 }
  0xcb   : > { %8092 = vst [vmem:[#allocation17_spill] sm:$0xff] %v4595_v44 }
  0xce   : > { %507 = vrot.lane.b32.xlu1 %v4388_v7, %s7827_s13  ;;  %509 = vrot.lane.b32.xlu2 %v4398_v11, %s7827_s13 }
  0xcf   : > { %505 = vrot.lane.b32.xlu0 %v4400_v12, %s7827_s13 }
  0xd0   : > { %v4603_v45 = vpop.permute.xlu1 %377  ;;  %v4605_v46 = vpop.permute.xlu2 %407 }
  0xd1   : > { %8093 = vst [vmem:[#allocation18_spill] sm:$0xff] %v4603_v45  ;;  %v4607_v47 = vpop.permute.xlu0 %375 }
  0xd2   : > { %8094 = vst [vmem:[#allocation19_spill] sm:$0xff] %v4605_v46 }
  0xd3   : > { %8095 = vst [vmem:[#allocation20_spill] sm:$0xff] %v4607_v47 }
  0xd6   : > { %513 = vrot.lane.b32.xlu1 %v4583_v41, %s7827_s13  ;;  %681 = vrot.lane.b32.xlu2 %v4583_v41, %s4320_s26 }
  0xd7   : > { %511 = vrot.lane.b32.xlu0 %v4386_v6, %s7827_s13 }
  0xd8   : > { %v4615_v48 = vpop.permute.xlu1 %388  ;;  %v4617_v49 = vpop.permute.xlu2 %418 }
  0xd9   : > { %8096 = vst [vmem:[#allocation21_spill] sm:$0xff] %v4617_v49  ;;  %v4619_v50 = vpop.permute.xlu0 %386 }
  0xda   : > { %8097 = vst [vmem:[#allocation22_spill] sm:$0xff] %v4619_v50  ;;  %v4747_v50 = vsel %vm351_vm0, %v4568_v36, %v4564_v34  ;;  %v4767_v36 = vsel %vm7892_vm1, %v4494_v17, %v4544_v30 }
  0xdb   : > { %8115 = vst [vmem:[#allocation40_spill] sm:$0xff] %v4747_v50 }
  0xde   : > { %687 = vrot.lane.b32.xlu1 %v4400_v12, %s4333_s14  ;;  %689 = vrot.lane.b32.xlu2 %v4388_v7, %s4333_s14 }
  0xdf   : > { %684 = vrot.lane.b32.xlu0 %v4583_v41, %s4321_s27 }
  0xe0   : > { %v4627_v51 = vpop.permute.xlu1 %394  ;;  %v4629_v52 = vpop.permute.xlu2 %424 }
  0xe1   : > { %8098 = vst [vmem:[#allocation23_spill] sm:$0xff] %v4627_v51  ;;  %v4631_v53 = vpop.permute.xlu0 %392 }
  0xe2   : > { %8099 = vst [vmem:[#allocation24_spill] sm:$0xff] %v4629_v52 }
  0xe3   : > { %8100 = vst [vmem:[#allocation25_spill] sm:$0xff] %v4631_v53 }
  0xe6   : > { %693 = vrot.lane.b32.xlu1 %v4386_v6, %s4333_s14  ;;  %695 = vrot.lane.b32.xlu2 %v4583_v41, %s4333_s14 }
  0xe7   : > { %691 = vrot.lane.b32.xlu0 %v4398_v11, %s4333_s14 }
  0xe8   : > { %v4639_v54 = vpop.permute.xlu1 %405  ;;  %v4641_v55 = vpop.permute.xlu2 %435 }
  0xe9   : > { %8101 = vst [vmem:[#allocation26_spill] sm:$0xff] %v4639_v54  ;;  %v4643_v56 = vpop.permute.xlu0 %403 }
  0xea   : > { %8102 = vst [vmem:[#allocation27_spill] sm:$0xff] %v4643_v56 }
  0xee   : > { %704 = vrot.lane.b32.xlu1 %v4388_v7, %s7831_s15  ;;  %706 = vrot.lane.b32.xlu2 %v4398_v11, %s7831_s15 }
  0xef   : > { %702 = vrot.lane.b32.xlu0 %v4400_v12, %s7831_s15 }
  0xf0   : > { %v4651_v57 = vpop.permute.xlu1 %416  ;;  %v4653_v58 = vpop.permute.xlu2 %446 }
  0xf1   : > { %8103 = vst [vmem:[#allocation28_spill] sm:$0xff] %v4651_v57  ;;  %v4655_v59 = vpop.permute.xlu0 %409 }
  0xf2   : > { %8104 = vst [vmem:[#allocation29_spill] sm:$0xff] %v4653_v58 }
  0xf3   : > { %8105 = vst [vmem:[#allocation30_spill] sm:$0xff] %v4655_v59 }
  0xf6   : > { %710 = vrot.lane.b32.xlu1 %v4583_v41, %s7831_s15  ;;  %717 = vrot.lane.b32.xlu2 %v4400_v12, %s4335_s16 }
  0xf7   : > { %708 = vrot.lane.b32.xlu0 %v4386_v6, %s7831_s15 }
  0xf8   : > { %v4663_v60 = vpop.permute.xlu1 %422  ;;  %v4665_v61 = vpop.permute.xlu2 %452 }
  0xf9   : > { %8106 = vst [vmem:[#allocation31_spill] sm:$0xff] %v4665_v61  ;;  %v4667_v62 = vpop.permute.xlu0 %420 }
  0xfe   : > { %721 = vrot.lane.b32.xlu1 %v4398_v11, %s4335_s16  ;;  %723 = vrot.lane.b32.xlu2 %v4386_v6, %s4335_s16 }
  0xff   : > { %719 = vrot.lane.b32.xlu0 %v4388_v7, %s4335_s16 }
 0x100   : > { %v4675_v63 = vpop.permute.xlu1 %433  ;;  %v4677_v0 = vpop.permute.xlu2 %463 }
 0x101   : > { %v4679_v1 = vpop.permute.xlu0 %431 }
 0x102   : > { %8107 = vst [vmem:[#allocation32_spill] sm:$0xff] %v4679_v1 }
 0x106   : > { %732 = vrot.lane.b32.xlu1 %v4400_v12, %s4336_s17  ;;  %734 = vrot.lane.b32.xlu2 %v4388_v7, %s4336_s17 }
 0x107   : > { %725 = vrot.lane.b32.xlu0 %v4583_v41, %s4335_s16 }
 0x108   : > { %v4687_v2 = vpop.permute.xlu1 %439  ;;  %v4689_v3 = vpop.permute.xlu2 %469 }
 0x109   : > { %8108 = vst [vmem:[#allocation33_spill] sm:$0xff] %v4687_v2  ;;  %v4691_v4 = vpop.permute.xlu0 %437 }
 0x10a   : > { %8109 = vst [vmem:[#allocation34_spill] sm:$0xff] %v4689_v3 }
 0x10e   : > { %738 = vrot.lane.b32.xlu1 %v4386_v6, %s4336_s17  ;;  %740 = vrot.lane.b32.xlu2 %v4583_v41, %s4336_s17 }
 0x10f   : > { %736 = vrot.lane.b32.xlu0 %v4398_v11, %s4336_s17 }
 0x110   : > { %v4699_v5 = vpop.permute.xlu1 %450  ;;  %v4703_v10 = vpop.permute.xlu2 %480 }
 0x111   : > { %8110 = vst [vmem:[#allocation35_spill] sm:$0xff] %v4699_v5  ;;  %v4701_v9 = vpop.permute.xlu0 %448 }
 0x112   : > { %8111 = vst [vmem:[#allocation36_spill] sm:$0xff] %v4701_v9 }
 0x116   : > { %750 = vrot.lane.b32.xlu1 %v4583_v41, %s4327_s8  ;;  %753 = vrot.lane.b32.xlu2 %v4400_v12, %s4337_s20 }
 0x117   : > { %747 = vrot.lane.b32.xlu0 %v4583_v41, %s4326_s7 }
 0x118   : > { %v4711_v37 = vpop.permute.xlu1 %461  ;;  %v4715_v44 = vpop.permute.xlu2 %492 }
 0x119   : > { %v4713_v27 = vpop.permute.xlu0 %454 }
 0x11a   : > { %8112 = vst [vmem:[#allocation37_spill] sm:$0xff] %v4713_v27 }
 0x11e   : > { %757 = vrot.lane.b32.xlu1 %v4398_v11, %s4337_s20  ;;  %759 = vrot.lane.b32.xlu2 %v4386_v6, %s4337_s20 }
 0x11f   : > { %755 = vrot.lane.b32.xlu0 %v4388_v7, %s4337_s20 }
 0x120   : > { %v4723_v59 = vpop.permute.xlu1 %467  ;;  %v4727_v51 = vpop.permute.xlu2 %498 }
 0x121   : > { %v4725_v35 = vpop.permute.xlu0 %465  ;;  %8113 = vst [vmem:[#allocation38_spill] sm:$0xff] %v4727_v51 }
 0x126   : > { %768 = vrot.lane.b32.xlu1 %v4583_v41, %s4329_s10  ;;  %771 = vrot.lane.b32.xlu2 %v4583_v41, %s4330_s11 }
 0x127   : > { %761 = vrot.lane.b32.xlu0 %v4583_v41, %s4337_s20  ;;  %v4752_v41 = vsel %vm351_vm0, %v4552_v31, %v4518_v23  ;;  %v776_v23 = vsel %vm520_vm2, %v4757_v26, %v4747_v50  ;;  %v775_v31 = vsel %vm520_vm2, %v4762_v29, %v4742_v33 }
 0x128   : > { %v4735_v27 = vpop.permute.xlu1 %478  ;;  %8116 = vst [vmem:[#allocation41_spill] sm:$0xff] %v4752_v41  ;;  %v774_v51 = vsel %vm520_vm2, %v4767_v36, %v4752_v41  ;;  %v4781_v28 = vpop.permute.xlu2 %509 }
 0x129   : > { %v4737_v42 = vpop.permute.xlu0 %476 }
 0x12e   : > { %843 = vrot.lane.b32.xlu2 %v776_v23, %s4330_s11  ;;  %841 = vrot.lane.b32.xlu1 %v775_v31, %s4330_s11 }
 0x12f   : > { %839 = vrot.lane.b32.xlu0 %v774_v51, %s4330_s11 }
 0x130   : > { %v4783_v30 = vpop.permute.xlu1 %490  ;;  %v682_v33 = vpop.permute.xlu2 %681 }
 0x131   : > { %v4785_v45 = vpop.permute.xlu0 %482  ;;  %v683_v54 = vsel %vm7892_vm1, %v4506_v20, %v682_v33 }
 0x132   : > { %8118 = vst [vmem:[#allocation43_spill] sm:$0xff] %v4785_v45 }
 0x138   : > { %v4787_v26 = vpop.permute.xlu1 %496  ;;  %v690_v23 = vpop.permute.xlu2 %689 }
 0x139   : > { %8119 = vst [vmem:[#allocation44_spill] sm:$0xff] %v4787_v26  ;;  %v4789_v50 = vpop.permute.xlu0 %494 }
 0x140   : > { %v4791_v53 = vpop.permute.xlu1 %507  ;;  %v696_v51 = vpop.permute.xlu2 %695 }
 0x141   : > { %v4793_v41 = vpop.permute.xlu0 %505 }
 0x148   : > { %v4795_v57 = vpop.permute.xlu1 %513  ;;  %v707_v58 = vpop.permute.xlu2 %706 }
 0x149   : > { %8120 = vst [vmem:[#allocation45_spill] sm:$0xff] %v4795_v57  ;;  %v4797_v31 = vpop.permute.xlu0 %511 }
 0x14a   : > { %8121 = vst [vmem:[#allocation46_spill] sm:$0xff] %v4797_v31 }
 0x150   : > { %v688_v43 = vpop.permute.xlu1 %687  ;;  %v718_v20 = vpop.permute.xlu2 %717 }
 0x151   : > { %v685_v56 = vpop.permute.xlu0 %684  ;;  %v698_v33 = vsel %vm697_vm4, %v688_v43, %v690_v23 }
 0x152   : > { %v686_v26 = vsel %vm351_vm0, %v4564_v34, %v685_v56 }
 0x153   : > { %v779_v46 = vsel %vm520_vm2, %v683_v54, %v686_v26 }
 0x154   : > { %845 = vrot.lane.b32.xlu0 %v779_v46, %s4330_s11 }
 0x158   : > { %v694_v9 = vpop.permute.xlu1 %693 }
 0x159   : > { %v692_v1 = vpop.permute.xlu0 %691  ;;  %v701_v32 = vsel %vm697_vm4, %v694_v9, %v696_v51 }
 0x15a   : > { %v699_v31 = vsel %vm697_vm4, %v690_v23, %v692_v1  ;;  %v700_v47 = vsel %vm697_vm4, %v692_v1, %v694_v9 }
 0x160   : > { %v705_v57 = vpop.permute.xlu1 %704 }
 0x161   : > { %v714_v40 = vsel %vm7893_vm3, %v705_v57, %v707_v58  ;;  %v703_v38 = vpop.permute.xlu0 %702 }
 0x162   : > { %v713_v56 = vsel %vm7893_vm3, %v703_v38, %v705_v57  ;;  %v785_v26 = vsel %vm520_vm2, %v699_v31, %v714_v40  ;;  %v724_v57 = vpop.permute.xlu2 %723 }
 0x163   : > { %849 = vrot.lane.b32.xlu2 %v785_v26, %s4330_s11  ;;  %v782_v46 = vsel %vm520_vm2, %v698_v33, %v713_v56 }
 0x164   : > { %847 = vrot.lane.b32.xlu1 %v782_v46, %s4330_s11 }
 0x168   : > { %v711_v54 = vpop.permute.xlu1 %710 }
 0x169   : > { %v709_v34 = vpop.permute.xlu0 %708 }
 0x16a   : > { %v715_v5 = vsel %vm7893_vm3, %v707_v58, %v709_v34  ;;  %v716_v43 = vsel %vm7893_vm3, %v709_v34, %v711_v54  ;;  %v735_v33 = vpop.permute.xlu2 %734  ;;  %vm8017_vm3 = vcmask 965632  }
 0x16b   : > { %v791_v38 = vsel %vm520_vm2, %v701_v32, %v716_v43  ;;  %v788_v40 = vsel %vm520_vm2, %v700_v47, %v715_v5 }
 0x16c   : > { %853 = vrot.lane.b32.xlu1 %v791_v38, %s4330_s11  ;;  %851 = vrot.lane.b32.xlu0 %v788_v40, %s4330_s11 }
 0x170   : > { %v722_v23 = vpop.permute.xlu1 %721 }
 0x171   : > { %v720_v31 = vpop.permute.xlu0 %719  ;;  %v730_v9 = vsel %vm7894_vm5, %v722_v23, %v724_v57 }
 0x172   : > { %v728_v1 = vsel %vm7894_vm5, %v718_v20, %v720_v31  ;;  %v741_v47 = vpop.permute.xlu2 %740  ;;  %v729_v54 = vsel %vm7894_vm5, %v720_v31, %v722_v23  ;;  %v4845_v23 = vsel %vm441_vm7, %v4675_v63, %v4641_v55  ;;  %v4850_v31 = vsel %vm441_vm7, %v4641_v55, %v4691_v4 }
 0x173   : > { %8123 = vst [vmem:[#allocation48_spill] sm:$0xff] %v4845_v23 }
 0x178   : > { %v733_v51 = vpop.permute.xlu1 %732 }
 0x179   : > { %v743_v58 = vsel %vm7917_vm6, %v733_v51, %v735_v33  ;;  %v726_v34 = vpop.permute.xlu0 %725 }
 0x17a   : > { %v794_v32 = vsel %vm520_vm2, %v728_v1, %v743_v58  ;;  %v731_v56 = vsel %vm7894_vm5, %v724_v57, %v726_v34  ;;  %v4840_v57 = vsel %vm441_vm7, %v4691_v4, %v4687_v2  ;;  %v4855_v1 = vsel %vm426_vm8, %v4663_v60, %v4629_v52 }
 0x17b   : > { %855 = vrot.lane.b32.xlu2 %v794_v32, %s4330_s11  ;;  %8122 = vst [vmem:[#allocation47_spill] sm:$0xff] %v4840_v57  ;;  %v4860_v34 = vsel %vm426_vm8, %v4617_v49, %v4667_v62  ;;  %v4865_v32 = vsel %vm426_vm8, %v4667_v62, %v4663_v60  ;;  %v806_v55 = vsel %vm520_vm2, %v4855_v1, %v4840_v57  ;;  %vm8018_vm5 = vcmask 916480  }
 0x17c   : > { %8124 = vst [vmem:[#allocation49_spill] sm:$0xff] %v4855_v1  ;;  %v805_v4 = vsel %vm520_vm2, %v4865_v32, %v4850_v31  ;;  %v244_v1 = vld [vmem:[%s7798_s4 + $0x90] sm:$0xff] }
 0x17d   : > { %8125 = vst [vmem:[#allocation50_spill] sm:$0xff] %v4860_v34 }
 0x17e   : > { %8126 = vst [vmem:[#allocation51_spill] sm:$0xff] %v4865_v32 }
 0x180   : > { %v739_v5 = vpop.permute.xlu1 %738 }
 0x181   : > { %v746_v26 = vsel %vm7917_vm6, %v739_v5, %v741_v47  ;;  %v737_v46 = vpop.permute.xlu0 %736  ;;  %v804_v47 = vsel %vm520_vm2, %v4860_v34, %v4845_v23 }
 0x182   : > { %v744_v20 = vsel %vm7917_vm6, %v735_v33, %v737_v46  ;;  %v745_v43 = vsel %vm7917_vm6, %v737_v46, %v739_v5  ;;  %v803_v38 = vsel %vm520_vm2, %v731_v56, %v746_v26  ;;  %v754_v5 = vpop.permute.xlu2 %753  ;;  %v4886_v26 = vsel %vm471_vm10, %v4677_v0, %v4725_v35 }
 0x183   : > { %861 = vrot.lane.b32.xlu2 %v803_v38, %s4330_s11  ;;  %v800_v40 = vsel %vm520_vm2, %v730_v9, %v745_v43  ;;  %v797_v51 = vsel %vm520_vm2, %v729_v54, %v744_v20  ;;  %v4891_v46 = vsel %vm471_vm10, %v4725_v35, %v4723_v59  ;;  %vm8020_vm6 = vcmask 900096  }
 0x184   : > { %859 = vrot.lane.b32.xlu1 %v800_v40, %s4330_s11  ;;  %857 = vrot.lane.b32.xlu0 %v797_v51, %s4330_s11 }
 0x188   : > { %v751_v33 = vpop.permute.xlu1 %750 }
 0x189   : > { %v748_v58 = vpop.permute.xlu0 %747  ;;  %v752_v60 = vsel %vm441_vm7, %v4687_v2, %v751_v33  ;;  %v247_v2 = vld [vmem:[%s7798_s4 + $0xa8] sm:$0xff] }
 0x18a   : > { %v749_v62 = vsel %vm426_vm8, %v4629_v52, %v748_v58  ;;  %v760_v35 = vpop.permute.xlu2 %759  ;;  %v241_v52 = vld [vmem:[%s7798_s4 + $0x78] sm:$0xff] }
 0x18b   : > { %867 = vrot.lane.b32.xlu2 %v806_v55, %s4330_s11  ;;  %v809_v43 = vsel %vm520_vm2, %v749_v62, %v752_v60  ;;  %v4917_v60 = vsel %vm484_vm11, %v4737_v42, %v4735_v27 }
 0x18c   : > { %865 = vrot.lane.b32.xlu1 %v805_v4, %s4330_s11  ;;  %863 = vrot.lane.b32.xlu0 %v804_v47, %s4330_s11  ;;  %v4909_v4 = vsel %vm471_vm10, %v4723_v59, %v4689_v3 }
 0x18d   : > { %8127 = vst [vmem:[#allocation52_spill] sm:$0xff] %v4909_v4 }
 0x190   : > { %v758_v9 = vpop.permute.xlu1 %757 }
 0x191   : > { %v756_v56 = vpop.permute.xlu0 %755  ;;  %v766_v51 = vsel %vm763_vm9, %v758_v9, %v760_v35 }
 0x192   : > { %v764_v54 = vsel %vm763_vm9, %v754_v5, %v756_v56  ;;  %v765_v20 = vsel %vm763_vm9, %v756_v56, %v758_v9  ;;  %v815_v5 = vsel %vm520_vm2, %v766_v51, %v4909_v4  ;;  %v772_v59 = vpop.permute.xlu2 %771  ;;  %v226_v9 = vld [vmem:[%s7798_s4] sm:$0xff]  ;;  %v228_v56 = vld [vmem:[%s7798_s4 + $0x10] sm:$0xff] }
 0x193   : > { %v813_v38 = vsel %vm520_vm2, %v765_v20, %v4891_v46  ;;  %v811_v40 = vsel %vm520_vm2, %v764_v54, %v4886_v26  ;;  %v227_v54 = vld [vmem:[%s7798_s4 + $0x8] sm:$0xff]  ;;  %v4936_v20 = vsel %vm484_vm11, %v4735_v27, %v4703_v10  ;;  %v1074_v51 = vunpack.c.l.bf16 %v228_v56 }
 0x194   : > { %869 = vrot.lane.b32.xlu0 %v809_v43, %s4330_s11  ;;  %873 = vrot.lane.b32.xlu2 %v813_v38, %s4330_s11  ;;  %v773_v43 = vsel %vm484_vm11, %v4785_v45, %v772_v59  ;;  %v4943_v38 = vsel %vm484_vm11, %v4703_v10, %v4785_v45  ;;  %v1072_v27 = vunpack.c.l.bf16 %v227_v54  ;;  %v229_v10 = vld [vmem:[%s7798_s4 + $0x18] sm:$0xff]  ;;  %v230_v59 = vld [vmem:[%s7798_s4 + $0x20] sm:$0xff] }
 0x195   : > { %871 = vrot.lane.b32.xlu1 %v811_v40, %s4330_s11  ;;  %8128 = vst [vmem:[#allocation53_spill] sm:$0xff] %v4943_v38  ;;  %v1070_v40 = vunpack.c.l.bf16 %v226_v9 }
 0x198   : > { %v769_v33 = vpop.permute.xlu1 %768 }
 0x199   : > { %v770_v58 = vsel %vm471_vm10, %v4689_v3, %v769_v33  ;;  %v762_v55 = vpop.permute.xlu0 %761  ;;  %v1075_v33 = vunpack.c.h.bf16 %v228_v56  ;;  %v1077_v56 = vunpack.c.h.bf16 %v229_v10 }
 0x19a   : > { %v767_v47 = vsel %vm763_vm9, %v760_v35, %v762_v55  ;;  %v1071_v35 = vunpack.c.h.bf16 %v226_v9  ;;  %v1076_v9 = vunpack.c.l.bf16 %v229_v10 }
 0x19b   : > { %v818_v62 = vsel %vm520_vm2, %v767_v47, %v770_v58  ;;  %v1073_v58 = vunpack.c.h.bf16 %v227_v54  ;;  %v4045_v47 = vpack.i.bf16 %v1075_v33, %v1074_v51 }
 0x19c   : > { %875 = vrot.lane.b32.xlu0 %v815_v5, %s4330_s11  ;;  %879 = vrot.lane.b32.xlu2 %v4917_v60, %s4330_s11  ;;  %v4035_v55 = vpack.i.bf16 %v1071_v35, %v1070_v40  ;;  %v1078_v40 = vunpack.c.l.bf16 %v230_v59  ;;  %v1079_v35 = vunpack.c.h.bf16 %v230_v59  ;;  %v4050_v51 = vpack.i.bf16 %v1077_v56, %v1076_v9 }
 0x19d   : > { %877 = vrot.lane.b32.xlu1 %v818_v62, %s4330_s11  ;;  %v4040_v5 = vpack.i.bf16 %v1073_v58, %v1072_v27  ;;  %v231_v62 = vld [vmem:[%s7798_s4 + $0x28] sm:$0xff]  ;;  %v232_v58 = vld [vmem:[%s7798_s4 + $0x30] sm:$0xff] }
 0x19e   : > { %v1080_v54 = vunpack.c.l.bf16 %v231_v62  ;;  %v4055_v27 = vpack.i.bf16 %v1079_v35, %v1078_v40  ;;  %v1083_v10 = vunpack.c.h.bf16 %v232_v58  ;;  %v235_v35 = vld [vmem:[%s7798_s4 + $0x48] sm:$0xff] }
 0x1a4   : > { %881 = vrot.lane.b32.xlu0 %v4936_v20, %s4330_s11  ;;  %885 = vrot.lane.b32.xlu2 %v773_v43, %s4330_s11  ;;  %v1081_v43 = vunpack.c.h.bf16 %v231_v62 }
 0x1a5   : > { %883 = vrot.lane.b32.xlu1 %v4943_v38, %s4330_s11 }
 0x1a6   : > { %v4060_v33 = vpack.i.bf16 %v1081_v43, %v1080_v54 }
 0x1ac   : > { %4036 = vrot.lane.b32.xlu0 %v4035_v55, %s4330_s11  ;;  %4046 = vrot.lane.b32.xlu2 %v4045_v47, %s4330_s11  ;;  %v234_v55 = vld [vmem:[%s7798_s4 + $0x40] sm:$0xff]  ;;  %v233_v47 = vld [vmem:[%s7798_s4 + $0x38] sm:$0xff] }
 0x1ad   : > { %4041 = vrot.lane.b32.xlu1 %v4040_v5, %s4330_s11  ;;  %v1082_v5 = vunpack.c.l.bf16 %v232_v58  ;;  %v1086_v62 = vunpack.c.l.bf16 %v234_v55  ;;  %v1087_v59 = vunpack.c.h.bf16 %v234_v55  ;;  %v1084_v9 = vunpack.c.l.bf16 %v233_v47 }
 0x1ae   : > { %v1085_v56 = vunpack.c.h.bf16 %v233_v47  ;;  %v1089_v58 = vunpack.c.h.bf16 %v235_v35 }
 0x1af   : > { %v4065_v54 = vpack.i.bf16 %v1083_v10, %v1082_v5  ;;  %v4075_v43 = vpack.i.bf16 %v1087_v59, %v1086_v62 }
 0x1b0   : > { %v4070_v40 = vpack.i.bf16 %v1085_v56, %v1084_v9  ;;  %v238_v56 = vld [vmem:[%s7798_s4 + $0x60] sm:$0xff] }
 0x1b4   : > { %4051 = vrot.lane.b32.xlu0 %v4050_v51, %s4330_s11  ;;  %4061 = vrot.lane.b32.xlu2 %v4060_v33, %s4330_s11  ;;  %v237_v51 = vld [vmem:[%s7798_s4 + $0x58] sm:$0xff]  ;;  %v236_v33 = vld [vmem:[%s7798_s4 + $0x50] sm:$0xff] }
 0x1b5   : > { %4056 = vrot.lane.b32.xlu1 %v4055_v27, %s4330_s11  ;;  %v1088_v27 = vunpack.c.l.bf16 %v235_v35  ;;  %v1092_v55 = vunpack.c.l.bf16 %v237_v51  ;;  %v1093_v47 = vunpack.c.h.bf16 %v237_v51  ;;  %v1090_v5 = vunpack.c.l.bf16 %v236_v33 }
 0x1b6   : > { %v1091_v10 = vunpack.c.h.bf16 %v236_v33  ;;  %v1095_v35 = vunpack.c.h.bf16 %v238_v56 }
 0x1b7   : > { %v4080_v62 = vpack.i.bf16 %v1089_v58, %v1088_v27  ;;  %v4090_v59 = vpack.i.bf16 %v1093_v47, %v1092_v55  ;;  %v4997_v27 = vpop.permute.xlu2 %843 }
 0x1b8   : > { %v4085_v9 = vpack.i.bf16 %v1091_v10, %v1090_v5  ;;  %8129 = vst [vmem:[#allocation54_spill] sm:$0xff] %v4997_v27 }
 0x1bc   : > { %4066 = vrot.lane.b32.xlu0 %v4065_v54, %s4330_s11  ;;  %4076 = vrot.lane.b32.xlu2 %v4075_v43, %s4330_s11  ;;  %v240_v54 = vld [vmem:[%s7798_s4 + $0x70] sm:$0xff]  ;;  %v239_v43 = vld [vmem:[%s7798_s4 + $0x68] sm:$0xff] }
 0x1bd   : > { %4071 = vrot.lane.b32.xlu1 %v4070_v40, %s4330_s11  ;;  %v1094_v40 = vunpack.c.l.bf16 %v238_v56  ;;  %v1098_v51 = vunpack.c.l.bf16 %v240_v54  ;;  %v1099_v33 = vunpack.c.h.bf16 %v240_v54  ;;  %v1096_v58 = vunpack.c.l.bf16 %v239_v43 }
 0x1be   : > { %v1097_v55 = vunpack.c.h.bf16 %v239_v43  ;;  %v1101_v56 = vunpack.c.h.bf16 %v241_v52 }
 0x1bf   : > { %v4095_v47 = vpack.i.bf16 %v1095_v35, %v1094_v40  ;;  %v4105_v5 = vpack.i.bf16 %v1099_v33, %v1098_v51  ;;  %v5011_v40 = vpop.permute.xlu2 %849 }
 0x1c0   : > { %v4100_v10 = vpack.i.bf16 %v1097_v55, %v1096_v58  ;;  %8130 = vst [vmem:[#allocation55_spill] sm:$0xff] %v5011_v40 }
 0x1c4   : > { %4081 = vrot.lane.b32.xlu0 %v4080_v62, %s4330_s11  ;;  %4091 = vrot.lane.b32.xlu2 %v4090_v59, %s4330_s11  ;;  %v243_v62 = vld [vmem:[%s7798_s4 + $0x88] sm:$0xff]  ;;  %v242_v59 = vld [vmem:[%s7798_s4 + $0x80] sm:$0xff] }
 0x1c5   : > { %4086 = vrot.lane.b32.xlu1 %v4085_v9, %s4330_s11  ;;  %v1100_v9 = vunpack.c.l.bf16 %v241_v52  ;;  %v1104_v54 = vunpack.c.l.bf16 %v243_v62  ;;  %v1105_v43 = vunpack.c.h.bf16 %v243_v62  ;;  %v1102_v35 = vunpack.c.l.bf16 %v242_v59  ;;  %v245_v52 = vld [vmem:[%s7798_s4 + $0x98] sm:$0xff] }
 0x1c6   : > { %v1103_v51 = vunpack.c.h.bf16 %v242_v59 }
 0x1c7   : > { %v4110_v33 = vpack.i.bf16 %v1101_v56, %v1100_v9  ;;  %v4120_v58 = vpack.i.bf16 %v1105_v43, %v1104_v54  ;;  %v1108_v56 = vunpack.c.l.bf16 %v245_v52  ;;  %v1109_v54 = vunpack.c.h.bf16 %v245_v52 }
 0x1c8   : > { %v4115_v55 = vpack.i.bf16 %v1103_v51, %v1102_v35 }
 0x1c9   : > { %v4130_v51 = vpack.i.bf16 %v1109_v54, %v1108_v56  ;;  %v5044_v56 = vpop.permute.xlu0 %839 }
 0x1ca   : > { %8134 = vst [vmem:[#allocation59_spill] sm:$0xff] %v5044_v56 }
 0x1cc   : > { %4096 = vrot.lane.b32.xlu0 %v4095_v47, %s4330_s11  ;;  %4106 = vrot.lane.b32.xlu2 %v4105_v5, %s4330_s11  ;;  %v246_v47 = vld [vmem:[%s7798_s4 + $0xa0] sm:$0xff]  ;;  %v1106_v5 = vunpack.c.l.bf16 %v244_v1 }
 0x1cd   : > { %4101 = vrot.lane.b32.xlu1 %v4100_v10, %s4330_s11  ;;  %v1107_v10 = vunpack.c.h.bf16 %v244_v1  ;;  %v1110_v62 = vunpack.c.l.bf16 %v246_v47  ;;  %v1111_v59 = vunpack.c.h.bf16 %v246_v47  ;;  %v248_v1 = vld [vmem:[%s7798_s4 + $0xb0] sm:$0xff]  ;;  %v1113_v47 = vunpack.c.h.bf16 %v247_v2 }
 0x1cf   : > { %v4125_v43 = vpack.i.bf16 %v1107_v10, %v1106_v5  ;;  %v4135_v35 = vpack.i.bf16 %v1111_v59, %v1110_v62  ;;  %v1114_v62 = vunpack.c.l.bf16 %v248_v1  ;;  %v1115_v59 = vunpack.c.h.bf16 %v248_v1 }
 0x1d1   : > { %v4145_v3 = vpack.i.bf16 %v1115_v59, %v1114_v62  ;;  %v5062_v59 = vpop.permute.xlu0 %845 }
 0x1d2   : > { %8137 = vst [vmem:[#allocation62_spill] sm:$0xff] %v5062_v59 }
 0x1d4   : > { %4111 = vrot.lane.b32.xlu0 %v4110_v33, %s4330_s11  ;;  %4121 = vrot.lane.b32.xlu2 %v4120_v58, %s4330_s11  ;;  %v249_v33 = vld [vmem:[%s7798_s4 + $0xb8] sm:$0xff]  ;;  %v5037_v58 = vpop.permute.xlu1 %841 }
 0x1d5   : > { %4116 = vrot.lane.b32.xlu1 %v4115_v55, %s4330_s11  ;;  %v5026_v9 = vpop.permute.xlu2 %855  ;;  %8132 = vst [vmem:[#allocation57_spill] sm:$0xff] %v5037_v58  ;;  %v1112_v55 = vunpack.c.l.bf16 %v247_v2  ;;  %v1116_v52 = vunpack.c.l.bf16 %v249_v33  ;;  %v1117_v5 = vunpack.c.h.bf16 %v249_v33  ;;  %v252_v2 = vld [vmem:[%s7798_s4 + $0xd0] sm:$0xff] }
 0x1d6   : > { %8131 = vst [vmem:[#allocation56_spill] sm:$0xff] %v5026_v9 }
 0x1d7   : > { %v4140_v54 = vpack.i.bf16 %v1113_v47, %v1112_v55  ;;  %v4150_v57 = vpack.i.bf16 %v1117_v5, %v1116_v52  ;;  %v1122_v55 = vunpack.c.l.bf16 %v252_v2  ;;  %v1123_v47 = vunpack.c.h.bf16 %v252_v2 }
 0x1d9   : > { %v4165_v56 = vpack.i.bf16 %v1123_v47, %v1122_v55 }
 0x1dc   : > { %4126 = vrot.lane.b32.xlu0 %v4125_v43, %s4330_s11  ;;  %4136 = vrot.lane.b32.xlu2 %v4135_v35, %s4330_s11  ;;  %v250_v43 = vld [vmem:[%s7798_s4 + $0xc0] sm:$0xff]  ;;  %v251_v35 = vld [vmem:[%s7798_s4 + $0xc8] sm:$0xff] }
 0x1dd   : > { %4131 = vrot.lane.b32.xlu1 %v4130_v51, %s4330_s11  ;;  %v5042_v10 = vpop.permute.xlu2 %861  ;;  %v5055_v51 = vpop.permute.xlu1 %847  ;;  %v1118_v33 = vunpack.c.l.bf16 %v250_v43  ;;  %v1119_v1 = vunpack.c.h.bf16 %v250_v43  ;;  %v1120_v5 = vunpack.c.l.bf16 %v251_v35  ;;  %v1121_v62 = vunpack.c.h.bf16 %v251_v35 }
 0x1de   : > { %8133 = vst [vmem:[#allocation58_spill] sm:$0xff] %v5042_v10 }
 0x1df   : > { %8135 = vst [vmem:[#allocation60_spill] sm:$0xff] %v5055_v51  ;;  %v4155_v10 = vpack.i.bf16 %v1119_v1, %v1118_v33  ;;  %v4160_v45 = vpack.i.bf16 %v1121_v62, %v1120_v5  ;;  %v5080_v62 = vpop.permute.xlu0 %851 }
 0x1e0   : > { %8140 = vst [vmem:[#allocation65_spill] sm:$0xff] %v5080_v62 }
 0x1e4   : > { %4141 = vrot.lane.b32.xlu0 %v4140_v54, %s4330_s11  ;;  %4151 = vrot.lane.b32.xlu2 %v4150_v57, %s4330_s11  ;;  %v253_v54 = vld [vmem:[%s7798_s4 + $0xd8] sm:$0xff]  ;;  %v255_v57 = vld [vmem:[%s7798_s4 + $0xe8] sm:$0xff] }
 0x1e5   : > { %4146 = vrot.lane.b32.xlu1 %v4145_v3, %s4330_s11  ;;  %v5060_v52 = vpop.permute.xlu2 %867  ;;  %v254_v3 = vld [vmem:[%s7798_s4 + $0xe0] sm:$0xff]  ;;  %v1124_v43 = vunpack.c.l.bf16 %v253_v54  ;;  %v1125_v2 = vunpack.c.h.bf16 %v253_v54  ;;  %v1128_v35 = vunpack.c.l.bf16 %v255_v57  ;;  %v1129_v33 = vunpack.c.h.bf16 %v255_v57  ;;  %v5076_v47 = vpop.permute.xlu1 %853 }
 0x1e6   : > { %8136 = vst [vmem:[#allocation61_spill] sm:$0xff] %v5060_v52  ;;  %v1126_v1 = vunpack.c.l.bf16 %v254_v3  ;;  %v1127_v55 = vunpack.c.h.bf16 %v254_v3 }
 0x1e7   : > { %8138 = vst [vmem:[#allocation63_spill] sm:$0xff] %v5076_v47  ;;  %v4170_v59 = vpack.i.bf16 %v1125_v2, %v1124_v43  ;;  %v4180_v4 = vpack.i.bf16 %v1129_v33, %v1128_v35 }
 0x1e8   : > { %v4175_v38 = vpack.i.bf16 %v1127_v55, %v1126_v1 }
 0x1ec   : > { %4156 = vrot.lane.b32.xlu0 %v4155_v10, %s4330_s11  ;;  %4166 = vrot.lane.b32.xlu2 %v4165_v56, %s4330_s11  ;;  %v256_v10 = vld [vmem:[%s7798_s4 + $0xf0] sm:$0xff]  ;;  %v258_v56 = vld [vmem:[%s7798_s4 + $0x100] sm:$0xff] }
 0x1ed   : > { %4161 = vrot.lane.b32.xlu1 %v4160_v45, %s4330_s11  ;;  %v257_v45 = vld [vmem:[%s7798_s4 + $0xf8] sm:$0xff]  ;;  %v1130_v54 = vunpack.c.l.bf16 %v256_v10  ;;  %v1131_v57 = vunpack.c.h.bf16 %v256_v10  ;;  %v1134_v3 = vunpack.c.l.bf16 %v258_v56  ;;  %v1135_v43 = vunpack.c.h.bf16 %v258_v56 }
 0x1ee   : > { %v5078_v5 = vpop.permute.xlu2 %873  ;;  %v1132_v2 = vunpack.c.l.bf16 %v257_v45  ;;  %v1133_v35 = vunpack.c.h.bf16 %v257_v45 }
 0x1ef   : > { %8139 = vst [vmem:[#allocation64_spill] sm:$0xff] %v5078_v5  ;;  %v4185_v47 = vpack.i.bf16 %v1131_v57, %v1130_v54  ;;  %v4195_v62 = vpack.i.bf16 %v1135_v43, %v1134_v3 }
 0x1f0   : > { %v4190_v51 = vpack.i.bf16 %v1133_v35, %v1132_v2 }
 0x1f4   : > { %4171 = vrot.lane.b32.xlu0 %v4170_v59, %s4330_s11  ;;  %4181 = vrot.lane.b32.xlu2 %v4180_v4, %s4330_s11  ;;  %v259_v4 = vld [vmem:[%s7798_s4 + $0x108] sm:$0xff]  ;;  %v261_v59 = vld [vmem:[%s7798_s4 + $0x118] sm:$0xff] }
 0x1f5   : > { %4176 = vrot.lane.b32.xlu1 %v4175_v38, %s4330_s11  ;;  %v260_v38 = vld [vmem:[%s7798_s4 + $0x110] sm:$0xff]  ;;  %v1136_v10 = vunpack.c.l.bf16 %v259_v4  ;;  %v1137_v56 = vunpack.c.h.bf16 %v259_v4  ;;  %v1140_v45 = vunpack.c.l.bf16 %v261_v59  ;;  %v1141_v54 = vunpack.c.h.bf16 %v261_v59 }
 0x1f6   : > { %v5094_v33 = vpop.permute.xlu1 %859  ;;  %v5096_v1 = vpop.permute.xlu2 %879  ;;  %v1138_v57 = vunpack.c.l.bf16 %v260_v38  ;;  %v1139_v3 = vunpack.c.h.bf16 %v260_v38 }
 0x1f7   : > { %8141 = vst [vmem:[#allocation66_spill] sm:$0xff] %v5094_v33  ;;  %v5098_v55 = vpop.permute.xlu0 %857  ;;  %v4200_v40 = vpack.i.bf16 %v1137_v56, %v1136_v10  ;;  %v4210_v58 = vpack.i.bf16 %v1141_v54, %v1140_v45 }
 0x1f8   : > { %8142 = vst [vmem:[#allocation67_spill] sm:$0xff] %v5098_v55  ;;  %v4205_v27 = vpack.i.bf16 %v1139_v3, %v1138_v57 }
 0x1fc   : > { %4186 = vrot.lane.b32.xlu0 %v4185_v47, %s4330_s11  ;;  %4196 = vrot.lane.b32.xlu2 %v4195_v62, %s4330_s11  ;;  %v262_v47 = vld [vmem:[%s7798_s4 + $0x120] sm:$0xff]  ;;  %v264_v62 = vld [vmem:[%s7798_s4 + $0x130] sm:$0xff] }
 0x1fd   : > { %4191 = vrot.lane.b32.xlu1 %v4190_v51, %s4330_s11  ;;  %v263_v51 = vld [vmem:[%s7798_s4 + $0x128] sm:$0xff]  ;;  %v1142_v4 = vunpack.c.l.bf16 %v262_v47  ;;  %v1143_v59 = vunpack.c.h.bf16 %v262_v47  ;;  %v1146_v38 = vunpack.c.l.bf16 %v264_v62  ;;  %v1147_v10 = vunpack.c.h.bf16 %v264_v62 }
 0x1fe   : > { %v5112_v43 = vpop.permute.xlu1 %865  ;;  %v5116_v35 = vpop.permute.xlu2 %885  ;;  %v1144_v56 = vunpack.c.l.bf16 %v263_v51  ;;  %v1145_v45 = vunpack.c.h.bf16 %v263_v51 }
 0x1ff   : > { %8143 = vst [vmem:[#allocation68_spill] sm:$0xff] %v5112_v43  ;;  %v5114_v2 = vpop.permute.xlu0 %863  ;;  %v4215_v3 = vpack.i.bf16 %v1143_v59, %v1142_v4 }
 0x200   : > { %8144 = vst [vmem:[#allocation69_spill] sm:$0xff] %v5114_v2  ;;  %v4220_v33 = vpack.i.bf16 %v1145_v45, %v1144_v56 }
 0x201   : > { %8145 = vst [vmem:[#allocation70_spill] sm:$0xff] %v5116_v35  ;;  %v4225_v35 = vpack.i.bf16 %v1147_v10, %v1146_v38 }
 0x204   : > { %4201 = vrot.lane.b32.xlu0 %v4200_v40, %s4330_s11  ;;  %4211 = vrot.lane.b32.xlu2 %v4210_v58, %s4330_s11  ;;  %v265_v40 = vld [vmem:[%s7798_s4 + $0x138] sm:$0xff]  ;;  %v267_v58 = vld [vmem:[%s7798_s4 + $0x148] sm:$0xff] }
 0x205   : > { %4206 = vrot.lane.b32.xlu1 %v4205_v27, %s4330_s11  ;;  %v266_v27 = vld [vmem:[%s7798_s4 + $0x140] sm:$0xff]  ;;  %v1148_v62 = vunpack.c.l.bf16 %v265_v40  ;;  %v1149_v51 = vunpack.c.h.bf16 %v265_v40  ;;  %v1152_v4 = vunpack.c.l.bf16 %v267_v58  ;;  %v1153_v59 = vunpack.c.h.bf16 %v267_v58 }
 0x206   : > { %v5140_v47 = vpop.permute.xlu2 %4046  ;;  %v1150_v38 = vunpack.c.l.bf16 %v266_v27  ;;  %v1151_v10 = vunpack.c.h.bf16 %v266_v27 }
 0x207   : > { %v5130_v54 = vpop.permute.xlu1 %871  ;;  %v5132_v57 = vpop.permute.xlu0 %869  ;;  %v4240_v9 = vpack.i.bf16 %v1153_v59, %v1152_v4  ;;  %v5245_v5 = vunpack.i.l.bf16 %v5140_v47 }
 0x208   : > { %8146 = vst [vmem:[#allocation71_spill] sm:$0xff] %v5130_v54  ;;  %v4235_v55 = vpack.i.bf16 %v1151_v10, %v1150_v38 }
 0x209   : > { %8147 = vst [vmem:[#allocation72_spill] sm:$0xff] %v5132_v57  ;;  %v4230_v57 = vpack.i.bf16 %v1149_v51, %v1148_v62 }
 0x20a   : > { %8155 = vst [vmem:[#allocation80_spill] sm:$0xff] %v5245_v5 }
 0x20c   : > { %4216 = vrot.lane.b32.xlu0 %v4215_v3, %s4330_s11  ;;  %4226 = vrot.lane.b32.xlu2 %v4225_v35, %s4330_s11  ;;  %v268_v3 = vld [vmem:[%s7798_s4 + $0x150] sm:$0xff]  ;;  %v270_v35 = vld [vmem:[%s7798_s4 + $0x160] sm:$0xff] }
 0x20d   : > { %4221 = vrot.lane.b32.xlu1 %v4220_v33, %s4330_s11  ;;  %v269_v33 = vld [vmem:[%s7798_s4 + $0x158] sm:$0xff]  ;;  %v1154_v58 = vunpack.c.l.bf16 %v268_v3  ;;  %v1155_v27 = vunpack.c.h.bf16 %v268_v3  ;;  %v1158_v62 = vunpack.c.l.bf16 %v270_v35  ;;  %v1159_v51 = vunpack.c.h.bf16 %v270_v35 }
 0x20e   : > { %v5161_v40 = vpop.permute.xlu2 %4061  ;;  %v1156_v4 = vunpack.c.l.bf16 %v269_v33  ;;  %v1157_v59 = vunpack.c.h.bf16 %v269_v33 }
 0x20f   : > { %v5148_v56 = vpop.permute.xlu1 %877  ;;  %v5150_v45 = vpop.permute.xlu0 %875  ;;  %8150 = vst [vmem:[#allocation75_spill] sm:$0xff] %v5161_v40  ;;  %v4255_v52 = vpack.i.bf16 %v1159_v51, %v1158_v62 }
 0x210   : > { %8148 = vst [vmem:[#allocation73_spill] sm:$0xff] %v5148_v56  ;;  %v4245_v56 = vpack.i.bf16 %v1155_v27, %v1154_v58  ;;  %v4250_v2 = vpack.i.bf16 %v1157_v59, %v1156_v4 }
 0x211   : > { %8149 = vst [vmem:[#allocation74_spill] sm:$0xff] %v5150_v45 }
 0x214   : > { %4231 = vrot.lane.b32.xlu0 %v4230_v57, %s4330_s11  ;;  %4241 = vrot.lane.b32.xlu2 %v4240_v9, %s4330_s11  ;;  %v271_v57 = vld [vmem:[%s7798_s4 + $0x168] sm:$0xff]  ;;  %v273_v9 = vld [vmem:[%s7798_s4 + $0x178] sm:$0xff] }
 0x215   : > { %4236 = vrot.lane.b32.xlu1 %v4235_v55, %s4330_s11  ;;  %v272_v55 = vld [vmem:[%s7798_s4 + $0x170] sm:$0xff]  ;;  %v1160_v3 = vunpack.c.l.bf16 %v271_v57  ;;  %v1161_v35 = vunpack.c.h.bf16 %v271_v57  ;;  %v1164_v33 = vunpack.c.l.bf16 %v273_v9  ;;  %v1165_v58 = vunpack.c.h.bf16 %v273_v9 }
 0x216   : > { %v1162_v27 = vunpack.c.l.bf16 %v272_v55  ;;  %v1163_v62 = vunpack.c.h.bf16 %v272_v55  ;;  %v5182_v51 = vpop.permute.xlu2 %4076 }
 0x217   : > { %v5166_v38 = vpop.permute.xlu1 %883  ;;  %v5168_v10 = vpop.permute.xlu0 %881  ;;  %8151 = vst [vmem:[#allocation76_spill] sm:$0xff] %v5182_v51  ;;  %v4260_v43 = vpack.i.bf16 %v1161_v35, %v1160_v3  ;;  %v4270_v32 = vpack.i.bf16 %v1165_v58, %v1164_v33 }
 0x218   : > { %v4265_v34 = vpack.i.bf16 %v1163_v62, %v1162_v27 }
 0x21c   : > { %4246 = vrot.lane.b32.xlu0 %v4245_v56, %s4330_s11  ;;  %4256 = vrot.lane.b32.xlu2 %v4255_v52, %s4330_s11  ;;  %v274_v52 = vld [vmem:[%s7798_s4 + $0x180] sm:$0xff]  ;;  %v276_v56 = vld [vmem:[%s7798_s4 + $0x190] sm:$0xff] }
 0x21d   : > { %4251 = vrot.lane.b32.xlu1 %v4250_v2, %s4330_s11  ;;  %v275_v2 = vld [vmem:[%s7798_s4 + $0x188] sm:$0xff]  ;;  %v1166_v57 = vunpack.c.l.bf16 %v274_v52  ;;  %v1167_v9 = vunpack.c.h.bf16 %v274_v52  ;;  %v1170_v55 = vunpack.c.l.bf16 %v276_v56  ;;  %v1171_v3 = vunpack.c.h.bf16 %v276_v56 }
 0x21e   : > { %v1168_v35 = vunpack.c.l.bf16 %v275_v2  ;;  %v1169_v33 = vunpack.c.h.bf16 %v275_v2  ;;  %v5204_v62 = vpop.permute.xlu2 %4091  ;;  %v279_v52 = vld [vmem:[%s7798_s4 + $0x1a8] sm:$0xff]  ;;  %v309_v56 = vsel %vm7891_vm12, %v4492_v16, %v4504_v19 }
 0x21f   : > { %v5184_v4 = vpop.permute.xlu1 %4041  ;;  %v5186_v59 = vpop.permute.xlu0 %4036  ;;  %8152 = vst [vmem:[#allocation77_spill] sm:$0xff] %v5204_v62  ;;  %v4275_v51 = vpack.i.bf16 %v1167_v9, %v1166_v57  ;;  %v4285_v49 = vpack.i.bf16 %v1171_v3, %v1170_v55  ;;  %v1177_v55 = vunpack.c.h.bf16 %v279_v52  ;;  %v531_v62 = vsel %vm520_vm2, %v4388_v7, %v309_v56 }
 0x220   : > { %v4049_v56 = vunpack.i.h.bf16 %v5140_v47 }
 0x224   : > { %4261 = vrot.lane.b32.xlu0 %v4260_v43, %s4330_s11  ;;  %4271 = vrot.lane.b32.xlu2 %v4270_v32, %s4330_s11  ;;  %v4280_v43 = vpack.i.bf16 %v1169_v33, %v1168_v35  ;;  %v277_v32 = vld [vmem:[%s7798_s4 + $0x198] sm:$0xff]  ;;  %v1176_v35 = vunpack.c.l.bf16 %v279_v52  ;;  %v307_v33 = vsel %vm7891_vm12, %v4496_v18, %v4508_v21 }
 0x225   : > { %4266 = vrot.lane.b32.xlu1 %v4265_v34, %s4330_s11  ;;  %v278_v34 = vld [vmem:[%s7798_s4 + $0x1a0] sm:$0xff]  ;;  %v1172_v2 = vunpack.c.l.bf16 %v277_v32  ;;  %v1173_v9 = vunpack.c.h.bf16 %v277_v32  ;;  %v523_v7 = vsel %vm520_vm2, %v4390_v8, %v307_v33  ;;  %v310_v8 = vsel %vm7891_vm12, %v4504_v19, %v4468_v13 }
 0x226   : > { %v1174_v57 = vunpack.c.l.bf16 %v278_v34  ;;  %v1175_v3 = vunpack.c.h.bf16 %v278_v34  ;;  %v5236_v34 = vunpack.i.l.bf16 %v5186_v59  ;;  %v5247_v23 = vpop.permute.xlu2 %4106  ;;  %v337_v19 = vsel %vm7892_vm1, %v4528_v25, %v4494_v17 }
 0x227   : > { %v5200_v58 = vpop.permute.xlu1 %4056  ;;  %v5202_v27 = vpop.permute.xlu0 %4051  ;;  %v4300_v18 = vpack.i.bf16 %v1177_v55, %v1173_v9  ;;  %v940_v55 = vunpack.c.h.bf16 %v523_v7  ;;  %v322_v17 = vsel %vm8015_vm13, %v4476_v14, %v4520_v24  ;;  %vm8021_vm1 = vcmask 506880  }
 0x228   : > { %8154 = vst [vmem:[#allocation79_spill] sm:$0xff] %v5236_v34  ;;  %v4290_v52 = vpack.i.bf16 %v1174_v57, %v1172_v2  ;;  %v942_v2 = vunpack.c.h.bf16 %v531_v62  ;;  %v935_v57 = vunpack.c.l.bf16 %v523_v7 }
 0x229   : > { %v1724_v25 = vmul.f32 %v5245_v5, %v940_v55 }
 0x22a   : > { %v1719_v33 = vmul.f32 %v5236_v34, %v935_v57  ;;  %v539_v57 = vsel %vm520_vm2, %v4386_v6, %v4468_v13 }
 0x22b   : > { %v944_v6 = vunpack.c.h.bf16 %v539_v57 }
 0x22c   : > { %4276 = vrot.lane.b32.xlu0 %v4275_v51, %s4330_s11  ;;  %4286 = vrot.lane.b32.xlu2 %v4285_v49, %s4330_s11  ;;  %v308_v51 = vsel %vm7891_vm12, %v4508_v21, %v4492_v16  ;;  %v4053_v49 = vunpack.i.l.bf16 %v5202_v27  ;;  %v4043_v16 = vunpack.i.l.bf16 %v5184_v4  ;;  %v4295_v21 = vpack.i.bf16 %v1176_v35, %v1175_v3 }
 0x22d   : > { %4281 = vrot.lane.b32.xlu1 %v4280_v43, %s4330_s11  ;;  %v4039_v43 = vunpack.i.h.bf16 %v5186_v59  ;;  %v527_v54 = vsel %vm520_vm2, %v4400_v12, %v308_v51  ;;  %v937_v12 = vunpack.c.l.bf16 %v531_v62  ;;  %v5270_v35 = vsel %vm484_vm11, %v5245_v5, %v4049_v56 }
 0x22e   : > { %v5250_v59 = vsel %vm484_vm11, %v4049_v56, %v4053_v49  ;;  %v936_v47 = vunpack.c.l.bf16 %v527_v54  ;;  %8159 = vst [vmem:[#allocation84_spill] sm:$0xff] %v5270_v35  ;;  %v941_v62 = vunpack.c.h.bf16 %v527_v54  ;;  %v535_v54 = vsel %vm520_vm2, %v4398_v11, %v310_v8 }
 0x22f   : > { %v5230_v45 = vpop.permute.xlu1 %4071  ;;  %v5232_v32 = vpop.permute.xlu0 %4066  ;;  %8156 = vst [vmem:[#allocation81_spill] sm:$0xff] %v5250_v59  ;;  %v5257_v9 = vsel %vm484_vm11, %v5236_v34, %v4039_v43  ;;  %v5262_v3 = vsel %vm484_vm11, %v4039_v43, %v4043_v16  ;;  %v1726_v51 = vmul.f32 %v5250_v59, %v942_v2  ;;  %v5276_v43 = vunpack.i.h.bf16 %v5202_v27 }
 0x230   : > { %8153 = vst [vmem:[#allocation78_spill] sm:$0xff] %v5230_v45  ;;  %v1721_v56 = vmul.f32 %v5262_v3, %v937_v12  ;;  %v1725_v27 = vmul.f32 %v5270_v35, %v941_v62  ;;  %v5292_v2 = vunpack.i.h.bf16 %v5184_v4  ;;  %v5298_v14 = vunpack.i.l.bf16 %v5232_v32  ;;  %v5307_v4 = vpop.permute.xlu2 %4121 }
 0x231   : > { %8157 = vst [vmem:[#allocation82_spill] sm:$0xff] %v5257_v9  ;;  %v1854_v55 = vpack.c.bf16 %v1724_v25, %v1719_v33  ;;  %v5302_v12 = vsel %vm484_vm11, %v4053_v49, %v5276_v43  ;;  %v943_v8 = vunpack.c.h.bf16 %v535_v54  ;;  %v5305_v62 = vunpack.i.l.bf16 %v5200_v58 }
 0x232   : > { %8158 = vst [vmem:[#allocation83_spill] sm:$0xff] %v5262_v3  ;;  %v5313_v13 = vsel %vm484_vm11, %v4043_v16, %v5292_v2  ;;  %v938_v49 = vunpack.c.l.bf16 %v535_v54  ;;  %v1728_v25 = vmul.f32 %v5276_v43, %v944_v6  ;;  %v323_v16 = vsel %vm8015_vm13, %v4520_v24, %v4516_v22 }
 0x233   : > { %8160 = vst [vmem:[#allocation85_spill] sm:$0xff] %v5276_v43  ;;  %vm8019_vm12 = vcmask 908288  }
 0x234   : > { %4291 = vrot.lane.b32.xlu0 %v4290_v52, %s4330_s11  ;;  %4301 = vrot.lane.b32.xlu2 %v4300_v18, %s4330_s11  ;;  %v1720_v52 = vmul.f32 %v5257_v9, %v936_v47  ;;  %8161 = vst [vmem:[#allocation86_spill] sm:$0xff] %v5292_v2  ;;  %v1856_v47 = vpack.c.bf16 %v1726_v51, %v1721_v56  ;;  %v4069_v56 = vunpack.i.h.bf16 %v5232_v32 }
 0x235   : > { %4296 = vrot.lane.b32.xlu1 %v4295_v21, %s4330_s11  ;;  %v543_v21 = vsel %vm520_vm2, %v322_v17, %v337_v19  ;;  %8162 = vst [vmem:[#allocation87_spill] sm:$0xff] %v5298_v14  ;;  %v1727_v51 = vmul.f32 %v5302_v12, %v943_v8  ;;  %v939_v17 = vunpack.c.l.bf16 %v539_v57  ;;  %v1722_v54 = vmul.f32 %v5313_v13, %v938_v49 }
 0x236   : > { %8163 = vst [vmem:[#allocation88_spill] sm:$0xff] %v5302_v12  ;;  %v1855_v11 = vpack.c.bf16 %v1725_v27, %v1720_v52  ;;  %v950_v19 = vunpack.c.h.bf16 %v543_v21  ;;  %v945_v33 = vunpack.c.l.bf16 %v543_v21  ;;  %v324_v57 = vsel %vm8015_vm13, %v4516_v22, %v4484_v15 }
 0x237   : > { %v5278_v18 = vpop.permute.xlu1 %4086  ;;  %v5280_v7 = vpop.permute.xlu0 %4081  ;;  %8164 = vst [vmem:[#allocation89_spill] sm:$0xff] %v5305_v62  ;;  %v547_v32 = vsel %vm520_vm2, %v323_v16, %v4767_v36  ;;  %v4059_v8 = vunpack.i.h.bf16 %v5200_v58  ;;  %v551_v24 = vsel %vm520_vm2, %v324_v57, %v4762_v29  ;;  %v1857_v6 = vpack.c.bf16 %v1727_v51, %v1722_v54 }
 0x238   : > { %8165 = vst [vmem:[#allocation90_spill] sm:$0xff] %v5313_v13  ;;  %v1734_v52 = vmul.f32 %v5298_v14, %v950_v19  ;;  %v1729_v21 = vmul.f32 %v5305_v62, %v945_v33  ;;  %v5341_v49 = vsel %vm484_vm11, %v5298_v14, %v4069_v56  ;;  %v7869_v22 = vunpack.i.l.bf16 %v5161_v40 }
 0x239   : > { %8166 = vst [vmem:[#allocation91_spill] sm:$0xff] %v5341_v49  ;;  %v8167_v12 = vunpack.i.l.bf16 %v5230_v45  ;;  %v952_v29 = vunpack.c.h.bf16 %v551_v24  ;;  %v5353_v58 = vsel %vm484_vm11, %v5305_v62, %v4059_v8  ;;  %v946_v51 = vunpack.c.l.bf16 %v547_v32  ;;  %v8202_v45 = vld [vmem:[#allocation29_spill] sm:$0xff] }
 0x23a   : > { %v1859_v19 = vpack.c.bf16 %v1734_v52, %v1729_v21  ;;  %8169 = vst [vmem:[#allocation93_spill] sm:$0xff] %v5353_v58  ;;  %v5359_v52 = vsel %vm484_vm11, %v4059_v8, %v7869_v22 }
 0x23b   : > { %v5347_v36 = vsel %vm484_vm11, %v4069_v56, %v8167_v12  ;;  %8170 = vst [vmem:[#allocation94_spill] sm:$0xff] %v5359_v52  ;;  %v1730_v21 = vmul.f32 %v5353_v58, %v946_v51 }
 0x23c   : > { %2005 = vrot.lane.b32.xlu2 %v1856_v47, %s4333_s14  ;;  %2001 = vrot.lane.b32.xlu0 %v1854_v55, %s4333_s14  ;;  %v951_v55 = vunpack.c.h.bf16 %v547_v32  ;;  %8168 = vst [vmem:[#allocation92_spill] sm:$0xff] %v5347_v36  ;;  %v1736_v56 = vmul.f32 %v5347_v36, %v952_v29 }
 0x23d   : > { %2003 = vrot.lane.b32.xlu1 %v1855_v11, %s4333_s14  ;;  %v1723_v11 = vmul.f32 %v5292_v2, %v939_v17  ;;  %v5362_v17 = vpop.permute.xlu2 %4136 }
 0x23e   : > { %v1735_v12 = vmul.f32 %v5341_v49, %v951_v55 }
 0x23f   : > { %v5320_v27 = vpop.permute.xlu1 %4101  ;;  %v5322_v47 = vpop.permute.xlu0 %4096  ;;  %v1858_v33 = vpack.c.bf16 %v1728_v25, %v1723_v11  ;;  %v947_v25 = vunpack.c.l.bf16 %v551_v24 }
 0x240   : > { %v1860_v32 = vpack.c.bf16 %v1735_v12, %v1730_v21  ;;  %v647_v12 = vsel %vm520_vm2, %v4886_v26, %v4917_v60 }
 0x241   : > { %v1731_v57 = vmul.f32 %v5359_v52, %v947_v25  ;;  %v1001_v22 = vunpack.c.h.bf16 %v647_v12 }
 0x243   : > { %v1861_v11 = vpack.c.bf16 %v1736_v56, %v1731_v57 }
 0x244   : > { %2011 = vrot.lane.b32.xlu2 %v1859_v19, %s4333_s14  ;;  %2007 = vrot.lane.b32.xlu0 %v1857_v6, %s4333_s14 }
 0x245   : > { %2009 = vrot.lane.b32.xlu1 %v1858_v33, %s4333_s14  ;;  %v5377_v24 = vpop.permute.xlu2 %4151 }
 0x246   : > { %8171 = vst [vmem:[#allocation95_spill] sm:$0xff] %v5377_v24 }
 0x247   : > { %v5365_v16 = vpop.permute.xlu1 %4116  ;;  %v5367_v54 = vpop.permute.xlu0 %4111 }
 0x24c   : > { %2013 = vrot.lane.b32.xlu0 %v1860_v32, %s4333_s14 }
 0x24d   : > { %2015 = vrot.lane.b32.xlu1 %v1861_v11, %s4333_s14  ;;  %v4167_v33 = vpop.permute.xlu2 %4166  ;;  %v996_v11 = vunpack.c.l.bf16 %v647_v12  ;;  %v517_v12 = vsel %vm515_vm14, %v4791_v53, %v4781_v28 }
 0x24e   : > { %v4169_v29 = vunpack.i.h.bf16 %v4167_v33  ;;  %v5383_v51 = vunpack.i.l.bf16 %v4167_v33 }
 0x24f   : > { %v5373_v55 = vpop.permute.xlu1 %4131  ;;  %v5375_v8 = vpop.permute.xlu0 %4126 }
 0x250   : > { %8173 = vst [vmem:[#allocation97_spill] sm:$0xff] %v5383_v51  ;;  %v5394_v32 = vsel %vm484_vm11, %v5383_v51, %v4169_v29 }
 0x251   : > { %8176 = vst [vmem:[#allocation100_spill] sm:$0xff] %v5394_v32  ;;  %v1785_v13 = vmul.f32 %v5394_v32, %v1001_v22  ;;  %v516_v22 = vsel %vm515_vm14, %v4793_v41, %v4791_v53  ;;  %v903_v32 = vsel %vm484_vm11, %v5168_v10, %v5166_v38 }
 0x255   : > { %v5402_v60 = vpop.permute.xlu2 %4181 }
 0x256   : > { %v7882_v3 = vunpack.i.l.bf16 %v5402_v60 }
 0x257   : > { %v5379_v19 = vpop.permute.xlu1 %4146  ;;  %v5381_v6 = vpop.permute.xlu0 %4141 }
 0x258   : > { %8172 = vst [vmem:[#allocation96_spill] sm:$0xff] %v5381_v6 }
 0x25d   : > { %v5426_v9 = vpop.permute.xlu2 %4196 }
 0x25e   : > { %8180 = vst [vmem:[#allocation104_spill] sm:$0xff] %v5426_v9 }
 0x25f   : > { %v5388_v25 = vpop.permute.xlu1 %4161  ;;  %v4157_v56 = vpop.permute.xlu0 %4156 }
 0x260   : > { %8174 = vst [vmem:[#allocation98_spill] sm:$0xff] %v5388_v25  ;;  %v4159_v21 = vunpack.i.h.bf16 %v4157_v56  ;;  %v5390_v57 = vunpack.i.l.bf16 %v4157_v56 }
 0x262   : > { %8175 = vst [vmem:[#allocation99_spill] sm:$0xff] %v5390_v57  ;;  %v5398_v33 = vsel %vm484_vm11, %v5390_v57, %v4159_v21 }
 0x263   : > { %8177 = vst [vmem:[#allocation101_spill] sm:$0xff] %v5398_v33  ;;  %v1780_v26 = vmul.f32 %v5398_v33, %v996_v11  ;;  %v8197_v33 = vld [vmem:[#allocation13_spill] sm:$0xff] }
 0x265   : > { %v1885_v43 = vpack.c.bf16 %v1785_v13, %v1780_v26  ;;  %v502_v13 = vsel %vm8022_vm15, %v4715_v44, %v4789_v50 }
 0x266   : > { %v671_v26 = vsel %vm520_vm2, %v502_v13, %v517_v12 }
 0x267   : > { %v4177_v2 = vpop.permute.xlu1 %4176  ;;  %v5404_v56 = vpop.permute.xlu0 %4171  ;;  %2063 = vrot.lane.b32.xlu1 %v1885_v43, %s4333_s14  ;;  %v501_v43 = vsel %vm8022_vm15, %v4783_v30, %v4715_v44  ;;  %v1007_v12 = vunpack.c.l.bf16 %v671_v26  ;;  %v1012_v13 = vunpack.c.h.bf16 %v671_v26 }
 0x268   : > { %8178 = vst [vmem:[#allocation102_spill] sm:$0xff] %v5404_v56  ;;  %v4179_v59 = vunpack.i.h.bf16 %v4177_v2  ;;  %v5416_v11 = vunpack.i.l.bf16 %v4177_v2  ;;  %v667_v35 = vsel %vm520_vm2, %v501_v43, %v516_v22  ;;  %v7889_v52 = vunpack.i.l.bf16 %v5404_v56 }
 0x269   : > { %v1006_v43 = vunpack.c.l.bf16 %v667_v35  ;;  %v1011_v58 = vunpack.c.h.bf16 %v667_v35  ;;  %v651_v35 = vsel %vm520_vm2, %v4891_v46, %v4936_v20  ;;  %v4149_v56 = vunpack.i.h.bf16 %v5379_v19 }
 0x26a   : > { %8179 = vst [vmem:[#allocation103_spill] sm:$0xff] %v5416_v11  ;;  %v5431_v2 = vsel %vm484_vm11, %v4179_v59, %v7882_v3  ;;  %v5438_v22 = vsel %vm484_vm11, %v5416_v11, %v4179_v59  ;;  %v997_v20 = vunpack.c.l.bf16 %v651_v35 }
 0x26b   : > { %8181 = vst [vmem:[#allocation105_spill] sm:$0xff] %v5431_v2  ;;  %v1791_v3 = vmul.f32 %v5431_v2, %v1007_v12  ;;  %v1790_v59 = vmul.f32 %v5438_v22, %v1006_v43  ;;  %v663_v43 = vsel %vm520_vm2, %v4783_v30, %v4793_v41  ;;  %v902_v2 = vsel %vm484_vm11, %v5096_v1, %v5168_v10  ;;  %v8201_v10 = vld [vmem:[#allocation36_spill] sm:$0xff] }
 0x26c   : > { %8183 = vst [vmem:[#allocation107_spill] sm:$0xff] %v5438_v22 }
 0x26f   : > { %v5424_v5 = vpop.permute.xlu1 %4191  ;;  %v4187_v53 = vpop.permute.xlu0 %4186 }
 0x270   : > { %v7885_v34 = vunpack.i.l.bf16 %v5424_v5  ;;  %v4189_v49 = vunpack.i.h.bf16 %v4187_v53  ;;  %v5434_v44 = vunpack.i.l.bf16 %v4187_v53 }
 0x272   : > { %8182 = vst [vmem:[#allocation106_spill] sm:$0xff] %v5434_v44  ;;  %v5443_v36 = vsel %vm484_vm11, %v4189_v49, %v7885_v34  ;;  %v5450_v26 = vsel %vm484_vm11, %v5434_v44, %v4189_v49  ;;  %v7888_v34 = vunpack.i.l.bf16 %v5388_v25 }
 0x273   : > { %8184 = vst [vmem:[#allocation108_spill] sm:$0xff] %v5443_v36  ;;  %v1796_v53 = vmul.f32 %v5443_v36, %v1012_v13  ;;  %v1795_v14 = vmul.f32 %v5450_v26, %v1011_v58  ;;  %v5461_v13 = vsel %vm484_vm11, %v4169_v29, %v7889_v52  ;;  %v1002_v58 = vunpack.c.h.bf16 %v651_v35 }
 0x274   : > { %8185 = vst [vmem:[#allocation109_spill] sm:$0xff] %v5450_v26  ;;  %v5472_v46 = vsel %vm484_vm11, %v4159_v21, %v7888_v34  ;;  %v1005_v21 = vunpack.c.l.bf16 %v663_v43  ;;  %v8198_v26 = vld [vmem:[#allocation14_spill] sm:$0xff] }
 0x275   : > { %v1891_v62 = vpack.c.bf16 %v1796_v53, %v1791_v3  ;;  %v1890_v12 = vpack.c.bf16 %v1795_v14, %v1790_v59  ;;  %8186 = vst [vmem:[#allocation110_spill] sm:$0xff] %v5461_v13  ;;  %v5474_v3 = vpop.permute.xlu2 %4211  ;;  %v1786_v14 = vmul.f32 %v5461_v13, %v1002_v58  ;;  %v1781_v29 = vmul.f32 %v5472_v46, %v997_v20 }
 0x276   : > { %8188 = vst [vmem:[#allocation112_spill] sm:$0xff] %v5472_v46  ;;  %v472_v58 = vsel %vm471_vm10, %v4711_v37, %v4677_v0  ;;  %v1789_v34 = vmul.f32 %v5416_v11, %v1005_v21  ;;  %v5539_v22 = vsel %vm8017_vm3, %v8198_v26, %v8197_v33 }
 0x277   : > { %v5463_v36 = vpop.permute.xlu1 %4206  ;;  %v5465_v49 = vpop.permute.xlu0 %4201  ;;  %2075 = vrot.lane.b32.xlu0 %v1891_v62, %s4333_s14  ;;  %2073 = vrot.lane.b32.xlu2 %v1890_v12, %s4333_s14  ;;  %8189 = vst [vmem:[#allocation113_spill] sm:$0xff] %v5474_v3  ;;  %v1886_v62 = vpack.c.bf16 %v1786_v14, %v1781_v29  ;;  %v1010_v12 = vunpack.c.h.bf16 %v663_v43  ;;  %v643_v41 = vsel %vm520_vm2, %v472_v58, %v4737_v42  ;;  %v4139_v3 = vunpack.i.h.bf16 %v5362_v17 }
 0x278   : > { %8187 = vst [vmem:[#allocation111_spill] sm:$0xff] %v5465_v49  ;;  %v1000_v43 = vunpack.c.h.bf16 %v643_v41 }
 0x279   : > { %v1794_v35 = vmul.f32 %v5434_v44, %v1010_v12 }
 0x27a   : > { %v1784_v0 = vmul.f32 %v5383_v51, %v1000_v43 }
 0x27b   : > { %v1889_v30 = vpack.c.bf16 %v1794_v35, %v1789_v34 }
 0x27d   : > { %v5490_v20 = vpop.permute.xlu2 %4226 }
 0x27e   : > { %8192 = vst [vmem:[#allocation116_spill] sm:$0xff] %v5490_v20 }
 0x27f   : > { %v5481_v53 = vpop.permute.xlu1 %4221  ;;  %v5483_v59 = vpop.permute.xlu0 %4216  ;;  %2065 = vrot.lane.b32.xlu2 %v1886_v62, %s4333_s14  ;;  %v995_v62 = vunpack.c.l.bf16 %v643_v41 }
 0x280   : > { %8190 = vst [vmem:[#allocation114_spill] sm:$0xff] %v5481_v53  ;;  %v5567_v53 = vunpack.i.l.bf16 %v5379_v19  ;;  %v8207_v19 = vld [vmem:[#allocation48_spill] sm:$0xff] }
 0x281   : > { %8191 = vst [vmem:[#allocation115_spill] sm:$0xff] %v5483_v59  ;;  %v1779_v12 = vmul.f32 %v5390_v57, %v995_v62  ;;  %v398_v62 = vsel %vm8019_vm12, %v4615_v48, %v4579_v39  ;;  %v8199_v57 = vld [vmem:[#allocation32_spill] sm:$0xff] }
 0x282   : > { %v442_v44 = vsel %vm441_vm7, %v8199_v57, %v4675_v63  ;;  %v1066_v57 = vunpack.c.l.bf16 %v902_v2 }
 0x283   : > { %v1884_v52 = vpack.c.bf16 %v1784_v0, %v1779_v12  ;;  %v8195_v12 = vld [vmem:[#allocation20_spill] sm:$0xff]  ;;  %v8196_v0 = vld [vmem:[#allocation9_spill] sm:$0xff] }
 0x284   : > { %v383_v46 = vsel %vm8018_vm5, %v8196_v0, %v8195_v12  ;;  %8204 = vst [vmem:[#allocation9_spill] sm:$0xff] %v5567_v53 }
 0x285   : > { %v5502_v37 = vpop.permute.xlu2 %4241  ;;  %v5542_v51 = vsel %vm520_vm2, %v383_v46, %v398_v62 }
 0x287   : > { %v5495_v14 = vpop.permute.xlu1 %4236  ;;  %v5497_v29 = vpop.permute.xlu0 %4231  ;;  %2071 = vrot.lane.b32.xlu2 %v1889_v30, %s4333_s14 }
 0x288   : > { %8193 = vst [vmem:[#allocation117_spill] sm:$0xff] %v5497_v29  ;;  %v966_v29 = vunpack.c.l.bf16 %v5542_v51 }
 0x28d   : > { %v5513_v35 = vpop.permute.xlu2 %4256 }
 0x28f   : > { %v5504_v21 = vpop.permute.xlu1 %4251  ;;  %v5506_v13 = vpop.permute.xlu0 %4246  ;;  %2061 = vrot.lane.b32.xlu2 %v1884_v52, %s4333_s14  ;;  %v8194_v52 = vld [vmem:[#allocation35_spill] sm:$0xff] }
 0x290   : > { %v459_v43 = vsel %vm8021_vm1, %v8194_v52, %v4665_v61  ;;  %v457_v61 = vsel %vm8021_vm1, %v8202_v45, %v8201_v10  ;;  %v458_v63 = vsel %vm8021_vm1, %v8201_v10, %v8194_v52 }
 0x291   : > { %v631_v11 = vsel %vm520_vm2, %v4850_v31, %v459_v43  ;;  %v1065_v31 = vunpack.c.l.bf16 %v5096_v1  ;;  %v1067_v43 = vunpack.c.l.bf16 %v903_v32  ;;  %v623_v52 = vsel %vm520_vm2, %v442_v44, %v457_v61 }
 0x292   : > { %v627_v10 = vsel %vm520_vm2, %v8207_v19, %v458_v63  ;;  %v7925_v61 = vunpack.i.l.bf16 %v5377_v24  ;;  %v5594_v63 = vsel %vm484_vm11, %v5567_v53, %v4149_v56 }
 0x293   : > { %8209 = vst [vmem:[#allocation36_spill] sm:$0xff] %v5594_v63 }
 0x295   : > { %v5519_v30 = vpop.permute.xlu2 %4271 }
 0x297   : > { %v5509_v42 = vpop.permute.xlu1 %4266  ;;  %v5511_v34 = vpop.permute.xlu0 %4261 }
 0x29d   : > { %v4287_v9 = vpop.permute.xlu2 %4286 }
 0x29f   : > { %v5515_v58 = vpop.permute.xlu1 %4281  ;;  %v5517_v41 = vpop.permute.xlu0 %4276 }
 0x2a7   : > { %v5549_v40 = vpop.permute.xlu1 %4296  ;;  %v5551_v15 = vpop.permute.xlu0 %4291 }
 0x2a8   : > { %8200 = vst [vmem:[#allocation35_spill] sm:$0xff] %v5551_v15  ;;  %v7919_v25 = vunpack.i.h.bf16 %v5549_v40  ;;  %v4298_v46 = vunpack.i.l.bf16 %v5549_v40  ;;  %v5559_v62 = vunpack.i.h.bf16 %v5551_v15 }
 0x2aa   : > { %8203 = vst [vmem:[#allocation20_spill] sm:$0xff] %v5559_v62  ;;  %v5572_v45 = vsel %vm484_vm11, %v4298_v46, %v7919_v25  ;;  %v5576_v20 = vsel %vm484_vm11, %v5559_v62, %v4298_v46  ;;  %v1849_v32 = vmul.f32 %v5559_v62, %v1065_v31  ;;  %v5586_v25 = vunpack.i.l.bf16 %v5362_v17 }
 0x2ab   : > { %8205 = vst [vmem:[#allocation13_spill] sm:$0xff] %v5572_v45  ;;  %v1850_v2 = vmul.f32 %v5576_v20, %v1066_v57  ;;  %v1851_v46 = vmul.f32 %v5572_v45, %v1067_v43  ;;  %v971_v31 = vunpack.c.h.bf16 %v5542_v51  ;;  %v987_v57 = vunpack.c.l.bf16 %v631_v11 }
 0x2ac   : > { %8206 = vst [vmem:[#allocation14_spill] sm:$0xff] %v5576_v20  ;;  %v1919_v44 = vpack.c.bf16 %v1849_v32, %v1849_v32  ;;  %v990_v62 = vunpack.c.h.bf16 %v623_v52  ;;  %v991_v17 = vunpack.c.h.bf16 %v627_v10  ;;  %v5599_v43 = vsel %vm484_vm11, %v4149_v56, %v7925_v61 }
 0x2ad   : > { %8208 = vst [vmem:[#allocation32_spill] sm:$0xff] %v5586_v25  ;;  %v1920_v1 = vpack.c.bf16 %v1850_v2, %v1850_v2  ;;  %v1921_v19 = vpack.c.bf16 %v1851_v46, %v1851_v46  ;;  %v8211_v45 = vunpack.i.l.bf16 %v5381_v6  ;;  %v992_v51 = vunpack.c.h.bf16 %v631_v11 }
 0x2ae   : > { %8210 = vst [vmem:[#allocation29_spill] sm:$0xff] %v5599_v43  ;;  %2131 = vrot.lane.b32.xlu2 %v1919_v44, %s4333_s14  ;;  %v985_v2 = vunpack.c.l.bf16 %v623_v52  ;;  %v986_v20 = vunpack.c.l.bf16 %v627_v10  ;;  %v5610_v46 = vsel %vm484_vm11, %v5586_v25, %v4139_v3  ;;  %v5615_v61 = vunpack.i.l.bf16 %v5322_v47  ;;  %v8215_v10 = vld [vmem:[#allocation64_spill] sm:$0xff] }
 0x2af   : > { %v5604_v32 = vsel %vm484_vm11, %v4139_v3, %v8211_v45  ;;  %2133 = vrot.lane.b32.xlu0 %v1920_v1, %s4333_s14  ;;  %8213 = vst [vmem:[#allocation118_spill] sm:$0xff] %v5610_v46  ;;  %2135 = vrot.lane.b32.xlu1 %v1921_v19, %s4333_s14  ;;  %v1774_v45 = vmul.f32 %v5567_v53, %v990_v62  ;;  %v4279_v52 = vunpack.i.h.bf16 %v5517_v41  ;;  %v5623_v3 = vunpack.i.l.bf16 %v5517_v41  ;;  %v8216_v19 = vld [vmem:[#allocation71_spill] sm:$0xff]  ;;  %v8219_v41 = vld [vmem:[#allocation74_spill] sm:$0xff] }
 0x2b0   : > { %8212 = vst [vmem:[#allocation48_spill] sm:$0xff] %v5604_v32  ;;  %v1775_v44 = vmul.f32 %v5594_v63, %v991_v17  ;;  %v1776_v1 = vmul.f32 %v5599_v43, %v992_v51  ;;  %v1771_v11 = vmul.f32 %v5604_v32, %v987_v57  ;;  %v899_v56 = vsel %vm484_vm11, %v8216_v19, %v8215_v10  ;;  %v8225_v63 = vld [vmem:[#allocation27_spill] sm:$0xff] }
 0x2b1   : > { %8214 = vst [vmem:[#allocation119_spill] sm:$0xff] %v5623_v3  ;;  %v1769_v24 = vmul.f32 %v5586_v25, %v985_v2  ;;  %v1770_v6 = vmul.f32 %v5610_v46, %v986_v20  ;;  %v5633_v51 = vunpack.i.l.bf16 %v5247_v23  ;;  %v4289_v57 = vunpack.i.h.bf16 %v4287_v9  ;;  %v8220_v25 = vld [vmem:[#allocation19_spill] sm:$0xff]  ;;  %v8221_v20 = vld [vmem:[#allocation26_spill] sm:$0xff] }
 0x2b2   : > { %v5635_v43 = vunpack.i.l.bf16 %v4287_v9  ;;  %v900_v32 = vsel %vm484_vm11, %v8215_v10, %v8219_v41  ;;  %v414_v62 = vsel %vm8020_vm6, %v8221_v20, %v8220_v25  ;;  %v8222_v17 = vunpack.i.h.bf16 %v5322_v47  ;;  %v5650_v9 = vpop.permute.xlu2 %4301  ;;  %v8229_v41 = vld [vmem:[#allocation21_spill] sm:$0xff] }
 0x2b3   : > { %8217 = vst [vmem:[#allocation64_spill] sm:$0xff] %v5633_v51  ;;  %v1879_v53 = vpack.c.bf16 %v1774_v45, %v1769_v24  ;;  %v1880_v2 = vpack.c.bf16 %v1775_v44, %v1770_v6  ;;  %v5654_v59 = vsel %vm484_vm11, %v5623_v3, %v4279_v52  ;;  %v1881_v10 = vpack.c.bf16 %v1776_v1, %v1771_v11  ;;  %v8226_v24 = vld [vmem:[#allocation16_spill] sm:$0xff] }
 0x2b4   : > { %8218 = vst [vmem:[#allocation71_spill] sm:$0xff] %v5635_v43  ;;  %v5648_v46 = vsel %vm484_vm11, %v5615_v61, %v8222_v17  ;;  %v412_v6 = vsel %vm8020_vm6, %v8226_v24, %v8225_v63  ;;  %v413_v45 = vsel %vm8020_vm6, %v8225_v63, %v8221_v20  ;;  %v1056_v44 = vunpack.c.l.bf16 %v899_v56  ;;  %v8230_v1 = vld [vmem:[#allocation28_spill] sm:$0xff] }
 0x2b5   : > { %8223 = vst [vmem:[#allocation26_spill] sm:$0xff] %v5648_v46  ;;  %v8227_v25 = vunpack.i.l.bf16 %v5551_v15  ;;  %v427_v11 = vsel %vm426_vm8, %v8230_v1, %v8229_v41  ;;  %v1062_v49 = vunpack.c.h.bf16 %v900_v32  ;;  %v8231_v24 = vunpack.i.h.bf16 %v5247_v23 }
 0x2b6   : > { %8224 = vst [vmem:[#allocation120_spill] sm:$0xff] %v5654_v59  ;;  %2051 = vrot.lane.b32.xlu2 %v1879_v53, %s4333_s14  ;;  %v5680_v20 = vsel %vm484_vm11, %v5635_v43, %v4289_v57  ;;  %v1750_v53 = vmul.f32 %v5648_v46, %v966_v29  ;;  %v1840_v1 = vmul.f32 %v5654_v59, %v1056_v44  ;;  %v1057_v15 = vunpack.c.l.bf16 %v900_v32 }
 0x2b7   : > { %v5665_v17 = vsel %vm484_vm11, %v4289_v57, %v8227_v25  ;;  %2053 = vrot.lane.b32.xlu0 %v1880_v2, %s4333_s14  ;;  %v5676_v63 = vsel %vm484_vm11, %v5633_v51, %v8231_v24  ;;  %8233 = vst [vmem:[#allocation21_spill] sm:$0xff] %v5680_v20  ;;  %2055 = vrot.lane.b32.xlu1 %v1881_v10, %s4333_s14  ;;  %v1061_v25 = vunpack.c.h.bf16 %v899_v56  ;;  %v8234_v2 = vunpack.i.l.bf16 %v5515_v58 }
 0x2b8   : > { %8228 = vst [vmem:[#allocation27_spill] sm:$0xff] %v5665_v17  ;;  %v4129_v24 = vunpack.i.h.bf16 %v5375_v8  ;;  %v5692_v51 = vunpack.i.l.bf16 %v5375_v8  ;;  %v1846_v57 = vmul.f32 %v5665_v17, %v1062_v49  ;;  %v603_v10 = vsel %vm520_vm2, %v412_v6, %v427_v11  ;;  %v8239_v49 = vld [vmem:[#allocation41_spill] sm:$0xff] }
 0x2b9   : > { %8232 = vst [vmem:[#allocation16_spill] sm:$0xff] %v5676_v63  ;;  %v5687_v41 = vsel %vm484_vm11, %v4279_v52, %v8234_v2  ;;  %v1755_v56 = vmul.f32 %v5676_v63, %v971_v31  ;;  %v1845_v46 = vmul.f32 %v5680_v20, %v1061_v25  ;;  %v8237_v52 = vld [vmem:[#allocation50_spill] sm:$0xff]  ;;  %v4119_v32 = vunpack.i.h.bf16 %v5365_v16  ;;  %v8240_v31 = vld [vmem:[#allocation51_spill] sm:$0xff] }
 0x2ba   : > { %8235 = vst [vmem:[#allocation28_spill] sm:$0xff] %v5687_v41  ;;  %v607_v2 = vsel %vm520_vm2, %v413_v45, %v8237_v52  ;;  %v5703_v44 = vunpack.i.l.bf16 %v5365_v16  ;;  %v1841_v8 = vmul.f32 %v5687_v41, %v1057_v15  ;;  %v5709_v6 = vsel %vm520_vm2, %v8239_v49, %v5539_v22 }
 0x2bb   : > { %8236 = vst [vmem:[#allocation121_spill] sm:$0xff] %v5692_v51  ;;  %v611_v11 = vsel %vm520_vm2, %v414_v62, %v8240_v31  ;;  %v1870_v29 = vpack.c.bf16 %v1755_v56, %v1750_v53  ;;  %v1915_v25 = vpack.c.bf16 %v1845_v46, %v1840_v1  ;;  %v975_v17 = vunpack.c.l.bf16 %v603_v10  ;;  %v8244_v53 = vld [vmem:[#allocation68_spill] sm:$0xff]  ;;  %v8245_v1 = vld [vmem:[#allocation69_spill] sm:$0xff]  ;;  %v5732_v56 = vpop.permute.xlu2 %2005 }
 0x2bc   : > { %8238 = vst [vmem:[#allocation50_spill] sm:$0xff] %v5703_v44  ;;  %v980_v20 = vunpack.c.h.bf16 %v603_v10  ;;  %v5715_v45 = vsel %vm484_vm11, %v5692_v51, %v4129_v24  ;;  %v1916_v16 = vpack.c.bf16 %v1846_v57, %v1841_v8  ;;  %v976_v52 = vunpack.c.l.bf16 %v607_v2 }
 0x2bd   : > { %8241 = vst [vmem:[#allocation41_spill] sm:$0xff] %v5715_v45  ;;  %v981_v59 = vunpack.c.h.bf16 %v607_v2  ;;  %v7946_v15 = vunpack.i.l.bf16 %v5307_v4  ;;  %v8242_v41 = vunpack.i.l.bf16 %v5373_v55  ;;  %v977_v46 = vunpack.c.l.bf16 %v611_v11 }
 0x2be   : > { %2033 = vrot.lane.b32.xlu2 %v1870_v29, %s4333_s14  ;;  %v982_v62 = vunpack.c.h.bf16 %v611_v11  ;;  %v896_v10 = vsel %vm484_vm11, %v8245_v1, %v8244_v53  ;;  %v5730_v57 = vsel %vm484_vm11, %v5703_v44, %v4119_v32  ;;  %8247 = vst [vmem:[#allocation69_spill] sm:$0xff] %v5732_v56  ;;  %v1764_v29 = vmul.f32 %v5692_v51, %v980_v20 }
 0x2bf   : > { %v5721_v22 = vsel %vm484_vm11, %v4129_v24, %v8242_v41  ;;  %2123 = vrot.lane.b32.xlu0 %v1915_v25, %s4333_s14  ;;  %8246 = vst [vmem:[#allocation68_spill] sm:$0xff] %v5730_v57  ;;  %2125 = vrot.lane.b32.xlu1 %v1916_v16, %s4333_s14  ;;  %v5739_v24 = vsel %vm484_vm11, %v4119_v32, %v7946_v15  ;;  %v5744_v8 = vunpack.i.l.bf16 %v5278_v18  ;;  %v4269_v31 = vunpack.i.h.bf16 %v5509_v42  ;;  %v8251_v25 = vld [vmem:[#allocation76_spill] sm:$0xff] }
 0x2c0   : > { %8243 = vst [vmem:[#allocation51_spill] sm:$0xff] %v5721_v22  ;;  %v1765_v2 = vmul.f32 %v5715_v45, %v981_v59  ;;  %v1766_v49 = vmul.f32 %v5721_v22, %v982_v62  ;;  %v5749_v11 = vunpack.i.l.bf16 %v5509_v42  ;;  %v1759_v41 = vmul.f32 %v5703_v44, %v975_v17  ;;  %v8254_v42 = vld [vmem:[#allocation61_spill] sm:$0xff] }
 0x2c1   : > { %8248 = vst [vmem:[#allocation122_spill] sm:$0xff] %v5739_v24  ;;  %v1760_v32 = vmul.f32 %v5730_v57, %v976_v52  ;;  %v5756_v59 = vunpack.i.l.bf16 %v8251_v25  ;;  %v1761_v15 = vmul.f32 %v5739_v24, %v977_v46  ;;  %v4259_v62 = vunpack.i.h.bf16 %v5513_v35 }
 0x2c2   : > { %8249 = vst [vmem:[#allocation123_spill] sm:$0xff] %v5744_v8  ;;  %v5761_v63 = vunpack.i.l.bf16 %v5513_v35  ;;  %v897_v16 = vsel %vm484_vm11, %v8244_v53, %v8254_v42  ;;  %v7952_v17 = vunpack.i.l.bf16 %v5519_v30  ;;  %v1874_v22 = vpack.c.bf16 %v1764_v29, %v1759_v41 }
 0x2c3   : > { %8250 = vst [vmem:[#allocation124_spill] sm:$0xff] %v5749_v11  ;;  %v1875_v52 = vpack.c.bf16 %v1765_v2, %v1760_v32  ;;  %v956_v20 = vunpack.c.l.bf16 %v5709_v6  ;;  %v8255_v45 = vunpack.i.h.bf16 %v5278_v18  ;;  %v5776_v35 = vsel %vm484_vm11, %v5749_v11, %v4269_v31  ;;  %v5810_v44 = vpop.permute.xlu2 %2011 }
 0x2c4   : > { %8252 = vst [vmem:[#allocation76_spill] sm:$0xff] %v5756_v59  ;;  %v1876_v24 = vpack.c.bf16 %v1766_v49, %v1761_v15  ;;  %v961_v57 = vunpack.c.h.bf16 %v5709_v6  ;;  %v1051_v53 = vunpack.c.h.bf16 %v896_v10  ;;  %v5782_v41 = vsel %vm484_vm11, %v4269_v31, %v7952_v17  ;;  %v8264_v31 = vld [vmem:[#allocation25_spill] sm:$0xff] }
 0x2c5   : > { %8253 = vst [vmem:[#allocation125_spill] sm:$0xff] %v5761_v63  ;;  %v5772_v46 = vsel %vm484_vm11, %v5744_v8, %v8255_v45  ;;  %v8259_v29 = vunpack.i.l.bf16 %v5511_v34  ;;  %v1047_v45 = vunpack.c.l.bf16 %v897_v16  ;;  %v1052_v32 = vunpack.c.h.bf16 %v897_v16 }
 0x2c6   : > { %8256 = vst [vmem:[#allocation61_spill] sm:$0xff] %v5772_v46  ;;  %2041 = vrot.lane.b32.xlu2 %v1874_v22, %s4333_s14  ;;  %v8261_v15 = vunpack.i.h.bf16 %v8251_v25  ;;  %v5799_v49 = vsel %vm484_vm11, %v5761_v63, %v4259_v62  ;;  %v399_v22 = vsel %vm8019_vm12, %v4579_v39, %v8264_v31  ;;  %v1835_v16 = vmul.f32 %v5776_v35, %v1051_v53  ;;  %v5819_v53 = vpop.permute.xlu0 %2001 }
 0x2c7   : > { %8257 = vst [vmem:[#allocation126_spill] sm:$0xff] %v5776_v35  ;;  %v5787_v2 = vsel %vm484_vm11, %v4259_v62, %v8259_v29  ;;  %2043 = vrot.lane.b32.xlu0 %v1875_v52, %s4333_s14  ;;  %2045 = vrot.lane.b32.xlu1 %v1876_v24, %s4333_s14  ;;  %v1046_v29 = vunpack.c.l.bf16 %v896_v10  ;;  %v1745_v52 = vmul.f32 %v5772_v46, %v961_v57  ;;  %v8265_v62 = vld [vmem:[#allocation18_spill] sm:$0xff]  ;;  %v7959_v57 = vunpack.i.l.bf16 %v5320_v27 }
 0x2c8   : > { %8258 = vst [vmem:[#allocation127_spill] sm:$0xff] %v5782_v41  ;;  %v5795_v6 = vsel %vm484_vm11, %v5756_v59, %v8261_v15  ;;  %v1836_v15 = vmul.f32 %v5782_v41, %v1052_v32  ;;  %v1831_v51 = vmul.f32 %v5787_v2, %v1047_v45  ;;  %v384_v24 = vsel %vm8018_vm5, %v8195_v12, %v8265_v62  ;;  %v5828_v12 = vpop.permute.xlu1 %2003 }
 0x2c9   : > { %8260 = vst [vmem:[#allocation128_spill] sm:$0xff] %v5787_v2  ;;  %v1740_v56 = vmul.f32 %v5795_v6, %v956_v20  ;;  %v1830_v39 = vmul.f32 %v5799_v49, %v1046_v29  ;;  %v591_v10 = vsel %vm520_vm2, %v384_v24, %v399_v22  ;;  %v8266_v45 = vunpack.i.l.bf16 %v5367_v54 }
 0x2ca   : > { %8262 = vst [vmem:[#allocation129_spill] sm:$0xff] %v5795_v6  ;;  %v8267_v35 = vunpack.i.h.bf16 %v5247_v23  ;;  %v1911_v20 = vpack.c.bf16 %v1836_v15, %v1831_v51  ;;  %v972_v2 = vunpack.c.h.bf16 %v591_v10  ;;  %v1050_v29 = vunpack.c.h.bf16 %v8245_v1  ;;  %v8273_v15 = vld [vmem:[#allocation38_spill] sm:$0xff] }
 0x2cb   : > { %8263 = vst [vmem:[#allocation130_spill] sm:$0xff] %v5799_v49  ;;  %v1865_v17 = vpack.c.bf16 %v1745_v52, %v1740_v56  ;;  %v1910_v32 = vpack.c.bf16 %v1835_v16, %v1830_v39  ;;  %v967_v22 = vunpack.c.l.bf16 %v591_v10  ;;  %v8269_v56 = vld [vmem:[#allocation45_spill] sm:$0xff]  ;;  %v8270_v52 = vld [vmem:[#allocation46_spill] sm:$0xff]  ;;  %v1055_v23 = vunpack.c.l.bf16 %v8216_v19  ;;  %v8277_v49 = vld [vmem:[#allocation56_spill] sm:$0xff] }
 0x2cc   : > { %v5826_v41 = vsel %vm484_vm11, %v8267_v35, %v8266_v45  ;;  %v519_v16 = vsel %vm515_vm14, %v8270_v52, %v8269_v56  ;;  %v8271_v35 = vunpack.i.h.bf16 %v5322_v47  ;;  %v1045_v39 = vunpack.c.l.bf16 %v8245_v1 }
 0x2cd   : > { %8268 = vst [vmem:[#allocation25_spill] sm:$0xff] %v5826_v41  ;;  %v1756_v10 = vmul.f32 %v5826_v41, %v972_v2  ;;  %v1060_v45 = vunpack.c.h.bf16 %v8216_v19  ;;  %v4249_v56 = vunpack.i.h.bf16 %v5506_v13  ;;  %v5854_v47 = vunpack.i.l.bf16 %v5506_v13 }
 0x2ce   : > { %2023 = vrot.lane.b32.xlu2 %v1865_v17, %s4333_s14  ;;  %v5842_v51 = vsel %vm484_vm11, %v8271_v35, %v7959_v57  ;;  %v8274_v17 = vld [vmem:[#allocation44_spill] sm:$0xff]  ;;  %v1839_v35 = vmul.f32 %v5623_v3, %v1055_v23  ;;  %v1829_v1 = vmul.f32 %v5761_v63, %v1045_v39  ;;  %v4239_v13 = vunpack.i.h.bf16 %v5495_v14  ;;  %v8279_v3 = vld [vmem:[#allocation66_spill] sm:$0xff]  ;;  %v5890_v46 = vpop.permute.xlu0 %2007 }
 0x2cf   : > { %2113 = vrot.lane.b32.xlu0 %v1910_v32, %s4333_s14  ;;  %8272 = vst [vmem:[#allocation18_spill] sm:$0xff] %v5842_v51  ;;  %2115 = vrot.lane.b32.xlu1 %v1911_v20, %s4333_s14  ;;  %v504_v24 = vsel %vm8022_vm15, %v8274_v17, %v8273_v15  ;;  %v1834_v32 = vmul.f32 %v5749_v11, %v1050_v29  ;;  %v8276_v29 = vld [vmem:[#allocation67_spill] sm:$0xff]  ;;  %v5869_v23 = vunpack.i.l.bf16 %v5495_v14  ;;  %v5882_v41 = vunpack.i.h.bf16 %v5402_v60 }
 0x2d0   : > { %8275 = vst [vmem:[#allocation45_spill] sm:$0xff] %v5854_v47  ;;  %v679_v57 = vsel %vm520_vm2, %v504_v24, %v519_v16  ;;  %v1751_v15 = vmul.f32 %v5842_v51, %v967_v22  ;;  %v893_v19 = vsel %vm484_vm11, %v8277_v49, %v8276_v29  ;;  %v1844_v11 = vmul.f32 %v5635_v43, %v1060_v45 }
 0x2d1   : > { %v5857_v20 = vpop.permute.xlu2 %2073  ;;  %8278 = vst [vmem:[#allocation46_spill] sm:$0xff] %v5869_v23  ;;  %v894_v16 = vsel %vm484_vm11, %v8276_v29, %v8279_v3  ;;  %v5875_v22 = vunpack.i.h.bf16 %v5424_v5  ;;  %v1909_v24 = vpack.c.bf16 %v1834_v32, %v1829_v1  ;;  %v1014_v2 = vunpack.c.h.bf16 %v679_v57  ;;  %v5901_v1 = vpop.permute.xlu1 %2009 }
 0x2d2   : > { %v1871_v39 = vpack.c.bf16 %v1756_v10, %v1751_v15  ;;  %v5879_v63 = vsel %vm484_vm11, %v5854_v47, %v4249_v56  ;;  %v1914_v45 = vpack.c.bf16 %v1844_v11, %v1839_v35  ;;  %v1041_v43 = vunpack.c.h.bf16 %v893_v19  ;;  %8282 = vst [vmem:[#allocation67_spill] sm:$0xff] %v5882_v41  ;;  %v8286_v10 = vld [vmem:[#allocation7_spill] sm:$0xff] }
 0x2d3   : > { %8280 = vst [vmem:[#allocation38_spill] sm:$0xff] %v5875_v22  ;;  %v7970_v14 = vunpack.i.l.bf16 %v5502_v37  ;;  %v8283_v51 = vunpack.i.l.bf16 %v5504_v21  ;;  %v369_v11 = vsel %vm8017_vm3, %v8197_v33, %v8286_v10  ;;  %v1009_v32 = vunpack.c.l.bf16 %v679_v57 }
 0x2d4   : > { %8281 = vst [vmem:[#allocation44_spill] sm:$0xff] %v5879_v63  ;;  %v1042_v35 = vunpack.c.h.bf16 %v894_v16  ;;  %v5899_v15 = vsel %vm484_vm11, %v5869_v23, %v4239_v13  ;;  %v1825_v33 = vmul.f32 %v5879_v63, %v1041_v43  ;;  %v518_v57 = vsel %vm515_vm14, %v4781_v28, %v8270_v52 }
 0x2d5   : > { %v5888_v29 = vsel %vm484_vm11, %v4249_v56, %v8283_v51  ;;  %8285 = vst [vmem:[#allocation66_spill] sm:$0xff] %v5890_v46  ;;  %v1036_v51 = vunpack.c.l.bf16 %v893_v19  ;;  %v1798_v56 = vmul.f32 %v5875_v22, %v1014_v2  ;;  %v1793_v2 = vmul.f32 %v5882_v41, %v1009_v32  ;;  %v8290_v46 = vld [vmem:[#allocation39_spill] sm:$0xff] }
 0x2d6   : > { %8284 = vst [vmem:[#allocation56_spill] sm:$0xff] %v5888_v29  ;;  %2111 = vrot.lane.b32.xlu2 %v1909_v24, %s4333_s14  ;;  %v5908_v24 = vsel %vm484_vm11, %v4239_v13, %v7970_v14  ;;  %v571_v13 = vsel %vm520_vm2, %v8290_v46, %v369_v11  ;;  %v503_v43 = vsel %vm8022_vm15, %v4789_v50, %v8274_v17  ;;  %v8291_v14 = vld [vmem:[#allocation77_spill] sm:$0xff]  ;;  %v8295_v50 = vunpack.i.l.bf16 %v5280_v7 }
 0x2d7   : > { %2035 = vrot.lane.b32.xlu0 %v1871_v39, %s4333_s14  ;;  %8287 = vst [vmem:[#allocation7_spill] sm:$0xff] %v5899_v15  ;;  %2121 = vrot.lane.b32.xlu1 %v1914_v45, %s4333_s14  ;;  %v1037_v39 = vunpack.c.l.bf16 %v894_v16  ;;  %v1820_v19 = vmul.f32 %v5899_v15, %v1036_v51  ;;  %v7972_v28 = vunpack.i.l.bf16 %v8291_v14  ;;  %v675_v16 = vsel %vm520_vm2, %v503_v43, %v518_v57 }
 0x2d8   : > { %8288 = vst [vmem:[#allocation131_spill] sm:$0xff] %v5901_v1  ;;  %v1826_v1 = vmul.f32 %v5888_v29, %v1042_v35  ;;  %v5929_v35 = vunpack.i.h.bf16 %v5650_v9  ;;  %v1893_v6 = vpack.c.bf16 %v1798_v56, %v1793_v2  ;;  %v8293_v51 = vunpack.i.h.bf16 %v5278_v18  ;;  %v8298_v29 = vld [vmem:[#allocation70_spill] sm:$0xff] }
 0x2d9   : > { %8289 = vst [vmem:[#allocation132_spill] sm:$0xff] %v5908_v24  ;;  %v5916_v45 = vpop.permute.xlu2 %2065  ;;  %v1821_v52 = vmul.f32 %v5908_v24, %v1037_v39  ;;  %v1905_v32 = vpack.c.bf16 %v1825_v33, %v1820_v19  ;;  %v8296_v17 = vunpack.i.h.bf16 %v8251_v25  ;;  %v957_v39 = vunpack.c.l.bf16 %v571_v13  ;;  %v8301_v25 = vld [vmem:[#allocation5_spill] sm:$0xff] }
 0x2da   : > { %8292 = vst [vmem:[#allocation39_spill] sm:$0xff] %v5929_v35  ;;  %v5936_v46 = vsel %vm484_vm11, %v8293_v51, %v7972_v28  ;;  %v962_v43 = vunpack.c.h.bf16 %v571_v13  ;;  %v1069_v56 = vunpack.c.l.bf16 %v8298_v29  ;;  %v8299_v33 = vunpack.i.l.bf16 %v5424_v5  ;;  %v5969_v51 = vpop.permute.xlu0 %2013  ;;  %v8308_v28 = vld [vmem:[#allocation54_spill] sm:$0xff] }
 0x2db   : > { %8294 = vst [vmem:[#allocation77_spill] sm:$0xff] %v5936_v46  ;;  %v5943_v11 = vsel %vm484_vm11, %v8296_v17, %v8295_v50  ;;  %v1906_v57 = vpack.c.bf16 %v1826_v1, %v1821_v52  ;;  %v367_v2 = vsel %vm8017_vm3, %v8301_v25, %v8198_v26  ;;  %v8302_v1 = vld [vmem:[#allocation22_spill] sm:$0xff]  ;;  %v1013_v13 = vunpack.c.h.bf16 %v675_v16  ;;  %v5973_v17 = vpop.permute.xlu1 %2015  ;;  %v8307_v25 = vld [vmem:[#allocation15_spill] sm:$0xff] }
 0x2dc   : > { %8297 = vst [vmem:[#allocation133_spill] sm:$0xff] %v5943_v11  ;;  %v5950_v18 = vsel %vm484_vm11, %v8299_v33, %v5875_v22  ;;  %v397_v19 = vsel %vm8019_vm12, %v8302_v1, %v4615_v48  ;;  %v1746_v5 = vmul.f32 %v5936_v46, %v962_v43  ;;  %v1741_v52 = vmul.f32 %v5943_v11, %v957_v39  ;;  %v8305_v33 = vld [vmem:[#allocation8_spill] sm:$0xff]  ;;  %v8306_v43 = vld [vmem:[#allocation10_spill] sm:$0xff]  ;;  %v8320_v11 = vld [vmem:[#allocation113_spill] sm:$0xff] }
 0x2dd   : > { %8300 = vst [vmem:[#allocation70_spill] sm:$0xff] %v5950_v18  ;;  %v1853_v26 = vmul.f32 %v5929_v35, %v1069_v56  ;;  %v1008_v50 = vunpack.c.l.bf16 %v675_v16  ;;  %v1797_v48 = vmul.f32 %v5950_v18, %v1013_v13  ;;  %v352_v39 = vsel %vm351_vm0, %v8306_v43, %v8305_v33  ;;  %v8309_v33 = vld [vmem:[#allocation57_spill] sm:$0xff]  ;;  %v8321_v22 = vld [vmem:[#allocation116_spill] sm:$0xff] }
 0x2de   : > { %2079 = vrot.lane.b32.xlu2 %v1893_v6, %s4333_s14  ;;  %v8303_v6 = vunpack.i.l.bf16 %v5402_v60  ;;  %v382_v60 = vsel %vm8018_vm5, %v8307_v25, %v8196_v0  ;;  %v904_v56 = vsel %vm484_vm11, %v5166_v38, %v8298_v29  ;;  %v888_v43 = vsel %vm484_vm11, %v8309_v33, %v8308_v28 }
 0x2df   : > { %2103 = vrot.lane.b32.xlu0 %v1905_v32, %s4333_s14  ;;  %2105 = vrot.lane.b32.xlu1 %v1906_v57, %s4333_s14  ;;  %v583_v16 = vsel %vm520_vm2, %v382_v60, %v397_v19  ;;  %v1923_v24 = vpack.c.bf16 %v1853_v26, %v1853_v26  ;;  %v1866_v0 = vpack.c.bf16 %v1746_v5, %v1741_v52  ;;  %v1068_v60 = vunpack.c.l.bf16 %v904_v56  ;;  %v8313_v26 = vld [vmem:[#allocation60_spill] sm:$0xff] }
 0x2e0   : > { %v5967_v32 = vsel %vm484_vm11, %v8303_v6, %v5882_v41  ;;  %v563_v6 = vsel %vm520_vm2, %v352_v39, %v367_v2  ;;  %v965_v25 = vunpack.c.l.bf16 %v583_v16  ;;  %v970_v29 = vunpack.c.h.bf16 %v583_v16  ;;  %v8315_v16 = vld [vmem:[#allocation115_spill] sm:$0xff] }
 0x2e1   : > { %8304 = vst [vmem:[#allocation5_spill] sm:$0xff] %v5967_v32  ;;  %v2072_v57 = vpop.permute.xlu2 %2071  ;;  %v1792_v13 = vmul.f32 %v5967_v32, %v1008_v50  ;;  %v960_v39 = vunpack.c.h.bf16 %v563_v6  ;;  %v955_v38 = vunpack.c.l.bf16 %v563_v6  ;;  %v1017_v50 = vunpack.c.l.bf16 %v888_v43  ;;  %v8319_v6 = vld [vmem:[#allocation104_spill] sm:$0xff] }
 0x2e2   : > { %v2169_v1 = vsel %vm697_vm4, %v2072_v57, %v5857_v20  ;;  %v8310_v57 = vunpack.i.h.bf16 %v5549_v40  ;;  %v1749_v52 = vmul.f32 %v5615_v61, %v965_v25  ;;  %v8317_v25 = vld [vmem:[#allocation64_spill] sm:$0xff]  ;;  %v4229_v41 = vunpack.i.h.bf16 %v8321_v22 }
 0x2e3   : > { %2265 = vmatpush.bf16.msra.mxu0 %v2169_v1  ;;  %v1892_v19 = vpack.c.bf16 %v1797_v48, %v1792_v13  ;;  %v8312_v1 = vld [vmem:[#allocation55_spill] sm:$0xff]  ;;  %v1744_v40 = vmul.f32 %v5744_v8, %v960_v39  ;;  %v2064_v63 = vpop.permute.xlu1 %2063  ;;  %v1739_v39 = vmul.f32 %v5756_v59, %v955_v38  ;;  %v1754_v48 = vmul.f32 %v8317_v25, %v970_v29  ;;  %v8324_v29 = vld [vmem:[#allocation114_spill] sm:$0xff]  ;;  %v8339_v25 = vld [vmem:[#allocation52_spill] sm:$0xff] }
 0x2e4   : > { %v5996_v2 = vsel %vm484_vm11, %v8310_v57, %v5929_v35  ;;  %v890_v5 = vsel %vm484_vm11, %v8313_v26, %v8312_v1  ;;  %v8314_v13 = vld [vmem:[#allocation111_spill] sm:$0xff]  ;;  %v6013_v57 = vunpack.i.l.bf16 %v8315_v16  ;;  %v8318_v35 = vld [vmem:[#allocation117_spill] sm:$0xff]  ;;  %v6026_v8 = vunpack.i.l.bf16 %v8321_v22 }
 0x2e5   : > { %8311 = vst [vmem:[#allocation22_spill] sm:$0xff] %v5996_v2  ;;  %v1864_v46 = vpack.c.bf16 %v1744_v40, %v1739_v39  ;;  %v8328_v22 = vunpack.i.h.bf16 %v8319_v6  ;;  %v1869_v40 = vpack.c.bf16 %v1754_v48, %v1749_v52  ;;  %v1026_v39 = vunpack.c.l.bf16 %v890_v5  ;;  %v8336_v52 = vld [vmem:[#allocation102_spill] sm:$0xff] }
 0x2e6   : > { %2139 = vrot.lane.b32.xlu2 %v1923_v24, %s4333_s14  ;;  %v1852_v24 = vmul.f32 %v5996_v2, %v1068_v60  ;;  %8316 = vst [vmem:[#allocation8_spill] sm:$0xff] %v6013_v57  ;;  %v8327_v2 = vunpack.i.l.bf16 %v8314_v13  ;;  %v8331_v59 = vunpack.i.l.bf16 %v8318_v35  ;;  %v6073_v48 = vunpack.i.h.bf16 %v8336_v52 }
 0x2e7   : > { %2025 = vrot.lane.b32.xlu0 %v1866_v0, %s4333_s14  ;;  %2077 = vrot.lane.b32.xlu1 %v1892_v19, %s4333_s14  ;;  %v4219_v0 = vunpack.i.h.bf16 %v8315_v16  ;;  %v7986_v16 = vunpack.i.l.bf16 %v8320_v11  ;;  %8322 = vst [vmem:[#allocation10_spill] sm:$0xff] %v6026_v8 }
 0x2e8   : > { %v1922_v18 = vpack.c.bf16 %v1852_v24, %v1852_v24  ;;  %v1022_v24 = vunpack.c.h.bf16 %v888_v43  ;;  %v6053_v32 = vsel %vm484_vm11, %v4229_v41, %v8331_v59  ;;  %8337 = vst [vmem:[#allocation115_spill] sm:$0xff] %v6073_v48 }
 0x2e9   : > { %v6007_v56 = vpop.permute.xlu0 %2075  ;;  %v2062_v15 = vpop.permute.xlu2 %2061  ;;  %8332 = vst [vmem:[#allocation55_spill] sm:$0xff] %v6053_v32 }
 0x2ea   : > { %v2170_v19 = vsel %vm697_vm4, %v5857_v20, %v6007_v56  ;;  %v2165_v60 = vsel %vm697_vm4, %v2062_v15, %v2064_v63  ;;  %v8323_v20 = vld [vmem:[#allocation65_spill] sm:$0xff]  ;;  %v8325_v15 = vunpack.i.h.bf16 %v5463_v36 }
 0x2eb   : > { %2291 = vmatpush.bf16.msra.mxu2 %v2170_v19  ;;  %2266 = vmatpush.bf16.msra.mxu0 %v2165_v60  ;;  %v891_v38 = vsel %vm484_vm11, %v8312_v1, %v8323_v20  ;;  %v6044_v60 = vsel %vm484_vm11, %v8328_v22, %v8327_v2  ;;  %v6048_v1 = vsel %vm484_vm11, %v6013_v57, %v4219_v0 }
 0x2ec   : > { %v6037_v19 = vsel %vm484_vm11, %v8325_v15, %v7986_v16  ;;  %8329 = vst [vmem:[#allocation54_spill] sm:$0xff] %v6044_v60  ;;  %v2166_v2 = vsel %vm697_vm4, %v2064_v63, %v5916_v45  ;;  %v1031_v15 = vunpack.c.h.bf16 %v890_v5  ;;  %v1032_v22 = vunpack.c.h.bf16 %v891_v38 }
 0x2ed   : > { %8326 = vst [vmem:[#allocation15_spill] sm:$0xff] %v6037_v19  ;;  %v6061_v16 = vsel %vm484_vm11, %v6026_v8, %v4229_v41  ;;  %v1806_v43 = vmul.f32 %v6037_v19, %v1022_v24  ;;  %v1801_v59 = vmul.f32 %v6044_v60, %v1017_v50  ;;  %v1810_v63 = vmul.f32 %v6048_v1, %v1026_v39  ;;  %v8340_v50 = vld [vmem:[#allocation98_spill] sm:$0xff] }
 0x2ee   : > { %8330 = vst [vmem:[#allocation57_spill] sm:$0xff] %v6048_v1  ;;  %2021 = vrot.lane.b32.xlu2 %v1864_v46, %s4333_s14  ;;  %v8334_v46 = vunpack.i.l.bf16 %v8324_v29  ;;  %v1027_v5 = vunpack.c.l.bf16 %v891_v38  ;;  %v1816_v41 = vmul.f32 %v6053_v32, %v1032_v22  ;;  %v6081_v19 = vunpack.i.h.bf16 %v8340_v50 }
 0x2ef   : > { %2137 = vrot.lane.b32.xlu0 %v1922_v18, %s4333_s14  ;;  %8333 = vst [vmem:[#allocation60_spill] sm:$0xff] %v6061_v16  ;;  %2031 = vrot.lane.b32.xlu1 %v1869_v40, %s4333_s14  ;;  %v1815_v40 = vmul.f32 %v6061_v16, %v1031_v15  ;;  %v8342_v38 = vunpack.i.l.bf16 %v8336_v52  ;;  %v1025_v15 = vunpack.c.l.bf16 %v8313_v26 }
 0x2f0   : > { %2292 = vmatpush.bf16.msra.mxu2 %v2166_v2  ;;  %v6069_v18 = vsel %vm484_vm11, %v4219_v0, %v8334_v46  ;;  %v8338_v2 = vld [vmem:[#allocation53_spill] sm:$0xff]  ;;  %8341 = vst [vmem:[#allocation117_spill] sm:$0xff] %v6081_v19  ;;  %v1896_v46 = vpack.c.bf16 %v1806_v43, %v1801_v59  ;;  %v8344_v43 = vunpack.i.l.bf16 %v8340_v50 }
 0x2f1   : > { %8335 = vst [vmem:[#allocation111_spill] sm:$0xff] %v6069_v18  ;;  %v655_v24 = vsel %vm520_vm2, %v8339_v25, %v8338_v2  ;;  %v1811_v0 = vmul.f32 %v6069_v18, %v1027_v5  ;;  %v1900_v60 = vpack.c.bf16 %v1815_v40, %v1810_v63  ;;  %v6088_v39 = vsel %vm484_vm11, %v8342_v38, %v6073_v48  ;;  %v8350_v38 = vld [vmem:[#allocation72_spill] sm:$0xff] }
 0x2f2   : > { %8343 = vst [vmem:[#allocation104_spill] sm:$0xff] %v6088_v39  ;;  %v1003_v32 = vunpack.c.h.bf16 %v655_v24  ;;  %v1040_v25 = vunpack.c.h.bf16 %v8277_v49  ;;  %v6098_v59 = vsel %vm484_vm11, %v8344_v43, %v6081_v19  ;;  %v998_v63 = vunpack.c.l.bf16 %v655_v24  ;;  %v8348_v24 = vld [vmem:[#allocation43_spill] sm:$0xff] }
 0x2f3   : > { %v1901_v22 = vpack.c.bf16 %v1816_v41, %v1811_v0  ;;  %8345 = vst [vmem:[#allocation113_spill] sm:$0xff] %v6098_v59  ;;  %v1030_v5 = vunpack.c.h.bf16 %v8313_v26  ;;  %v1809_v41 = vmul.f32 %v6013_v57, %v1025_v15  ;;  %v1035_v40 = vunpack.c.l.bf16 %v8277_v49  ;;  %v8349_v26 = vld [vmem:[#allocation34_spill] sm:$0xff] }
 0x2f4   : > { %v1787_v52 = vmul.f32 %v6088_v39, %v1003_v32  ;;  %v6107_v2 = vunpack.i.h.bf16 %v5511_v34  ;;  %v1782_v50 = vmul.f32 %v6098_v59, %v998_v63  ;;  %v659_v32 = vsel %vm520_vm2, %v8349_v26, %v8348_v24 }
 0x2f5   : > { %v1814_v0 = vmul.f32 %v6026_v8, %v1030_v5  ;;  %v898_v49 = vsel %vm484_vm11, %v8254_v42, %v8350_v38  ;;  %v1819_v15 = vmul.f32 %v5869_v23, %v1035_v40  ;;  %v6128_v63 = vunpack.i.l.bf16 %v8319_v6 }
 0x2f6   : > { %2085 = vrot.lane.b32.xlu2 %v1896_v46, %s4333_s14  ;;  %8346 = vst [vmem:[#allocation116_spill] sm:$0xff] %v6107_v2  ;;  %v6112_v46 = vunpack.i.l.bf16 %v5463_v36  ;;  %v1887_v18 = vpack.c.bf16 %v1787_v52, %v1782_v50  ;;  %v8354_v24 = vunpack.i.l.bf16 %v5511_v34  ;;  %v1004_v8 = vunpack.c.h.bf16 %v659_v32 }
 0x2f7   : > { %2093 = vrot.lane.b32.xlu0 %v1900_v60, %s4333_s14  ;;  %2095 = vrot.lane.b32.xlu1 %v1901_v22, %s4333_s14  ;;  %v1824_v60 = vmul.f32 %v5854_v47, %v1040_v25  ;;  %v6121_v22 = vunpack.i.h.bf16 %v5519_v30  ;;  %v8352_v25 = vld [vmem:[#allocation59_spill] sm:$0xff]  ;;  %8353 = vst [vmem:[#allocation102_spill] sm:$0xff] %v6128_v63  ;;  %v1899_v5 = vpack.c.bf16 %v1814_v0, %v1809_v41  ;;  %v1048_v57 = vunpack.c.l.bf16 %v898_v49 }
 0x2f8   : > { %8347 = vst [vmem:[#allocation65_spill] sm:$0xff] %v6112_v46  ;;  %v887_v43 = vsel %vm484_vm11, %v8352_v25, %v8309_v33  ;;  %v6134_v26 = vsel %vm484_vm11, %v8354_v24, %v6107_v2  ;;  %v8356_v40 = vunpack.i.h.bf16 %v5463_v36  ;;  %v999_v33 = vunpack.c.l.bf16 %v659_v32  ;;  %v8362_v32 = vld [vmem:[#allocation37_spill] sm:$0xff] }
 0x2f9   : > { %8351 = vst [vmem:[#allocation114_spill] sm:$0xff] %v6121_v22  ;;  %v1904_v42 = vpack.c.bf16 %v1824_v60, %v1819_v15  ;;  %v1021_v52 = vunpack.c.h.bf16 %v887_v43  ;;  %v8358_v34 = vunpack.i.l.bf16 %v5519_v30  ;;  %v1053_v60 = vunpack.c.h.bf16 %v898_v49  ;;  %v8363_v15 = vld [vmem:[#allocation31_spill] sm:$0xff] }
 0x2fa   : > { %8355 = vst [vmem:[#allocation53_spill] sm:$0xff] %v6134_v26  ;;  %v6140_v16 = vsel %vm484_vm11, %v6112_v46, %v8356_v40  ;;  %v8360_v36 = vunpack.i.h.bf16 %v8319_v6  ;;  %v1788_v0 = vmul.f32 %v6073_v48, %v1004_v8  ;;  %v460_v30 = vsel %vm8021_vm1, %v8363_v15, %v8362_v32  ;;  %v8364_v40 = vld [vmem:[#allocation96_spill] sm:$0xff] }
 0x2fb   : > { %8357 = vst [vmem:[#allocation52_spill] sm:$0xff] %v6140_v16  ;;  %v6148_v41 = vsel %vm484_vm11, %v8358_v34, %v6121_v22  ;;  %v1805_v24 = vmul.f32 %v6140_v16, %v1021_v52  ;;  %v1783_v6 = vmul.f32 %v6081_v19, %v999_v33  ;;  %v8366_v34 = vld [vmem:[#allocation73_spill] sm:$0xff]  ;;  %v8370_v52 = vld [vmem:[#allocation47_spill] sm:$0xff]  ;;  %v8376_v23 = vunpack.i.l.bf16 %v8364_v40 }
 0x2fc   : > { %8359 = vst [vmem:[#allocation98_spill] sm:$0xff] %v6148_v41  ;;  %v6155_v50 = vsel %vm484_vm11, %v6128_v63, %v8360_v36  ;;  %v1837_v49 = vmul.f32 %v6148_v41, %v1053_v60  ;;  %v8367_v36 = vld [vmem:[#allocation74_spill] sm:$0xff]  ;;  %v635_v15 = vsel %vm520_vm2, %v8370_v52, %v460_v30  ;;  %v8371_v16 = vld [vmem:[#allocation95_spill] sm:$0xff]  ;;  %v6218_v52 = vunpack.i.h.bf16 %v5367_v54 }
 0x2fd   : > { %8361 = vst [vmem:[#allocation43_spill] sm:$0xff] %v6155_v50  ;;  %v901_v8 = vsel %vm484_vm11, %v8367_v36, %v8366_v34  ;;  %v6181_v1 = vunpack.i.h.bf16 %v8371_v16  ;;  %v1888_v60 = vpack.c.bf16 %v1788_v0, %v1783_v6  ;;  %v8373_v41 = vld [vmem:[#allocation35_spill] sm:$0xff] }
 0x2fe   : > { %2091 = vrot.lane.b32.xlu2 %v1899_v5, %s4333_s14  ;;  %v1016_v5 = vunpack.c.l.bf16 %v887_v43  ;;  %v6176_v43 = vunpack.i.h.bf16 %v5515_v58  ;;  %v8374_v47 = vunpack.i.l.bf16 %v8373_v41  ;;  %v8378_v0 = vld [vmem:[#allocation23_spill] sm:$0xff]  ;;  %8383 = vst [vmem:[#allocation47_spill] sm:$0xff] %v6218_v52 }
 0x2ff   : > { %2067 = vrot.lane.b32.xlu0 %v1887_v18, %s4333_s14  ;;  %2101 = vrot.lane.b32.xlu1 %v1904_v42, %s4333_s14  ;;  %v1832_v18 = vmul.f32 %v6134_v26, %v1048_v57  ;;  %v6164_v42 = vunpack.i.h.bf16 %v8364_v40  ;;  %v6173_v26 = vunpack.i.l.bf16 %v5650_v9  ;;  %8372 = vst [vmem:[#allocation37_spill] sm:$0xff] %v6181_v1  ;;  %v1049_v9 = vunpack.c.l.bf16 %v8350_v38 }
 0x300   : > { %v1800_v57 = vmul.f32 %v6155_v50, %v1016_v5  ;;  %8369 = vst [vmem:[#allocation59_spill] sm:$0xff] %v6176_v43  ;;  %v1063_v50 = vunpack.c.h.bf16 %v901_v8  ;;  %v400_v41 = vsel %vm8019_vm12, %v8264_v31, %v8378_v0  ;;  %v8381_v40 = vunpack.i.l.bf16 %v8371_v16 }
 0x301   : > { %8365 = vst [vmem:[#allocation34_spill] sm:$0xff] %v6164_v42  ;;  %v1912_v33 = vpack.c.bf16 %v1837_v49, %v1832_v18  ;;  %v6187_v36 = vsel %vm484_vm11, %v8374_v47, %v6173_v26  ;;  %v6194_v30 = vsel %vm484_vm11, %v8376_v23, %v6164_v42  ;;  %v988_v47 = vunpack.c.l.bf16 %v635_v15 }
 0x302   : > { %8368 = vst [vmem:[#allocation72_spill] sm:$0xff] %v6173_v26  ;;  %v1895_v5 = vpack.c.bf16 %v1805_v24, %v1800_v57  ;;  %v1054_v18 = vunpack.c.h.bf16 %v8350_v38  ;;  %v8379_v24 = vunpack.i.l.bf16 %v5515_v58  ;;  %v1058_v23 = vunpack.c.l.bf16 %v901_v8 }
 0x303   : > { %8375 = vst [vmem:[#allocation31_spill] sm:$0xff] %v6187_v36  ;;  %v6213_v49 = vsel %vm484_vm11, %v8381_v40, %v6181_v1  ;;  %v1833_v31 = vmul.f32 %v6107_v2, %v1049_v9  ;;  %v1847_v57 = vmul.f32 %v6187_v36, %v1063_v50  ;;  %v993_v38 = vunpack.c.h.bf16 %v635_v15  ;;  %v8386_v15 = vld [vmem:[#allocation33_spill] sm:$0xff] }
 0x304   : > { %8377 = vst [vmem:[#allocation96_spill] sm:$0xff] %v6194_v30  ;;  %v6206_v6 = vsel %vm484_vm11, %v8379_v24, %v6176_v43  ;;  %v1772_v58 = vmul.f32 %v6194_v30, %v988_v47  ;;  %v6229_v50 = vunpack.i.h.bf16 %v5320_v27  ;;  %v639_v24 = vsel %vm520_vm2, %v8386_v15, %v8362_v32 }
 0x305   : > { %8380 = vst [vmem:[#allocation73_spill] sm:$0xff] %v6206_v6  ;;  %v1842_v16 = vmul.f32 %v6206_v6, %v1058_v23  ;;  %v1777_v9 = vmul.f32 %v6213_v49, %v993_v38  ;;  %v8389_v32 = vunpack.i.l.bf16 %v5320_v27  ;;  %v994_v15 = vunpack.c.h.bf16 %v639_v24 }
 0x306   : > { %2117 = vrot.lane.b32.xlu2 %v1912_v33, %s4333_s14  ;;  %8382 = vst [vmem:[#allocation74_spill] sm:$0xff] %v6213_v49  ;;  %v8384_v33 = vld [vmem:[#allocation12_spill] sm:$0xff]  ;;  %v6259_v27 = vunpack.i.h.bf16 %v5373_v55  ;;  %v6333_v36 = vunpack.i.h.bf16 %v8291_v14 }
 0x307   : > { %2069 = vrot.lane.b32.xlu0 %v1888_v60, %s4333_s14  ;;  %2083 = vrot.lane.b32.xlu1 %v1895_v5, %s4333_s14  ;;  %v385_v8 = vsel %vm8018_vm5, %v8265_v62, %v8384_v33  ;;  %v1838_v60 = vmul.f32 %v6121_v22, %v1054_v18  ;;  %8385 = vst [vmem:[#allocation95_spill] sm:$0xff] %v6229_v50  ;;  %v8387_v62 = vunpack.i.l.bf16 %v5367_v54 }
 0x308   : > { %v595_v5 = vsel %vm520_vm2, %v385_v8, %v400_v41  ;;  %v1917_v40 = vpack.c.bf16 %v1847_v57, %v1842_v16  ;;  %v1882_v23 = vpack.c.bf16 %v1777_v9, %v1772_v58  ;;  %v1059_v41 = vunpack.c.l.bf16 %v8366_v34  ;;  %v6249_v54 = vpop.permute.xlu2 %2131  ;;  %v8391_v57 = vld [vmem:[#allocation30_spill] sm:$0xff]  ;;  %v8392_v58 = vld [vmem:[#allocation19_spill] sm:$0xff]  ;;  %8393 = vst [vmem:[#allocation12_spill] sm:$0xff] %v6259_v27 }
 0x309   : > { %v1913_v47 = vpack.c.bf16 %v1838_v60, %v1833_v31  ;;  %v6238_v18 = vsel %vm484_vm11, %v8387_v62, %v6218_v52  ;;  %v973_v22 = vunpack.c.h.bf16 %v595_v5  ;;  %v968_v38 = vunpack.c.l.bf16 %v595_v5  ;;  %v8395_v62 = vld [vmem:[#allocation49_spill] sm:$0xff] }
 0x30a   : > { %8388 = vst [vmem:[#allocation35_spill] sm:$0xff] %v6238_v18  ;;  %v989_v8 = vunpack.c.l.bf16 %v639_v24  ;;  %v6247_v31 = vsel %vm484_vm11, %v8389_v32, %v6229_v50  ;;  %v415_v60 = vsel %vm8020_vm6, %v8392_v58, %v8391_v57  ;;  %v1064_v16 = vunpack.c.h.bf16 %v8366_v34  ;;  %v8396_v58 = vld [vmem:[#allocation63_spill] sm:$0xff] }
 0x30b   : > { %8390 = vst [vmem:[#allocation23_spill] sm:$0xff] %v6247_v31  ;;  %v1757_v9 = vmul.f32 %v6238_v18, %v973_v22  ;;  %v1843_v5 = vmul.f32 %v6176_v43, %v1059_v41  ;;  %v1752_v32 = vmul.f32 %v6247_v31, %v968_v38  ;;  %v892_v22 = vsel %vm484_vm11, %v8323_v20, %v8396_v58 }
 0x30c   : > { %v1848_v34 = vmul.f32 %v6173_v26, %v1064_v16  ;;  %v6273_v24 = vunpack.i.h.bf16 %v5307_v4  ;;  %v1778_v41 = vmul.f32 %v6181_v1, %v994_v15  ;;  %v8401_v16 = vunpack.i.l.bf16 %v8318_v35 }
 0x30d   : > { %v1872_v2 = vpack.c.bf16 %v1757_v9, %v1752_v32  ;;  %v1033_v15 = vunpack.c.h.bf16 %v892_v22  ;;  %v1020_v9 = vunpack.c.h.bf16 %v8352_v25 }
 0x30e   : > { %2119 = vrot.lane.b32.xlu2 %v1913_v47, %s4333_s14  ;;  %v1773_v47 = vmul.f32 %v6164_v42, %v989_v8  ;;  %8397 = vst [vmem:[#allocation30_spill] sm:$0xff] %v6273_v24  ;;  %v6277_v8 = vunpack.i.h.bf16 %v8324_v29  ;;  %v1918_v18 = vpack.c.bf16 %v1848_v34, %v1843_v5 }
 0x30f   : > { %2127 = vrot.lane.b32.xlu0 %v1917_v40, %s4333_s14  ;;  %2057 = vrot.lane.b32.xlu1 %v1882_v23, %s4333_s14  ;;  %v6263_v40 = vunpack.i.h.bf16 %v8318_v35  ;;  %v615_v23 = vsel %vm520_vm2, %v415_v60, %v8395_v62  ;;  %v8399_v60 = vunpack.i.l.bf16 %v5373_v55  ;;  %v8403_v55 = vunpack.i.l.bf16 %v5307_v4 }
 0x310   : > { %8398 = vst [vmem:[#allocation19_spill] sm:$0xff] %v6277_v8  ;;  %v1883_v62 = vpack.c.bf16 %v1778_v41, %v1773_v47  ;;  %v983_v31 = vunpack.c.h.bf16 %v615_v23  ;;  %v8405_v35 = vunpack.i.l.bf16 %v8324_v29  ;;  %v978_v47 = vunpack.c.l.bf16 %v615_v23 }
 0x311   : > { %8394 = vst [vmem:[#allocation33_spill] sm:$0xff] %v6263_v40  ;;  %v6283_v38 = vsel %vm484_vm11, %v8399_v60, %v6259_v27  ;;  %v6289_v20 = vsel %vm484_vm11, %v8401_v16, %v6263_v40  ;;  %v6298_v5 = vsel %vm484_vm11, %v8403_v55, %v6273_v24  ;;  %v1015_v41 = vunpack.c.l.bf16 %v8352_v25  ;;  %v2052_v60 = vpop.permute.xlu2 %2051 }
 0x312   : > { %8400 = vst [vmem:[#allocation49_spill] sm:$0xff] %v6283_v38  ;;  %v6304_v32 = vsel %vm484_vm11, %v8405_v35, %v6277_v8  ;;  %v1817_v34 = vmul.f32 %v6289_v20, %v1033_v15  ;;  %v1804_v4 = vmul.f32 %v6112_v46, %v1020_v9  ;;  %v1762_v16 = vmul.f32 %v6298_v5, %v978_v47  ;;  %v8408_v35 = vld [vmem:[#allocation17_spill] sm:$0xff]  ;;  %v8411_v15 = vld [vmem:[#allocation58_spill] sm:$0xff] }
 0x313   : > { %8402 = vst [vmem:[#allocation63_spill] sm:$0xff] %v6289_v20  ;;  %v6314_v55 = vunpack.i.h.bf16 %v5504_v21  ;;  %v895_v25 = vsel %vm484_vm11, %v8279_v3, %v8411_v15  ;;  %v1799_v9 = vmul.f32 %v6128_v63, %v1015_v41  ;;  %v6327_v47 = vunpack.i.h.bf16 %v5280_v7 }
 0x314   : > { %8404 = vst [vmem:[#allocation134_spill] sm:$0xff] %v6298_v5 }
 0x315   : > { %8406 = vst [vmem:[#allocation135_spill] sm:$0xff] %v6304_v32 }
 0x316   : > { %2037 = vrot.lane.b32.xlu2 %v1872_v2, %s4333_s14  ;;  %v1028_v2 = vunpack.c.l.bf16 %v892_v22  ;;  %8407 = vst [vmem:[#allocation136_spill] sm:$0xff] %v6314_v55  ;;  %v8410_v22 = vld [vmem:[#allocation24_spill] sm:$0xff] }
 0x317   : > { %2129 = vrot.lane.b32.xlu0 %v1918_v18, %s4333_s14  ;;  %2059 = vrot.lane.b32.xlu1 %v1883_v62, %s4333_s14  ;;  %v1767_v18 = vmul.f32 %v6283_v38, %v983_v31  ;;  %v8409_v62 = vld [vmem:[#allocation11_spill] sm:$0xff]  ;;  %v619_v31 = vsel %vm520_vm2, %v8391_v57, %v8410_v22  ;;  %8412 = vst [vmem:[#allocation17_spill] sm:$0xff] %v6327_v47  ;;  %v8415_v57 = vunpack.i.l.bf16 %v5504_v21  ;;  %v1043_v22 = vunpack.c.h.bf16 %v895_v25 }
 0x318   : > { %v1812_v29 = vmul.f32 %v6304_v32, %v1028_v2  ;;  %v579_v23 = vsel %vm520_vm2, %v8409_v62, %v8408_v35  ;;  %v6330_v2 = vunpack.i.h.bf16 %v5502_v37  ;;  %v1894_v38 = vpack.c.bf16 %v1804_v4, %v1799_v9  ;;  %8414 = vst [vmem:[#allocation24_spill] sm:$0xff] %v6333_v36 }
 0x319   : > { %v1877_v32 = vpack.c.bf16 %v1767_v18, %v1762_v16  ;;  %v959_v62 = vunpack.c.l.bf16 %v579_v23  ;;  %v984_v5 = vunpack.c.h.bf16 %v619_v31  ;;  %v6339_v3 = vsel %vm484_vm11, %v8415_v57, %v6314_v55  ;;  %v6363_v57 = vpop.permute.xlu2 %2033 }
 0x31a   : > { %8413 = vst [vmem:[#allocation11_spill] sm:$0xff] %v6330_v2  ;;  %v1902_v20 = vpack.c.bf16 %v1817_v34, %v1812_v29  ;;  %v964_v41 = vunpack.c.h.bf16 %v579_v23  ;;  %v979_v18 = vunpack.c.l.bf16 %v619_v31  ;;  %v8417_v16 = vunpack.i.l.bf16 %v5502_v37 }
 0x31b   : > { %8416 = vst [vmem:[#allocation58_spill] sm:$0xff] %v6339_v3  ;;  %v1743_v34 = vmul.f32 %v6327_v47, %v959_v62  ;;  %v1768_v4 = vmul.f32 %v6259_v27, %v984_v5  ;;  %v1038_v9 = vunpack.c.l.bf16 %v895_v25 }
 0x31c   : > { %v6350_v21 = vsel %vm484_vm11, %v8417_v16, %v6330_v2  ;;  %v1748_v23 = vmul.f32 %v6333_v36, %v964_v41  ;;  %v1763_v31 = vmul.f32 %v6273_v24, %v979_v18  ;;  %v6370_v41 = vunpack.i.h.bf16 %v8314_v13 }
 0x31d   : > { %8418 = vst [vmem:[#allocation137_spill] sm:$0xff] %v6350_v21  ;;  %v1822_v62 = vmul.f32 %v6350_v21, %v1038_v9  ;;  %v1044_v9 = vunpack.c.h.bf16 %v8411_v15 }
 0x31e   : > { %2097 = vrot.lane.b32.xlu2 %v1902_v20, %s4333_s14  ;;  %v1827_v20 = vmul.f32 %v6339_v3, %v1043_v22  ;;  %8419 = vst [vmem:[#allocation138_spill] sm:$0xff] %v6370_v41  ;;  %v1868_v22 = vpack.c.bf16 %v1748_v23, %v1743_v34  ;;  %v1878_v18 = vpack.c.bf16 %v1768_v4, %v1763_v31  ;;  %v6375_v3 = vunpack.i.h.bf16 %v8320_v11 }
 0x31f   : > { %2047 = vrot.lane.b32.xlu0 %v1877_v32, %s4333_s14  ;;  %2081 = vrot.lane.b32.xlu1 %v1894_v38, %s4333_s14  ;;  %v1039_v4 = vunpack.c.l.bf16 %v8411_v15  ;;  %v1828_v23 = vmul.f32 %v6314_v55, %v1044_v9  ;;  %v8423_v9 = vunpack.i.l.bf16 %v5280_v7 }
 0x320   : > { %v1907_v16 = vpack.c.bf16 %v1827_v20, %v1822_v62 }
 0x321   : > { %v2134_v29 = vpop.permute.xlu0 %2133  ;;  %v6353_v32 = vpop.permute.xlu1 %2135 }
 0x322   : > { %v2193_v38 = vsel %vm697_vm4, %v6249_v54, %v2134_v29  ;;  %v2194_v37 = vsel %vm697_vm4, %v2134_v29, %v6353_v32  ;;  %v599_v54 = vsel %vm520_vm2, %v8384_v33, %v8378_v0  ;;  %v370_v0 = vsel %vm8017_vm3, %v8286_v10, %v8408_v35 }
 0x323   : > { %v2254_v5 = vsel %vm520_vm2, %v2193_v38, 0  ;;  %v2257_v25 = vsel %vm520_vm2, %v2194_v37, 0  ;;  %v8420_v38 = vld [vmem:[#allocation62_spill] sm:$0xff]  ;;  %v974_v33 = vunpack.c.h.bf16 %v599_v54  ;;  %v1823_v35 = vmul.f32 %v6330_v2, %v1039_v4 }
 0x324   : > { %2280 = vmatpush.bf16.msra.mxu1 %v2254_v5  ;;  %2306 = vmatpush.bf16.msra.mxu3 %v2257_v25  ;;  %v1019_v29 = vunpack.c.l.bf16 %v8420_v38  ;;  %8421 = vst [vmem:[#allocation62_spill] sm:$0xff] %v6375_v3  ;;  %v1024_v34 = vunpack.c.h.bf16 %v8420_v38  ;;  %v969_v5 = vunpack.c.l.bf16 %v599_v54 }
 0x325   : > { %v1758_v37 = vmul.f32 %v6218_v52, %v974_v33  ;;  %v2042_v33 = vpop.permute.xlu2 %2041 }
 0x326   : > { %2029 = vrot.lane.b32.xlu2 %v1868_v22, %s4333_s14  ;;  %v1803_v20 = vmul.f32 %v6370_v41, %v1019_v29  ;;  %v1808_v10 = vmul.f32 %v6375_v3, %v1024_v34  ;;  %v8422_v22 = vld [vmem:[#allocation40_spill] sm:$0xff]  ;;  %v1908_v29 = vpack.c.bf16 %v1828_v23, %v1823_v35 }
 0x327   : > { %2049 = vrot.lane.b32.xlu0 %v1878_v18, %s4333_s14  ;;  %2107 = vrot.lane.b32.xlu1 %v1907_v16, %s4333_s14  ;;  %v575_v18 = vsel %vm520_vm2, %v8422_v22, %v370_v0  ;;  %v1753_v16 = vmul.f32 %v6229_v50, %v969_v5  ;;  %v1034_v0 = vunpack.c.h.bf16 %v8396_v58 }
 0x328   : > { %v1898_v54 = vpack.c.bf16 %v1808_v10, %v1803_v20  ;;  %v958_v4 = vunpack.c.l.bf16 %v575_v18  ;;  %v963_v7 = vunpack.c.h.bf16 %v575_v18 }
 0x329   : > { %v2054_v31 = vpop.permute.xlu0 %2053  ;;  %v6388_v62 = vpop.permute.xlu1 %2055  ;;  %v1873_v34 = vpack.c.bf16 %v1758_v37, %v1753_v16  ;;  %v1029_v37 = vunpack.c.l.bf16 %v8396_v58  ;;  %v8429_v16 = vld [vmem:[#allocation6_spill] sm:$0xff]  ;;  %v889_v58 = vsel %vm484_vm11, %v8308_v28, %v8420_v38 }
 0x32a   : > { %v2161_v25 = vsel %vm697_vm4, %v2052_v60, %v2054_v31  ;;  %v2162_v15 = vsel %vm697_vm4, %v2054_v31, %v6388_v62  ;;  %v6402_v60 = vsel %vm484_vm11, %v8423_v9, %v6327_v47  ;;  %v8425_v31 = vunpack.i.l.bf16 %v8291_v14  ;;  %v8431_v9 = vld [vmem:[#allocation42_spill] sm:$0xff] }
 0x32b   : > { %2267 = vmatpush.bf16.msra.mxu0 %v2161_v25  ;;  %2293 = vmatpush.bf16.msra.mxu2 %v2162_v15  ;;  %8424 = vst [vmem:[#allocation40_spill] sm:$0xff] %v6402_v60  ;;  %v1742_v23 = vmul.f32 %v6402_v60, %v958_v4  ;;  %v1818_v25 = vmul.f32 %v6263_v40, %v1034_v0  ;;  %v8427_v15 = vld [vmem:[#allocation78_spill] sm:$0xff]  ;;  %v8432_v4 = vld [vmem:[#allocation75_spill] sm:$0xff] }
 0x32c   : > { %v6411_v20 = vsel %vm484_vm11, %v8425_v31, %v6333_v36  ;;  %v6421_v22 = vunpack.i.h.bf16 %v8427_v15  ;;  %v6435_v0 = vunpack.i.h.bf16 %v8432_v4  ;;  %v8436_v28 = vunpack.i.l.bf16 %v8427_v15 }
 0x32d   : > { %8426 = vst [vmem:[#allocation139_spill] sm:$0xff] %v6411_v20  ;;  %v1747_v35 = vmul.f32 %v6411_v20, %v963_v7  ;;  %v8434_v7 = vunpack.i.l.bf16 %v8314_v13  ;;  %v1018_v20 = vunpack.c.l.bf16 %v889_v58  ;;  %v2024_v13 = vpop.permute.xlu2 %2023 }
 0x32e   : > { %2089 = vrot.lane.b32.xlu2 %v1898_v54, %s4333_s14  ;;  %8428 = vst [vmem:[#allocation78_spill] sm:$0xff] %v6421_v22  ;;  %v8430_v54 = vld [vmem:[#allocation3_spill] sm:$0xff]  ;;  %v6447_v38 = vsel %vm484_vm11, %v8436_v28, %v6421_v22 }
 0x32f   : > { %2109 = vrot.lane.b32.xlu0 %v1908_v29, %s4333_s14  ;;  %2039 = vrot.lane.b32.xlu1 %v1873_v34, %s4333_s14  ;;  %v325_v18 = vsel %vm8015_vm13, %v8430_v54, %v8429_v16  ;;  %v1813_v29 = vmul.f32 %v6277_v8, %v1029_v37  ;;  %8433 = vst [vmem:[#allocation6_spill] sm:$0xff] %v6435_v0  ;;  %vm8016_vm13 = vcmask 719872  }
 0x330   : > { %v555_v34 = vsel %vm520_vm2, %v325_v18, %v8431_v9  ;;  %v1867_v31 = vpack.c.bf16 %v1747_v35, %v1742_v23  ;;  %v6441_v40 = vsel %vm484_vm11, %v8434_v7, %v6370_v41  ;;  %8437 = vst [vmem:[#allocation42_spill] sm:$0xff] %v6447_v38  ;;  %v8438_v23 = vunpack.i.l.bf16 %v8320_v11 }
 0x331   : > { %v2124_v5 = vpop.permute.xlu0 %2123  ;;  %v6417_v10 = vpop.permute.xlu1 %2125  ;;  %8435 = vst [vmem:[#allocation3_spill] sm:$0xff] %v6441_v40  ;;  %v1903_v54 = vpack.c.bf16 %v1818_v25, %v1813_v29  ;;  %v953_v37 = vunpack.c.h.bf16 %v555_v34  ;;  %v1023_v25 = vunpack.c.h.bf16 %v889_v58  ;;  %v1802_v18 = vmul.f32 %v6441_v40, %v1018_v20 }
 0x332   : > { %v2190_v14 = vsel %vm697_vm4, %v2124_v5, %v6417_v10  ;;  %v6454_v35 = vsel %vm484_vm11, %v8438_v23, %v6375_v3  ;;  %v948_v9 = vunpack.c.l.bf16 %v555_v34 }
 0x333   : > { %2307 = vmatpush.bf16.msra.mxu3 %v2190_v14  ;;  %8439 = vst [vmem:[#allocation75_spill] sm:$0xff] %v6454_v35  ;;  %v8440_v14 = vunpack.i.l.bf16 %v8432_v4  ;;  %v1807_v28 = vmul.f32 %v6454_v35, %v1023_v25  ;;  %v8442_v4 = vld [vmem:[#allocation4_spill] sm:$0xff] }
 0x335   : > { %v6461_v15 = vsel %vm484_vm11, %v8440_v14, %v6435_v0  ;;  %v1897_v34 = vpack.c.bf16 %v1807_v28, %v1802_v18 }
 0x336   : > { %8441 = vst [vmem:[#allocation140_spill] sm:$0xff] %v6461_v15  ;;  %v1732_v20 = vmul.f32 %v6461_v15, %v948_v9 }
 0x337   : > { %2027 = vrot.lane.b32.xlu0 %v1867_v31, %s4333_s14  ;;  %2099 = vrot.lane.b32.xlu1 %v1903_v54, %s4333_s14  ;;  %v1737_v31 = vmul.f32 %v6447_v38, %v953_v37  ;;  %v559_v54 = vsel %vm520_vm2, %v8429_v16, %v8442_v4 }
 0x338   : > { %v954_v37 = vunpack.c.h.bf16 %v559_v54 }
 0x339   : > { %v2044_v29 = vpop.permute.xlu0 %2043  ;;  %v6465_v11 = vpop.permute.xlu1 %2045  ;;  %v1862_v23 = vpack.c.bf16 %v1737_v31, %v1732_v20 }
 0x33a   : > { %v2157_v7 = vsel %vm697_vm4, %v2042_v33, %v2044_v29  ;;  %v2158_v58 = vsel %vm697_vm4, %v2044_v29, %v6465_v11  ;;  %v949_v33 = vunpack.c.l.bf16 %v559_v54  ;;  %v1738_v25 = vmul.f32 %v6421_v22, %v954_v37 }
 0x33b   : > { %2268 = vmatpush.bf16.msra.mxu0 %v2157_v7  ;;  %2294 = vmatpush.bf16.msra.mxu2 %v2158_v58  ;;  %v2112_v7 = vpop.permute.xlu2 %2111 }
 0x33c   : > { %v1733_v38 = vmul.f32 %v6435_v0, %v949_v33 }
 0x33e   : > { %v1863_v18 = vpack.c.bf16 %v1738_v25, %v1733_v38  ;;  %v2146_v25 = vsel %vm697_vm4, %v5969_v51, %v5973_v17 }
 0x33f   : > { %2087 = vrot.lane.b32.xlu0 %v1897_v34, %s4333_s14  ;;  %2017 = vrot.lane.b32.xlu1 %v1862_v23, %s4333_s14 }
 0x341   : > { %v2114_v14 = vpop.permute.xlu0 %2113  ;;  %v6478_v29 = vpop.permute.xlu1 %2115 }
 0x342   : > { %v2186_v16 = vsel %vm697_vm4, %v2114_v14, %v6478_v29  ;;  %v2185_v54 = vsel %vm697_vm4, %v2112_v7, %v2114_v14 }
 0x343   : > { %2308 = vmatpush.bf16.msra.mxu3 %v2186_v16  ;;  %v2080_v4 = vpop.permute.xlu2 %2079 }
 0x347   : > { %2019 = vrot.lane.b32.xlu0 %v1863_v18, %s4333_s14  ;;  %v8443_v18 = vld [vmem:[#allocation69_spill] sm:$0xff] }
 0x349   : > { %v6484_v9 = vpop.permute.xlu0 %2035  ;;  %v2122_v31 = vpop.permute.xlu1 %2121 }
 0x34a   : > { %v2154_v28 = vsel %vm697_vm4, %v6363_v57, %v6484_v9  ;;  %v2189_v58 = vsel %vm697_vm4, %v2122_v31, %v2124_v5  ;;  %v2142_v31 = vsel %vm697_vm4, %v5828_v12, %v8443_v18 }
 0x34b   : > { %2295 = vmatpush.bf16.msra.mxu2 %v2154_v28  ;;  %2281 = vmatpush.bf16.msra.mxu1 %v2189_v58  ;;  %v2140_v23 = vpop.permute.xlu2 %2139 }
 0x34f   : > { %2282 = vmatpush.bf16.msra.mxu1 %v2185_v54 }
 0x351   : > { %v2104_v20 = vpop.permute.xlu0 %2103  ;;  %v6491_v34 = vpop.permute.xlu1 %2105 }
 0x352   : > { %v2182_v38 = vsel %vm697_vm4, %v2104_v20, %v6491_v34 }
 0x353   : > { %2309 = vmatpush.bf16.msra.mxu3 %v2182_v38  ;;  %v2022_v14 = vpop.permute.xlu2 %2021 }
 0x354   : > { %v2149_v38 = vsel %vm697_vm4, %v2022_v14, %v2024_v13 }
 0x359   : > { %v6495_v37 = vpop.permute.xlu0 %2025  ;;  %v6497_v33 = vpop.permute.xlu1 %2077 }
 0x35a   : > { %v2150_v5 = vsel %vm697_vm4, %v2024_v13, %v6495_v37  ;;  %v2172_v13 = vsel %vm697_vm4, %v6497_v33, %v2080_v4 }
 0x35b   : > { %2296 = vmatpush.bf16.msra.mxu2 %v2150_v5 }
 0x35f   : > { %2297 = vmatpush.bf16.msra.mxu2 %v2146_v25  ;;  %v6512_v25 = vpop.permute.xlu2 %2085 }
 0x361   : > { %v2138_v7 = vpop.permute.xlu0 %2137  ;;  %v2032_v16 = vpop.permute.xlu1 %2031 }
 0x362   : > { %v2196_v28 = vsel %vm697_vm4, %v2138_v7, %v2140_v23  ;;  %v2153_v58 = vsel %vm697_vm4, %v2032_v16, %v6363_v57  ;;  %v2145_v23 = vsel %vm697_vm4, %v5810_v44, %v5969_v51  ;;  %v2141_v16 = vsel %vm697_vm4, %v5819_v53, %v5828_v12 }
 0x363   : > { %2298 = vmatpush.bf16.msra.mxu2 %v2142_v31  ;;  %v2263_v54 = vsel %vm520_vm2, %v2196_v28, 0  ;;  %2269 = vmatpush.bf16.msra.mxu0 %v2153_v58 }
 0x367   : > { %2358 = vmatpush.bf16.msrb.mxu2 %v2263_v54  ;;  %2270 = vmatpush.bf16.msra.mxu0 %v2149_v38  ;;  %v2092_v58 = vpop.permute.xlu2 %2091  ;;  %v2195_v54 = vsel %vm697_vm4, %v6353_v32, %v2138_v7 }
 0x368   : > { %v2260_v4 = vsel %vm520_vm2, %v2195_v54, 0 }
 0x369   : > { %v2094_v5 = vpop.permute.xlu0 %2093  ;;  %v6514_v22 = vpop.permute.xlu1 %2095 }
 0x36a   : > { %v2178_v57 = vsel %vm697_vm4, %v2094_v5, %v6514_v22  ;;  %v2177_v44 = vsel %vm697_vm4, %v2092_v58, %v2094_v5  ;;  %v1924_v5 = vld [vmem:[%s7795_s1] sm:$0xff] }
 0x36b   : > { %2271 = vmatpush.bf16.msra.mxu0 %v2145_v23  ;;  %2310 = vmatpush.bf16.msra.mxu3 %v2178_v57  ;;  %v1927_v57 = vunpack.c.h.b16 %v1924_v5 }
 0x36d   : > { %v6539_v7 = vpack.c.b16 %v1927_v57, %v1927_v57  ;;  %v2171_v57 = vsel %vm697_vm4, %v6007_v56, %v6497_v33 }
 0x36f   : > { %2272 = vmatpush.bf16.msra.mxu0 %v2141_v16 }
 0x371   : > { %v2068_v14 = vpop.permute.xlu0 %2067  ;;  %v2102_v31 = vpop.permute.xlu1 %2101 }
 0x372   : > { %v2181_v28 = vsel %vm697_vm4, %v2102_v31, %v2104_v20  ;;  %v2118_v20 = vpop.permute.xlu2 %2117 }
 0x373   : > { %2343 = vmatpush.bf16.msrb.mxu0 %v2172_v13  ;;  %2283 = vmatpush.bf16.msra.mxu1 %v2181_v28  ;;  %v1926_v13 = vunpack.c.l.b16 %v1924_v5  ;;  %v2187_v28 = vsel %vm697_vm4, %v6478_v29, %v2118_v20 }
 0x375   : > { %v6543_v31 = vpack.c.b16 %v1926_v13, %v1926_v13 }
 0x377   : > { %2284 = vmatpush.bf16.msra.mxu1 %v2177_v44  ;;  %2299 = vmatmul.bf16.vlgmr.msra.gmra.mxu2 %v6543_v31 }
 0x378   : > { %2273 = vmatmul.bf16.vlgmr.msra.gmra.mxu0 %v6543_v31 }
 0x379   : > { %v2070_v51 = vpop.permute.xlu0 %2069  ;;  %v2084_v38 = vpop.permute.xlu1 %2083 }
 0x37a   : > { %v2168_v53 = vsel %vm697_vm4, %v2068_v14, %v2070_v51  ;;  %v2174_v12 = vsel %vm697_vm4, %v2084_v38, %v6512_v25  ;;  %v2120_v58 = vpop.permute.xlu2 %2119 }
 0x37b   : > { %2344 = vmatpush.bf16.msrb.mxu0 %v2168_v53  ;;  %2311 = vmatpush.bf16.msra.mxu3 %v2174_v12  ;;  %v2188_v53 = vsel %vm697_vm4, %v2118_v20, %v2120_v58 }
 0x37e   : > { %3992 = vmatmul.msk.bf16.vlgmr.msra.gmra.mxu3 %vm8016_vm13, %v6539_v7 }
 0x37f   : > { %2332 = vmatpush.bf16.msrb.mxu3 %v2260_v4 }
 0x381   : > { %v2128_v23 = vpop.permute.xlu0 %2127  ;;  %v2058_v16 = vpop.permute.xlu1 %2057 }
 0x382   : > { %v2191_v32 = vsel %vm697_vm4, %v6417_v10, %v2128_v23  ;;  %v2038_v4 = vpop.permute.xlu2 %2037  ;;  %v2163_v56 = vsel %vm697_vm4, %v6388_v62, %v2058_v16 }
 0x383   : > { %2333 = vmatpush.bf16.msrb.mxu3 %v2191_v32  ;;  %v2155_v62 = vsel %vm697_vm4, %v6484_v9, %v2038_v4 }
 0x387   : > { %2334 = vmatpush.bf16.msrb.mxu3 %v2187_v28 }
 0x389   : > { %v2130_v10 = vpop.permute.xlu0 %2129  ;;  %v2060_v44 = vpop.permute.xlu1 %2059 }
 0x38a   : > { %v2192_v51 = vsel %vm697_vm4, %v2128_v23, %v2130_v10  ;;  %v2164_v54 = vsel %vm697_vm4, %v2058_v16, %v2060_v44  ;;  %v2167_v23 = vsel %vm697_vm4, %v5916_v45, %v2068_v14  ;;  %v2098_v28 = vpop.permute.xlu2 %2097 }
 0x38b   : > { %2359 = vmatpush.bf16.msrb.mxu2 %v2192_v51  ;;  %2345 = vmatpush.bf16.msrb.mxu0 %v2164_v54  ;;  %v2179_v33 = vsel %vm697_vm4, %v6514_v22, %v2098_v28 }
 0x38f   : > { %2360 = vmatpush.bf16.msrb.mxu2 %v2188_v53 }
 0x391   : > { %v2048_v12 = vpop.permute.xlu0 %2047  ;;  %v2082_v29 = vpop.permute.xlu1 %2081 }
 0x392   : > { %v2173_v5 = vsel %vm697_vm4, %v2082_v29, %v2084_v38  ;;  %v2159_v45 = vsel %vm697_vm4, %v6465_v11, %v2048_v12  ;;  %v2030_v16 = vpop.permute.xlu2 %2029 }
 0x393   : > { %2285 = vmatpush.bf16.msra.mxu1 %v2173_v5 }
 0x396   : > { %3991 = vmatmul.msk.bf16.vlgmr.msra.gmra.mxu1 %vm8016_vm13, %v6539_v7 }
 0x397   : > { %2317 = vmatpush.bf16.msrb.mxu1 %v2171_v57 }
 0x399   : > { %v2050_v20 = vpop.permute.xlu0 %2049  ;;  %v2108_v32 = vpop.permute.xlu1 %2107 }
 0x39a   : > { %v2160_v13 = vsel %vm697_vm4, %v2048_v12, %v2050_v20  ;;  %v2183_v38 = vsel %vm697_vm4, %v6491_v34, %v2108_v32  ;;  %v2090_v53 = vpop.permute.xlu2 %2089 }
 0x39b   : > { %2318 = vmatpush.bf16.msrb.mxu1 %v2167_v23  ;;  %2346 = vmatpush.bf16.msrb.mxu0 %v2160_v13 }
 0x39c   : > { %2335 = vmatpush.bf16.msrb.mxu3 %v2183_v38 }
 0x39f   : > { %2319 = vmatpush.bf16.msrb.mxu1 %v2163_v56 }
 0x3a0   : > { %2336 = vmatpush.bf16.msrb.mxu3 %v2179_v33 }
 0x3a1   : > { %v2110_v14 = vpop.permute.xlu0 %2109  ;;  %v2040_v58 = vpop.permute.xlu1 %2039 }
 0x3a2   : > { %v2184_v10 = vsel %vm697_vm4, %v2108_v32, %v2110_v14  ;;  %v2156_v34 = vsel %vm697_vm4, %v2038_v4, %v2040_v58 }
 0x3a3   : > { %2320 = vmatpush.bf16.msrb.mxu1 %v2159_v45  ;;  %2361 = vmatpush.bf16.msrb.mxu2 %v2184_v10 }
 0x3a4   : > { %2347 = vmatpush.bf16.msrb.mxu0 %v2156_v34 }
 0x3a7   : > { %2321 = vmatpush.bf16.msrb.mxu1 %v2155_v62 }
 0x3a9   : > { %v2028_v44 = vpop.permute.xlu0 %2027  ;;  %v2100_v22 = vpop.permute.xlu1 %2099 }
 0x3aa   : > { %v2151_v51 = vsel %vm697_vm4, %v6495_v37, %v2028_v44  ;;  %v2152_v11 = vsel %vm697_vm4, %v2028_v44, %v2030_v16  ;;  %v2180_v54 = vsel %vm697_vm4, %v2098_v28, %v2100_v22  ;;  %v8444_v37 = vld [vmem:[#allocation66_spill] sm:$0xff] }
 0x3ab   : > { %2322 = vmatpush.bf16.msrb.mxu1 %v2151_v51  ;;  %2348 = vmatpush.bf16.msrb.mxu0 %v2152_v11  ;;  %v2143_v57 = vsel %vm697_vm4, %v8443_v18, %v8444_v37 }
 0x3ac   : > { %2362 = vmatpush.bf16.msrb.mxu2 %v2180_v54 }
 0x3b1   : > { %v2088_v12 = vpop.permute.xlu0 %2087  ;;  %v2018_v29 = vpop.permute.xlu1 %2017 }
 0x3b2   : > { %v2175_v9 = vsel %vm697_vm4, %v6512_v25, %v2088_v12  ;;  %v2176_v4 = vsel %vm697_vm4, %v2088_v12, %v2090_v53  ;;  %v2147_v5 = vsel %vm697_vm4, %v5973_v17, %v2018_v29  ;;  %v8445_v17 = vld [vmem:[#allocation131_spill] sm:$0xff] }
 0x3b3   : > { %2337 = vmatpush.bf16.msrb.mxu3 %v2175_v9  ;;  %2363 = vmatpush.bf16.msrb.mxu2 %v2176_v4  ;;  %v2144_v20 = vsel %vm697_vm4, %v8444_v37, %v8445_v17 }
 0x3b4   : > { %2323 = vmatpush.bf16.msrb.mxu1 %v2147_v5 }
 0x3b6   : > { %3993 = vmatmul.msk.bf16.vlgmr.msrb.gmra.mxu3 %vm8016_vm13, %v6539_v7  ;;  %3994 = vmatmul.msk.bf16.vlgmr.msrb.gmra.mxu2 %vm8016_vm13, %v6539_v7 }
 0x3b8   : > { %2324 = vmatpush.bf16.msrb.mxu1 %v2143_v57 }
 0x3b9   : > { %v2020_v25 = vpop.permute.xlu0 %2019 }
 0x3ba   : > { %v2148_v23 = vsel %vm697_vm4, %v2018_v29, %v2020_v25 }
 0x3bb   : > { %2325 = vmatmul.bf16.vlgmr.msrb.gmra.mxu1 %v6543_v31  ;;  %2349 = vmatpush.bf16.msrb.mxu0 %v2148_v23 }
 0x3bf   : > { %2350 = vmatpush.bf16.msrb.mxu0 %v2144_v20 }
 0x3c2   : > { %2351 = vmatmul.bf16.vlgmr.msrb.gmra.mxu0 %v6543_v31 }
 0x3f5   : > { %v2274_v32 = vpop.f32.mrf.mxu0 }
 0x3fa   : > { %v2300_v13 = vpop.f32.mrf.mxu2 }
 0x3fd   : > { %v2276_v38 = vpop.f32.mrf.mxu0 }
 0x3fe   : > { %v4338_v38 = vmov 0  }
 0x3ff   : > { %4305 = vset.pattern.permute.xlu0 %v4338_v38  ;;  %2433 = vst [vmem:[#allocation2] sm:$0xf] %v4338_v38 }
 0x400   : > { %2434 = vst [vmem:[#allocation2 + $0x14] sm:$0xf] %v4338_v38 }
 0x401   : > { %v2313_v7 = vpop.f32.mrf.mxu3 }
 0x402   : > { %v2302_v18 = vpop.f32.mrf.mxu2  ;;  %v2314_v34 = vadd.f32 %v2313_v7, %v2300_v13 }
 0x409   : > { %v2315_v28 = vpop.f32.mrf.mxu3 }
 0x40a   : > { %v2411_v28 = vld [vmem:[%s7797_s3] sm:$0xff] }
 0x40b   : > { %2414 = vperm.xlu0 %4305, %v2411_v28  }
 0x413   : > { %v2287_v56 = vpop.f32.mrf.mxu1 }
 0x414   : > { %v2288_v10 = vadd.f32 %v2287_v56, %v2274_v32 }
 0x416   : > { %v2369_v16 = vadd.f32 %v2314_v34, %v2288_v10 }
 0x41b   : > { %v2289_v33 = vpop.f32.mrf.mxu1 }
 0x438   : > { %v2326_v45 = vpop.f32.mrf.mxu1 }
 0x439   : > { %v2339_v14 = vpop.f32.mrf.mxu3  ;;  %v2365_v58 = vpop.f32.mrf.mxu2 }
 0x43a   : > { %v2340_v62 = vadd.f32 %v2339_v14, %v2326_v45 }
 0x43c   : > { %v2370_v22 = vadd.f32 %v2369_v16, %v2340_v62  ;;  %v2389_v16 = vld [vmem:[%s7796_s2] sm:$0xff] }
 0x43f   : > { %v2352_v44 = vpop.f32.mrf.mxu0 }
 0x440   : > { %v2328_v51 = vpop.f32.mrf.mxu1  ;;  %v2366_v11 = vadd.f32 %v2365_v58, %v2352_v44 }
 0x441   : > { %v2341_v31 = vpop.f32.mrf.mxu3  ;;  %v2367_v54 = vpop.f32.mrf.mxu2 }
 0x442   : > { %v2371_v53 = vadd.f32 %v2370_v22, %v2366_v11 }
 0x444   : > { %2372 = vadd.xlane.f32.xlu1 %v2371_v53 }
 0x447   : > { %v2354_v12 = vpop.f32.mrf.mxu0 }
 0x47d   : > { %v2415_v51 = vpop.permute.xlu0 %2414 }
 0x4b7   : > { %v2373_v29 = vpop.xlane.xlu1 %2372 }
 0x4b8   : > { %v2374_v9 = vmul.f32 0.001953125, %v2373_v29 }
 0x4ba   : > { %v2375_v4 = vsub.f32 %v2288_v10, %v2374_v9  ;;  %v2376_v5 = vsub.f32 %v2314_v34, %v2374_v9  ;;  %v2377_v37 = vsub.f32 %v2340_v62, %v2374_v9  ;;  %v2378_v57 = vsub.f32 %v2366_v11, %v2374_v9 }
 0x4bc   : > { %v2379_v25 = vmul.f32 %v2375_v4, %v2375_v4  ;;  %v2380_v23 = vmul.f32 %v2376_v5, %v2376_v5  ;;  %v2381_v17 = vmul.f32 %v2377_v37, %v2377_v37  ;;  %v2382_v32 = vmul.f32 %v2378_v57, %v2378_v57 }
 0x4be   : > { %v2383_v20 = vadd.f32 %v2380_v23, %v2379_v25 }
 0x4c0   : > { %v2384_v7 = vadd.f32 %v2383_v20, %v2381_v17 }
 0x4c2   : > { %v2385_v13 = vadd.f32 %v2384_v7, %v2382_v32 }
 0x4c4   : > { %2386 = vadd.xlane.f32.xlu2 %v2385_v13 }
 0x537   : > { %v2387_v18 = vpop.xlane.xlu2 %2386 }
 0x538   : > { %v2388_v56 = vmul.f32 0.001953125, %v2387_v18 }
 0x53a   : > { %v2390_v33 = vadd.f32 1e-05, %v2388_v56 }
 0x53c   : > { %4306 = vrsqrt.f32 %v2390_v33  ;;  %vm2397_vm3 = vweird.f32 %v2390_v33 }
 0x542   : > { %v4307_v45 = vpop.eup %4306 }
 0x543   : > { %v2392_v14 = vmul.f32 %v4307_v45, %v2390_v33  ;;  %vm2398_vm13 = vweird.f32 %v4307_v45 }
 0x544   : > { %vm2399_vm5 = vmor %vm2397_vm3, %vm2398_vm13  ;;  %vm8476_vm3 = vcmask 580608  }
 0x545   : > { %v2393_v58 = vmul.f32 %v4307_v45, %v2392_v14 }
 0x547   : > { %v2394_v10 = vmul.f32 0.5, %v2393_v58 }
 0x549   : > { %v2395_v34 = vsub.f32 1.5, %v2394_v10 }
 0x54b   : > { %v2396_v62 = vmul.f32 %v4307_v45, %v2395_v34 }
 0x54d   : > { %v2400_v44 = vsel %vm2399_vm5, %v4307_v45, %v2396_v62  ;;  %vm8478_vm5 = vmmov %vm8476_vm3 }
 0x54e   : > { %v2401_v22 = vmul.f32 %v2400_v44, %v2389_v16 }
 0x550   : > { %2404 = vperm.xlu0 %4305, %v2401_v22  }
 0x5c2   : > { %v2405_v11 = vpop.permute.xlu0 %2404 }
 0x5c3   : > { %v2407_v31 = vmul.f32 %v2405_v11, %v2375_v4  ;;  %v2408_v54 = vmul.f32 %v2405_v11, %v2376_v5  ;;  %v2409_v53 = vmul.f32 %v2405_v11, %v2377_v37  ;;  %v2410_v12 = vmul.f32 %v2405_v11, %v2378_v57 }
 0x5c5   : > { %v2417_v29 = vadd.f32 %v2415_v51, %v2407_v31  ;;  %v2418_v9 = vadd.f32 %v2415_v51, %v2408_v54  ;;  %v2419_v25 = vadd.f32 %v2415_v51, %v2409_v53  ;;  %v2420_v23 = vadd.f32 %v2415_v51, %v2410_v12 }
 0x5c7   : > { %vm2421_vm12 = vcmp.ge.f32.partialorder %v2417_v29, 0.0  ;;  %vm2422_vm6 = vcmp.ge.f32.partialorder %v2418_v9, 0.0  ;;  %vm2423_vm1 = vcmp.ge.f32.partialorder %v2419_v25, 0.0  ;;  %vm2424_vm15 = vcmp.ge.f32.partialorder %v2420_v23, 0.0 }
 0x5c8   : > { %v2425_v17 = vmul.f32 0.01, %v2417_v29  ;;  %v2426_v20 = vmul.f32 0.01, %v2418_v9  ;;  %v2427_v32 = vmul.f32 0.01, %v2419_v25 }
 0x5c9   : > { %v2428_v7 = vmul.f32 0.01, %v2420_v23 }
 0x5ca   : > { %v2429_v13 = vsel %vm2421_vm12, %v2417_v29, %v2425_v17  ;;  %v2430_v38 = vsel %vm2422_vm6, %v2418_v9, %v2426_v20  ;;  %v2431_v28 = vsel %vm2423_vm1, %v2419_v25, %v2427_v32  ;;  %vm8475_vm1 = vcmask 531456  }
 0x5cb   : > { %v2432_v18 = vsel %vm2424_vm15, %v2420_v23, %v2428_v7  ;;  %v2435_v4 = vpack.c.bf16 %v2430_v38, %v2429_v13  ;;  %vm8479_vm6 = vmmov %vm8475_vm1  ;;  %vm8480_vm12 = vcmask 588800  }
 0x5cc   : > { %v2436_v5 = vpack.c.bf16 %v2432_v18, %v2431_v28  ;;  %vm8481_vm13 = vmmov %vm8475_vm1 }
 0x5cd   : > { %2437 = vst [vmem:[#allocation2 + $0x4] sm:$0xff] %v2435_v4  ;;  %vm8482_vm15 = vmmov %vm8476_vm3 }
 0x5ce   : > { %2438 = vst [vmem:[#allocation2 + $0xc] sm:$0xff] %v2436_v5 }
 0x5d4   : > { %v2439_v37 = vld [vmem:[#allocation2] sm:$0xff] }
 0x5d5   : > { %v2440_v57 = vld [vmem:[#allocation2 + $0x8] sm:$0xff]  ;;  %v2445_v56 = vunpack.c.l.b16 %v2439_v37  ;;  %v2446_v34 = vunpack.c.h.b16 %v2439_v37  ;;  %v6615_v16 = vld [vmem:[#allocation2 + $0x10] sm:$0xff] }
 0x5d6   : > { %v2447_v33 = vunpack.c.l.b16 %v2440_v57  ;;  %v2448_v45 = vunpack.c.h.b16 %v2440_v57  ;;  %v2449_v44 = vunpack.c.l.b16 %v6615_v16 }
 0x5d7   : > { %v6601_v14 = vpack.c.b16 %v2445_v56, %v2445_v56  ;;  %v6613_v62 = vpack.c.b16 %v2446_v34, %v2446_v34  ;;  %v2634_v56 = vunpack.c.h.b16 %v6615_v16 }
 0x5d8   : > { %v6603_v58 = vpack.c.b16 %v2447_v33, %v2447_v33  ;;  %v6605_v10 = vpack.c.b16 %v2448_v45, %v2448_v45  ;;  %v6624_v22 = vpack.c.b16 %v2449_v44, %v2449_v44 }
 0x5d9   : > { %8446 = vst [vmem:[#allocation4_spill] sm:$0xff] %v6601_v14  ;;  %2455 = vrot.lane.b32.xlu0 %v6601_v14, %s4318_s24  ;;  %v6789_v34 = vpack.c.b16 %v2634_v56, %v2634_v56 }
 0x5da   : > { %8447 = vst [vmem:[#allocation69_spill] sm:$0xff] %v6603_v58  ;;  %2461 = vrot.lane.b32.xlu1 %v6605_v10, %s4318_s24  ;;  %2459 = vrot.lane.b32.xlu2 %v6603_v58, %s4318_s24 }
 0x5db   : > { %8448 = vst [vmem:[#allocation66_spill] sm:$0xff] %v6605_v10 }
 0x5dc   : > { %8449 = vst [vmem:[#allocation131_spill] sm:$0xff] %v6613_v62 }
 0x5dd   : > { %8450 = vst [vmem:[#allocation141_spill] sm:$0xff] %v6624_v22 }
 0x5e1   : > { %2457 = vrot.lane.b32.xlu0 %v6613_v62, %s4318_s24 }
 0x5e2   : > { %2475 = vrot.lane.b32.xlu1 %v6605_v10, %s4319_s25  ;;  %2473 = vrot.lane.b32.xlu2 %v6603_v58, %s4319_s25 }
 0x5e9   : > { %2463 = vrot.lane.b32.xlu0 %v6624_v22, %s4318_s24  ;;  %s8467_s24 = smov 72  }
 0x5ea   : > { %2485 = vrot.lane.b32.xlu1 %v6613_v62, %s4320_s26  ;;  %2483 = vrot.lane.b32.xlu2 %v6601_v14, %s4320_s26 }
 0x5f1   : > { %2469 = vrot.lane.b32.xlu0 %v6601_v14, %s4319_s25 }
 0x5f2   : > { %2491 = vrot.lane.b32.xlu1 %v6624_v22, %s4320_s26  ;;  %2489 = vrot.lane.b32.xlu2 %v6605_v10, %s4320_s26 }
 0x5f9   : > { %2471 = vrot.lane.b32.xlu0 %v6613_v62, %s4319_s25 }
 0x5fa   : > { %2501 = vrot.lane.b32.xlu1 %v6603_v58, %s4321_s27  ;;  %2499 = vrot.lane.b32.xlu2 %v6613_v62, %s4321_s27 }
 0x601   : > { %2477 = vrot.lane.b32.xlu0 %v6624_v22, %s4319_s25  ;;  %s8469_s25 = smov 54  }
 0x602   : > { %2511 = vrot.lane.b32.xlu1 %v6601_v14, %s4322_s28  ;;  %2505 = vrot.lane.b32.xlu2 %v6624_v22, %s4321_s27 }
 0x609   : > { %2487 = vrot.lane.b32.xlu0 %v6603_v58, %s4320_s26 }
 0x60a   : > { %2517 = vrot.lane.b32.xlu1 %v6605_v10, %s4322_s28  ;;  %2515 = vrot.lane.b32.xlu2 %v6603_v58, %s4322_s28 }
 0x611   : > { %2497 = vrot.lane.b32.xlu0 %v6601_v14, %s4321_s27 }
 0x612   : > { %2527 = vrot.lane.b32.xlu1 %v6613_v62, %s4323_s29  ;;  %2525 = vrot.lane.b32.xlu2 %v6601_v14, %s4323_s29 }
 0x619   : > { %2503 = vrot.lane.b32.xlu0 %v6605_v10, %s4321_s27 }
 0x61a   : > { %2533 = vrot.lane.b32.xlu1 %v6624_v22, %s4323_s29  ;;  %2531 = vrot.lane.b32.xlu2 %v6605_v10, %s4323_s29 }
 0x621   : > { %2513 = vrot.lane.b32.xlu0 %v6613_v62, %s4322_s28 }
 0x622   : > { %2543 = vrot.lane.b32.xlu1 %v6603_v58, %s4324_s30  ;;  %2541 = vrot.lane.b32.xlu2 %v6613_v62, %s4324_s30 }
 0x629   : > { %2519 = vrot.lane.b32.xlu0 %v6624_v22, %s4322_s28  ;;  %s8471_s28 = smov 48  }
 0x62a   : > { %2553 = vrot.lane.b32.xlu1 %v6601_v14, %s4325_s6  ;;  %2547 = vrot.lane.b32.xlu2 %v6624_v22, %s4324_s30 }
 0x631   : > { %2529 = vrot.lane.b32.xlu0 %v6603_v58, %s4323_s29 }
 0x632   : > { %2559 = vrot.lane.b32.xlu1 %v6605_v10, %s4325_s6  ;;  %2557 = vrot.lane.b32.xlu2 %v6603_v58, %s4325_s6 }
 0x634   : > { %v6686_v51 = vpop.permute.xlu2 %2459 }
 0x635   : > { %8451 = vst [vmem:[#allocation142_spill] sm:$0xff] %v6686_v51 }
 0x639   : > { %2539 = vrot.lane.b32.xlu0 %v6601_v14, %s4324_s30 }
 0x63a   : > { %2569 = vrot.lane.b32.xlu1 %v6613_v62, %s4326_s7  ;;  %2567 = vrot.lane.b32.xlu2 %v6601_v14, %s4326_s7 }
 0x63c   : > { %v6694_v11 = vpop.permute.xlu2 %2473 }
 0x63d   : > { %8452 = vst [vmem:[#allocation143_spill] sm:$0xff] %v6694_v11 }
 0x641   : > { %2545 = vrot.lane.b32.xlu0 %v6605_v10, %s4324_s30 }
 0x642   : > { %2575 = vrot.lane.b32.xlu1 %v6624_v22, %s4326_s7  ;;  %2573 = vrot.lane.b32.xlu2 %v6605_v10, %s4326_s7 }
 0x644   : > { %v6702_v31 = vpop.permute.xlu2 %2483 }
 0x645   : > { %8453 = vst [vmem:[#allocation144_spill] sm:$0xff] %v6702_v31 }
 0x649   : > { %2555 = vrot.lane.b32.xlu0 %v6613_v62, %s4325_s6 }
 0x64a   : > { %2585 = vrot.lane.b32.xlu1 %v6603_v58, %s4327_s8  ;;  %2583 = vrot.lane.b32.xlu2 %v6613_v62, %s4327_s8 }
 0x64b   : > { %v6710_v54 = vpop.permute.xlu0 %2455 }
 0x64c   : > { %8454 = vst [vmem:[#allocation145_spill] sm:$0xff] %v6710_v54  ;;  %v6712_v53 = vpop.permute.xlu1 %2461  ;;  %v6714_v12 = vpop.permute.xlu2 %2489 }
 0x64d   : > { %8455 = vst [vmem:[#allocation146_spill] sm:$0xff] %v6712_v53 }
 0x651   : > { %2561 = vrot.lane.b32.xlu0 %v6624_v22, %s4325_s6 }
 0x652   : > { %2595 = vrot.lane.b32.xlu1 %v6601_v14, %s4328_s9  ;;  %2589 = vrot.lane.b32.xlu2 %v6624_v22, %s4327_s8 }
 0x653   : > { %v6722_v29 = vpop.permute.xlu0 %2457 }
 0x654   : > { %8456 = vst [vmem:[#allocation147_spill] sm:$0xff] %v6722_v29  ;;  %v6724_v9 = vpop.permute.xlu1 %2475  ;;  %v6726_v25 = vpop.permute.xlu2 %2499 }
 0x655   : > { %8457 = vst [vmem:[#allocation148_spill] sm:$0xff] %v6724_v9 }
 0x659   : > { %2571 = vrot.lane.b32.xlu0 %v6603_v58, %s4326_s7 }
 0x65a   : > { %2601 = vrot.lane.b32.xlu1 %v6605_v10, %s4328_s9  ;;  %2599 = vrot.lane.b32.xlu2 %v6603_v58, %s4328_s9 }
 0x65b   : > { %v6734_v23 = vpop.permute.xlu0 %2463 }
 0x65c   : > { %8458 = vst [vmem:[#allocation149_spill] sm:$0xff] %v6734_v23  ;;  %v6736_v17 = vpop.permute.xlu1 %2485  ;;  %v6738_v20 = vpop.permute.xlu2 %2505 }
 0x661   : > { %2581 = vrot.lane.b32.xlu0 %v6601_v14, %s4327_s8 }
 0x662   : > { %2611 = vrot.lane.b32.xlu1 %v6613_v62, %s4329_s10  ;;  %2609 = vrot.lane.b32.xlu2 %v6601_v14, %s4329_s10 }
 0x663   : > { %v6746_v32 = vpop.permute.xlu0 %2469 }
 0x664   : > { %8459 = vst [vmem:[#allocation150_spill] sm:$0xff] %v6746_v32  ;;  %v6748_v7 = vpop.permute.xlu1 %2491  ;;  %v6750_v13 = vpop.permute.xlu2 %2515 }
 0x669   : > { %2587 = vrot.lane.b32.xlu0 %v6605_v10, %s4327_s8 }
 0x66a   : > { %2625 = vrot.lane.b32.xlu1 %v6603_v58, %s4330_s11  ;;  %2623 = vrot.lane.b32.xlu2 %v6613_v62, %s4330_s11 }
 0x66b   : > { %v6758_v38 = vpop.permute.xlu0 %2471 }
 0x66c   : > { %8460 = vst [vmem:[#allocation151_spill] sm:$0xff] %v6758_v38  ;;  %v6760_v28 = vpop.permute.xlu1 %2501  ;;  %v6762_v18 = vpop.permute.xlu2 %2525 }
 0x671   : > { %2597 = vrot.lane.b32.xlu0 %v6613_v62, %s4328_s9 }
 0x672   : > { %2615 = vrot.lane.b32.xlu1 %v6605_v10, %s4329_s10  ;;  %2629 = vrot.lane.b32.xlu2 %v6624_v22, %s4330_s11 }
 0x673   : > { %v6770_v4 = vpop.permute.xlu0 %2477 }
 0x674   : > { %8461 = vst [vmem:[#allocation152_spill] sm:$0xff] %v6770_v4  ;;  %v6772_v5 = vpop.permute.xlu1 %2511  ;;  %v6774_v37 = vpop.permute.xlu2 %2531 }
 0x679   : > { %2603 = vrot.lane.b32.xlu0 %v6624_v22, %s4328_s9 }
 0x67a   : > { %2896 = vrot.lane.b32.xlu1 %v6605_v10, %s4337_s20  ;;  %2894 = vrot.lane.b32.xlu2 %v6603_v58, %s4337_s20 }
 0x67b   : > { %v6782_v57 = vpop.permute.xlu0 %2487 }
 0x67c   : > { %v6785_v33 = vpop.permute.xlu1 %2517  ;;  %v6787_v45 = vpop.permute.xlu2 %2541 }
 0x67d   : > { %8462 = vst [vmem:[#allocation153_spill] sm:$0xff] %v6785_v33 }
 0x681   : > { %2613 = vrot.lane.b32.xlu0 %v6603_v58, %s4329_s10 }
 0x682   : > { %2909 = vrot.lane.b32.xlu1 %v6789_v34, %s4330_s11  ;;  %2898 = vrot.lane.b32.xlu2 %v6624_v22, %s4337_s20 }
 0x683   : > { %v6797_v44 = vpop.permute.xlu0 %2497 }
 0x684   : > { %8463 = vst [vmem:[#allocation154_spill] sm:$0xff] %v6797_v44  ;;  %v6799_v0 = vpop.permute.xlu1 %2527  ;;  %v6801_v16 = vpop.permute.xlu2 %2547 }
 0x685   : > { %8464 = vst [vmem:[#allocation155_spill] sm:$0xff] %v6801_v16 }
 0x689   : > { %2627 = vrot.lane.b32.xlu0 %v6605_v10, %s4330_s11 }
 0x68a   : > { %2862 = vrot.lane.b32.xlu1 %v6605_v10, %s4335_s16  ;;  %2860 = vrot.lane.b32.xlu2 %v6603_v58, %s4335_s16 }
 0x68b   : > { %v6809_v56 = vpop.permute.xlu0 %2503 }
 0x68c   : > { %v6811_v15 = vpop.permute.xlu1 %2533  ;;  %v6813_v35 = vpop.permute.xlu2 %2557 }
 0x68d   : > { %8465 = vst [vmem:[#allocation156_spill] sm:$0xff] %v6811_v15 }
 0x691   : > { %2892 = vrot.lane.b32.xlu0 %v6613_v62, %s4337_s20 }
 0x692   : > { %2876 = vrot.lane.b32.xlu1 %v6605_v10, %s4336_s17  ;;  %2874 = vrot.lane.b32.xlu2 %v6603_v58, %s4336_s17 }
 0x693   : > { %v6821_v40 = vpop.permute.xlu0 %2513 }
 0x694   : > { %v6823_v8 = vpop.permute.xlu1 %2543  ;;  %v6825_v3 = vpop.permute.xlu2 %2567 }
 0x699   : > { %2617 = vrot.lane.b32.xlu0 %v6624_v22, %s4329_s10 }
 0x69a   : > { %2900 = vrot.lane.b32.xlu1 %v6789_v34, %s4337_s20  ;;  %2878 = vrot.lane.b32.xlu2 %v6624_v22, %s4336_s17 }
 0x69b   : > { %v6833_v41 = vpop.permute.xlu0 %2519 }
 0x69c   : > { %8466 = vst [vmem:[#allocation157_spill] sm:$0xff] %v6833_v41  ;;  %v6835_v4 = vpop.permute.xlu1 %2553  ;;  %v6837_v23 = vpop.permute.xlu2 %2573 }
 0x6a1   : > { %2858 = vrot.lane.b32.xlu0 %v6613_v62, %s4335_s16 }
 0x6a2   : > { %2832 = vrot.lane.b32.xlu1 %v6603_v58, %s4333_s14  ;;  %2830 = vrot.lane.b32.xlu2 %v6613_v62, %s4333_s14 }
 0x6a3   : > { %v6845_v60 = vpop.permute.xlu0 %2529 }
 0x6a4   : > { %v6847_v52 = vpop.permute.xlu1 %2559  ;;  %v6849_v50 = vpop.permute.xlu2 %2583 }
 0x6a9   : > { %2872 = vrot.lane.b32.xlu0 %v6613_v62, %s4336_s17 }
 0x6aa   : > { %2846 = vrot.lane.b32.xlu1 %v6603_v58, %s8467_s24  ;;  %2844 = vrot.lane.b32.xlu2 %v6613_v62, %s8467_s24 }
 0x6ab   : > { %v6857_v36 = vpop.permute.xlu0 %2539 }
 0x6ac   : > { %v6859_v47 = vpop.permute.xlu1 %2569  ;;  %v6861_v55 = vpop.permute.xlu2 %2589 }
 0x6b1   : > { %2864 = vrot.lane.b32.xlu0 %v6624_v22, %s4335_s16 }
 0x6b2   : > { %2850 = vrot.lane.b32.xlu1 %v6624_v22, %s8467_s24  ;;  %2836 = vrot.lane.b32.xlu2 %v6624_v22, %s4333_s14 }
 0x6b3   : > { %v6869_v2 = vpop.permute.xlu0 %2545 }
 0x6b4   : > { %v6871_v21 = vpop.permute.xlu1 %2575  ;;  %v6873_v41 = vpop.permute.xlu2 %2599 }
 0x6b5   : > { %8468 = vst [vmem:[#allocation158_spill] sm:$0xff] %v6871_v21 }
 0x6b9   : > { %2906 = vrot.lane.b32.xlu0 %v6789_v34, %s4329_s10 }
 0x6ba   : > { %2866 = vrot.lane.b32.xlu1 %v6789_v34, %s4335_s16  ;;  %2889 = vrot.lane.b32.xlu2 %v6789_v34, %s4327_s8  ;;  %s4004_s8 = sshll.u32 %s8690_s19, 5 }
 0x6bb   : > { %v6881_v27 = vpop.permute.xlu0 %2555 }
 0x6bc   : > { %v6883_v24 = vpop.permute.xlu1 %2585  ;;  %v2610_v15 = vpop.permute.xlu2 %2609 }
 0x6c1   : > { %2834 = vrot.lane.b32.xlu0 %v6605_v10, %s4333_s14 }
 0x6c2   : > { %2638 = vrot.lane.b32.xlu1 %v6603_v58, %s8469_s25  ;;  %2636 = vrot.lane.b32.xlu2 %v6613_v62, %s8469_s25 }
 0x6c3   : > { %v6891_v6 = vpop.permute.xlu0 %2561 }
 0x6c4   : > { %8470 = vst [vmem:[#allocation159_spill] sm:$0xff] %v6891_v6  ;;  %v6893_v16 = vpop.permute.xlu1 %2595  ;;  %v2624_v63 = vpop.permute.xlu2 %2623 }
 0x6c9   : > { %2848 = vrot.lane.b32.xlu0 %v6605_v10, %s8467_s24 }
 0x6ca   : > { %2838 = vrot.lane.b32.xlu1 %v6789_v34, %s4333_s14  ;;  %2652 = vrot.lane.b32.xlu2 %v6603_v58, %s8471_s28 }
 0x6cb   : > { %v6901_v46 = vpop.permute.xlu0 %2571 }
 0x6cc   : > { %v6903_v26 = vpop.permute.xlu1 %2601  ;;  %v2630_v42 = vpop.permute.xlu2 %2629 }
 0x6d1   : > { %2886 = vrot.lane.b32.xlu0 %v6789_v34, %s4326_s7 }
 0x6d2   : > { %2654 = vrot.lane.b32.xlu1 %v6605_v10, %s8471_s28  ;;  %2640 = vrot.lane.b32.xlu2 %v6605_v10, %s8469_s25 }
 0x6d3   : > { %v6911_v6 = vpop.permute.xlu0 %2581 }
 0x6d4   : > { %v2612_v43 = vpop.permute.xlu1 %2611  ;;  %v2895_v58 = vpop.permute.xlu2 %2894 }
 0x6d5   : > { %v2619_v1 = vsel %vm471_vm10, %v2610_v15, %v2612_v43 }
 0x6d6   : > { %v6915_v49 = vsel %vm520_vm2, %v2619_v1, %v2624_v63 }
 0x6d9   : > { %2880 = vrot.lane.b32.xlu0 %v6789_v34, %s4336_s17 }
 0x6da   : > { %2642 = vrot.lane.b32.xlu1 %v6624_v22, %s8469_s25  ;;  %2827 = vrot.lane.b32.xlu2 %v6789_v34, %s4321_s27 }
 0x6db   : > { %v2588_v30 = vpop.permute.xlu0 %2587 }
 0x6dc   : > { %v2626_v10 = vpop.permute.xlu1 %2625  ;;  %v6933_v19 = vpop.permute.xlu2 %2898 }
 0x6dd   : > { %v2631_v48 = vsel %vm484_vm11, %v2624_v63, %v2626_v10 }
 0x6e1   : > { %2650 = vrot.lane.b32.xlu0 %v6613_v62, %s8471_s28 }
 0x6e2   : > { %2658 = vrot.lane.b32.xlu2 %v6789_v34, %s8471_s28  ;;  %3017 = vrot.lane.b32.xlu1 %v2631_v48, %s4330_s11 }
 0x6e3   : > { %v6929_v1 = vpop.permute.xlu0 %2597 }
 0x6e4   : > { %v2616_v15 = vpop.permute.xlu1 %2615  ;;  %v2861_v59 = vpop.permute.xlu2 %2860 }
 0x6e9   : > { %2852 = vrot.lane.b32.xlu0 %v6789_v34, %s8467_s24 }
 0x6eb   : > { %v6935_v53 = vpop.permute.xlu0 %2603 }
 0x6ec   : > { %8472 = vst [vmem:[#allocation160_spill] sm:$0xff] %v6935_v53  ;;  %v2897_v39 = vpop.permute.xlu1 %2896 }
 0x6ed   : > { %v2903_v44 = vsel %vm763_vm9, %v2895_v58, %v2897_v39 }
 0x6f1   : > { %2824 = vrot.lane.b32.xlu0 %v6789_v34, %s4320_s26 }
 0x6f3   : > { %v2614_v63 = vpop.permute.xlu0 %2613 }
 0x6f4   : > { %v2910_v62 = vpop.permute.xlu1 %2909  ;;  %v2620_v14 = vsel %vm471_vm10, %v2612_v43, %v2614_v63  ;;  %v2621_v29 = vsel %vm471_vm10, %v2614_v63, %v2616_v15 }
 0x6f5   : > { %v2911_v51 = vsel %vm484_vm11, %v2630_v42, %v2910_v62  ;;  %v6942_v54 = vsel %vm520_vm2, %v2620_v14, %v2631_v48  ;;  %v2875_v48 = vpop.permute.xlu2 %2874 }
 0x6f6   : > { %3023 = vrot.lane.b32.xlu1 %v2911_v51, %s4330_s11 }
 0x6f9   : > { %2656 = vrot.lane.b32.xlu0 %v6624_v22, %s8471_s28 }
 0x6fb   : > { %v2628_v53 = vpop.permute.xlu0 %2627 }
 0x6fc   : > { %v2863_v11 = vpop.permute.xlu1 %2862  ;;  %v2632_v9 = vsel %vm484_vm11, %v2626_v10, %v2628_v53  ;;  %v2633_v33 = vsel %vm484_vm11, %v2628_v53, %v2630_v42  ;;  %v6964_v53 = vsel %vm441_vm7, %v6883_v24, %v2588_v30 }
 0x6fd   : > { %v6951_v43 = vsel %vm520_vm2, %v2621_v29, %v2632_v9  ;;  %3021 = vrot.lane.b32.xlu2 %v2633_v33, %s4330_s11  ;;  %v6959_v10 = vpop.permute.xlu2 %2878 }
 0x701   : > { %2644 = vrot.lane.b32.xlu0 %v6789_v34, %s8469_s25  ;;  %v6969_v34 = vsel %vm426_vm8, %v6901_v46, %v6837_v23 }
 0x703   : > { %v2893_v62 = vpop.permute.xlu0 %2892 }
 0x704   : > { %v2877_v51 = vpop.permute.xlu1 %2876  ;;  %v2902_v22 = vsel %vm763_vm9, %v2893_v62, %v2895_v58  ;;  %v7003_v58 = vsel %vm441_vm7, %v2588_v30, %v6861_v55 }
 0x705   : > { %v2949_v63 = vsel %vm520_vm2, %v2902_v22, %v2620_v14  ;;  %v2904_v22 = vsel %vm763_vm9, %v2897_v39, %v6933_v19  ;;  %v6999_v39 = vsel %vm441_vm7, %v6849_v50, %v6883_v24 }
 0x706   : > { %3009 = vrot.lane.b32.xlu1 %v2949_v63, %s4330_s11  ;;  %v2943_v63 = vsel %vm520_vm2, %v6969_v34, %v6964_v53 }
 0x709   : > { %3019 = vrot.lane.b32.xlu0 %v2632_v9, %s4330_s11 }
 0x70b   : > { %v2618_v31 = vpop.permute.xlu0 %2617 }
 0x70c   : > { %v2901_v32 = vpop.permute.xlu1 %2900  ;;  %v2622_v62 = vsel %vm471_vm10, %v2616_v15, %v2618_v31  ;;  %v6973_v14 = vsel %vm520_vm2, %v2618_v31, %v2630_v42  ;;  %v2951_v42 = vsel %vm520_vm2, %v2903_v44, %v2621_v29  ;;  %v2831_v15 = vpop.permute.xlu2 %2830 }
 0x70d   : > { %8473 = vst [vmem:[#allocation161_spill] sm:$0xff] %v6973_v14  ;;  %v6978_v9 = vsel %vm520_vm2, %v2622_v62, %v2633_v33  ;;  %v2953_v38 = vsel %vm520_vm2, %v2904_v22, %v2622_v62  ;;  %v2883_v33 = vsel %vm8475_vm1, %v2875_v48, %v2877_v51  ;;  %v6993_v14 = vsel %vm426_vm8, %v6859_v47, %v6901_v46  ;;  %vm8483_vm1 = vmmov %vm8480_vm12 }
 0x70e   : > { %8474 = vst [vmem:[#allocation162_spill] sm:$0xff] %v6978_v9  ;;  %3003 = vrot.lane.b32.xlu1 %v2943_v63, %s4330_s11  ;;  %3013 = vrot.lane.b32.xlu2 %v2953_v38, %s4330_s11  ;;  %v2869_v63 = vsel %vm8476_vm3, %v2861_v59, %v2863_v11  ;;  %v2942_v46 = vsel %vm520_vm2, %v6993_v14, %v6999_v39  ;;  %vm8484_vm3 = vmmov %vm8483_vm1 }
 0x70f   : > { %v2935_v29 = vsel %vm520_vm2, %v2869_v63, %v2883_v33  ;;  %v7013_v38 = vsel %vm426_vm8, %v6837_v23, %v6871_v21 }
 0x710   : > { %8477 = vst [vmem:[#allocation163_spill] sm:$0xff] %v7013_v38  ;;  %v2944_v30 = vsel %vm520_vm2, %v7013_v38, %v7003_v58  ;;  %v2884_v38 = vsel %vm8481_vm13, %v2877_v51, %v6959_v10  ;;  %vm8492_vm13 = vcmask 441344  }
 0x711   : > { %3011 = vrot.lane.b32.xlu0 %v2951_v42, %s4330_s11 }
 0x713   : > { %v2859_v9 = vpop.permute.xlu0 %2858 }
 0x714   : > { %v2833_v62 = vpop.permute.xlu1 %2832  ;;  %v2845_v44 = vpop.permute.xlu2 %2844  ;;  %v2868_v22 = vsel %vm8478_vm5, %v2859_v9, %v2861_v59 }
 0x715   : > { %v2840_v63 = vsel %vm697_vm4, %v2831_v15, %v2833_v62  ;;  %v2905_v15 = vsel %vm763_vm9, %v6933_v19, %v2901_v32  ;;  %vm8485_vm9 = vcmask 982016  }
 0x716   : > { %2995 = vrot.lane.b32.xlu1 %v2935_v29, %s4330_s11  ;;  %3001 = vrot.lane.b32.xlu2 %v2942_v46, %s4330_s11 }
 0x719   : > { %3005 = vrot.lane.b32.xlu0 %v2944_v30, %s4330_s11 }
 0x71b   : > { %v2873_v24 = vpop.permute.xlu0 %2872 }
 0x71c   : > { %v2847_v42 = vpop.permute.xlu1 %2846  ;;  %v2882_v33 = vsel %vm8479_vm6, %v2873_v24, %v2875_v48 }
 0x71d   : > { %v2854_v23 = vsel %vm8480_vm12, %v2845_v44, %v2847_v42  ;;  %v2932_v29 = vsel %vm520_vm2, %v2868_v22, %v2882_v33  ;;  %v2837_v22 = vpop.permute.xlu2 %2836  ;;  %vm8488_vm12 = vmmov %vm8485_vm9 }
 0x71e   : > { %v2920_v46 = vsel %vm520_vm2, %v2840_v63, %v2854_v23  ;;  %2993 = vrot.lane.b32.xlu2 %v2932_v29, %s4330_s11 }
 0x71f   : > { %2985 = vrot.lane.b32.xlu1 %v2920_v46, %s4330_s11 }
 0x723   : > { %v2865_v30 = vpop.permute.xlu0 %2864 }
 0x724   : > { %v2870_v59 = vsel %vm8482_vm15, %v2863_v11, %v2865_v30  ;;  %v2851_v33 = vpop.permute.xlu1 %2850  ;;  %vm8493_vm15 = vcmask 506880  }
 0x725   : > { %v2938_v48 = vsel %vm520_vm2, %v2870_v59, %v2884_v38  ;;  %v2890_v51 = vpop.permute.xlu2 %2889  ;;  %v7049_v59 = vsel %vm8485_vm9, %v6736_v17, %v6782_v57 }
 0x726   : > { %2997 = vrot.lane.b32.xlu0 %v2938_v48, %s4330_s11 }
 0x72b   : > { %v2907_v9 = vpop.permute.xlu0 %2906 }
 0x72c   : > { %v2908_v24 = vsel %vm471_vm10, %v2618_v31, %v2907_v9  ;;  %v2867_v19 = vpop.permute.xlu1 %2866  ;;  %v7059_v9 = vsel %vm351_vm0, %v6726_v25, %v6760_v28  ;;  %vm8486_vm10 = vmmov %vm8485_vm9 }
 0x72d   : > { %v2956_v44 = vsel %vm520_vm2, %v2905_v15, %v2908_v24  ;;  %v7064_v15 = vsel %vm8486_vm10, %v6782_v57, %v6714_v12  ;;  %v2891_v24 = vsel %vm441_vm7, %v6861_v55, %v2890_v51  ;;  %v7083_v51 = vsel %vm351_vm0, %v6809_v56, %v6738_v20  ;;  %vm8500_vm9 = vmmov %vm8493_vm15 }
 0x72e   : > { %3015 = vrot.lane.b32.xlu2 %v2956_v44, %s4330_s11  ;;  %8487 = vst [vmem:[#allocation164_spill] sm:$0xff] %v7083_v51 }
 0x733   : > { %v2835_v63 = vpop.permute.xlu0 %2834 }
 0x734   : > { %v2841_v11 = vsel %vm697_vm4, %v2833_v62, %v2835_v63  ;;  %v2842_v38 = vsel %vm697_vm4, %v2835_v63, %v2837_v22  ;;  %v7054_v62 = vsel %vm351_vm0, %v6760_v28, %v6809_v56  ;;  %v2912_v28 = vsel %vm520_vm2, %v7049_v59, %v7059_v9  ;;  %v2639_v57 = vpop.permute.xlu1 %2638 }
 0x735   : > { %v2913_v63 = vsel %vm520_vm2, %v7064_v15, %v7054_v62 }
 0x73b   : > { %v2849_v23 = vpop.permute.xlu0 %2848 }
 0x73c   : > { %v2855_v29 = vsel %vm8483_vm1, %v2847_v42, %v2849_v23  ;;  %v2856_v46 = vsel %vm8484_vm3, %v2849_v23, %v2851_v33  ;;  %v2637_v42 = vpop.permute.xlu2 %2636  ;;  %v2839_v56 = vpop.permute.xlu1 %2838  ;;  %vm8496_vm3 = vmmov %vm8492_vm13 }
 0x73d   : > { %v2926_v31 = vsel %vm520_vm2, %v2842_v38, %v2856_v46  ;;  %v2923_v32 = vsel %vm520_vm2, %v2841_v11, %v2855_v29  ;;  %v2871_v29 = vsel %vm8478_vm5, %v2865_v30, %v2867_v19  ;;  %vm8508_vm5 = vcmask 916480  }
 0x73e   : > { %2989 = vrot.lane.b32.xlu2 %v2926_v31, %s4330_s11  ;;  %2987 = vrot.lane.b32.xlu0 %v2923_v32, %s4330_s11  ;;  %v7091_v31 = vsel %vm8488_vm12, %v6714_v12, %v6748_v7  ;;  %vm8512_vm12 = vmmov %vm8500_vm9 }
 0x73f   : > { %8489 = vst [vmem:[#allocation165_spill] sm:$0xff] %v7091_v31 }
 0x743   : > { %v2887_v48 = vpop.permute.xlu0 %2886 }
 0x744   : > { %v2888_v44 = vsel %vm426_vm8, %v6871_v21, %v2887_v48  ;;  %v2653_v38 = vpop.permute.xlu2 %2652  ;;  %v2914_v48 = vsel %vm520_vm2, %v7091_v31, %v7083_v51  ;;  %v7112_v51 = vpop.permute.xlu1 %2654  ;;  %v8495_v21 = vld [vmem:[#allocation97_spill] sm:$0xff] }
 0x745   : > { %v2947_v23 = vsel %vm520_vm2, %v2888_v44, %v2891_v24 }
 0x746   : > { %2979 = vrot.lane.b32.xlu2 %v2913_v63, %s4330_s11  ;;  %2977 = vrot.lane.b32.xlu0 %v2912_v28, %s4330_s11  ;;  %v8490_v63 = vld [vmem:[#allocation103_spill] sm:$0xff] }
 0x747   : > { %3007 = vrot.lane.b32.xlu1 %v2947_v23, %s4330_s11  ;;  %v8491_v23 = vld [vmem:[#allocation106_spill] sm:$0xff] }
 0x74b   : > { %v2881_v11 = vpop.permute.xlu0 %2880 }
 0x74c   : > { %v2885_v46 = vsel %vm8479_vm6, %v6959_v10, %v2881_v11  ;;  %v7100_v44 = vpop.permute.xlu2 %2640 }
 0x74d   : > { %v2941_v32 = vsel %vm520_vm2, %v2871_v29, %v2885_v46  ;;  %v2646_v29 = vsel %vm8492_vm13, %v2637_v42, %v2639_v57  ;;  %v3133_v46 = vunpack.c.l.bf16 %v6915_v49  ;;  %vm8517_vm13 = vcmask 965632  }
 0x74e   : > { %2999 = vrot.lane.b32.xlu0 %v2941_v32, %s4330_s11  ;;  %v3138_v32 = vunpack.c.h.bf16 %v6915_v49 }
 0x74f   : > { %2981 = vrot.lane.b32.xlu1 %v2914_v48, %s4330_s11 }
 0x753   : > { %v2651_v30 = vpop.permute.xlu0 %2650 }
 0x754   : > { %v2806_v19 = vsel %vm520_vm2, %v2637_v42, %v2651_v30  ;;  %v2660_v12 = vsel %vm515_vm14, %v2651_v30, %v2653_v38 }
 0x755   : > { %v3143_v10 = vunpack.c.l.bf16 %v2806_v19  ;;  %v3148_v24 = vunpack.c.h.bf16 %v2806_v19  ;;  %v2810_v48 = vsel %vm520_vm2, %v2646_v29, %v2660_v12  ;;  %v2605_v19 = vsel %vm8493_vm15, %v6893_v16, %v6929_v1 }
 0x756   : > { %v3149_v42 = vunpack.c.h.bf16 %v2810_v48  ;;  %v3273_v12 = vmul.f32 %v8495_v21, %v3138_v32  ;;  %v8498_v21 = vld [vmem:[#allocation109_spill] sm:$0xff] }
 0x757   : > { %v3278_v28 = vmul.f32 %v8490_v63, %v3143_v10  ;;  %v3283_v11 = vmul.f32 %v8491_v23, %v3148_v24  ;;  %v2843_v10 = vsel %vm697_vm4, %v2837_v22, %v2839_v56  ;;  %v3144_v24 = vunpack.c.l.bf16 %v2810_v48  ;;  %v8494_v23 = vld [vmem:[#allocation99_spill] sm:$0xff] }
 0x758   : > { %v3268_v49 = vmul.f32 %v8494_v23, %v3133_v46  ;;  %v2647_v22 = vsel %vm8496_vm3, %v2639_v57, %v7100_v44  ;;  %v8497_v56 = vld [vmem:[#allocation107_spill] sm:$0xff]  ;;  %v3284_v46 = vmul.f32 %v3149_v42, %v8498_v21  ;;  %v3134_v57 = vunpack.c.l.bf16 %v6942_v54  ;;  %v8506_v21 = vld [vmem:[#allocation108_spill] sm:$0xff] }
 0x759   : > { %v3378_v31 = vpack.c.bf16 %v3283_v11, %v3278_v28  ;;  %v2591_v28 = vsel %vm441_vm7, %v6911_v6, %v6849_v50  ;;  %v3279_v29 = vmul.f32 %v3144_v24, %v8497_v56  ;;  %vm8499_vm7 = vcmask 900096   ;;  %v8504_v56 = vld [vmem:[#allocation100_spill] sm:$0xff] }
 0x75a   : > { %v2766_v11 = vsel %vm520_vm2, %v2591_v28, %v2605_v19  ;;  %v3373_v50 = vpack.c.bf16 %v3273_v12, %v3268_v49  ;;  %v2563_v19 = vsel %vm8499_vm7, %v6835_v4, %v6881_v27  ;;  %v8501_v49 = vld [vmem:[#allocation32_spill] sm:$0xff]  ;;  %v8502_v28 = vld [vmem:[#allocation9_spill] sm:$0xff]  ;;  %vm8511_vm6 = vmmov %vm8499_vm7 }
 0x75b   : > { %3561 = vrot.lane.b32.xlu0 %v3378_v31, %s4333_s14  ;;  %v2853_v30 = vpop.permute.xlu0 %2852  ;;  %v2661_v31 = vsel %vm515_vm14, %v2653_v38, %v7112_v51  ;;  %v3123_v32 = vunpack.c.l.bf16 %v2766_v11  ;;  %v3128_v48 = vunpack.c.h.bf16 %v2766_v11  ;;  %v2606_v38 = vsel %vm8500_vm9, %v6929_v1, %v6873_v41  ;;  %vm8521_vm3 = vmmov %vm8511_vm6 }
 0x75c   : > { %v2857_v63 = vsel %vm8483_vm1, %v2851_v33, %v2853_v30  ;;  %v2828_v33 = vpop.permute.xlu2 %2827  ;;  %v2814_v6 = vsel %vm520_vm2, %v2647_v22, %v2661_v31  ;;  %v3139_v30 = vunpack.c.h.bf16 %v6942_v54  ;;  %v3379_v4 = vpack.c.bf16 %v3284_v46, %v3279_v29  ;;  %v8503_v22 = vld [vmem:[#allocation101_spill] sm:$0xff]  ;;  %vm8520_vm1 = vmmov %vm8508_vm5 }
 0x75d   : > { %v2929_v16 = vsel %vm520_vm2, %v2843_v10, %v2857_v63  ;;  %v2829_v10 = vsel %vm351_vm0, %v6738_v20, %v2828_v33  ;;  %v3145_v42 = vunpack.c.l.bf16 %v2814_v6  ;;  %v3150_v63 = vunpack.c.h.bf16 %v2814_v6  ;;  %vm8526_vm7 = vmmov %vm8517_vm13 }
 0x75e   : > { %2991 = vrot.lane.b32.xlu2 %v2929_v16, %s4330_s11  ;;  %v2577_v1 = vsel %vm426_vm8, %v6825_v3, %v6859_v47  ;;  %v3258_v12 = vmul.f32 %v8501_v49, %v3123_v32  ;;  %v3263_v54 = vmul.f32 %v8502_v28, %v3128_v48  ;;  %v2770_v31 = vsel %vm520_vm2, %v6999_v39, %v2606_v38  ;;  %v8505_v47 = vld [vmem:[#allocation105_spill] sm:$0xff]  ;;  %v8513_v49 = vld [vmem:[#allocation118_spill] sm:$0xff]  ;;  %v8514_v28 = vld [vmem:[#allocation36_spill] sm:$0xff] }
 0x75f   : > { %v2746_v11 = vsel %vm520_vm2, %v2563_v19, %v2577_v1  ;;  %v3269_v33 = vmul.f32 %v3134_v57, %v8503_v22  ;;  %v3274_v29 = vmul.f32 %v3139_v30, %v8504_v56  ;;  %v3280_v3 = vmul.f32 %v3145_v42, %v8505_v47  ;;  %v8509_v42 = vld [vmem:[#allocation50_spill] sm:$0xff] }
 0x760   : > { %v3285_v46 = vmul.f32 %v3150_v63, %v8506_v21  ;;  %v3113_v32 = vunpack.c.l.bf16 %v2746_v11  ;;  %v3118_v48 = vunpack.c.h.bf16 %v2746_v11  ;;  %v3368_v6 = vpack.c.bf16 %v3263_v54, %v3258_v12 }
 0x761   : > { %vm8507_vm8 = vcmask 908288   ;;  %v3124_v19 = vunpack.c.l.bf16 %v2770_v31  ;;  %v3135_v39 = vunpack.c.l.bf16 %v6951_v43  ;;  %v3140_v38 = vunpack.c.h.bf16 %v6951_v43 }
 0x762   : > { %v3374_v57 = vpack.c.bf16 %v3274_v29, %v3269_v33  ;;  %v3380_v30 = vpack.c.bf16 %v3285_v46, %v3280_v3  ;;  %v3248_v63 = vmul.f32 %v8509_v42, %v3113_v32  ;;  %v2564_v1 = vsel %vm8511_vm6, %v6881_v27, %v6813_v35  ;;  %vm8518_vm15 = vmmov %vm8507_vm8  ;;  %v8523_v42 = vld [vmem:[#allocation41_spill] sm:$0xff] }
 0x763   : > { %3551 = vrot.lane.b32.xlu0 %v3373_v50, %s4333_s14  ;;  %v2825_v24 = vpop.permute.xlu0 %2824  ;;  %v2549_v50 = vsel %vm8507_vm8, %v6857_v36, %v6787_v45  ;;  %v2607_v43 = vsel %vm8512_vm12, %v6873_v41, %v6903_v26  ;;  %v3259_v12 = vmul.f32 %v3124_v19, %v8513_v49  ;;  %v2522_v41 = vsel %vm8517_vm13, %v6821_v40, %v6750_v13  ;;  %vm8545_vm12 = vmmov %vm8526_vm7 }
 0x764   : > { %v2826_v23 = vsel %vm8486_vm10, %v6748_v7, %v2825_v24  ;;  %v2535_v24 = vsel %vm8508_vm5, %v6762_v18, %v6799_v0  ;;  %v2750_v18 = vsel %vm520_vm2, %v2564_v1, %v6993_v14  ;;  %v2774_v56 = vsel %vm520_vm2, %v6964_v53, %v2607_v43  ;;  %v7188_v47 = vpop.permute.xlu2 %2658  ;;  %vm8531_vm10 = vmmov %vm8520_vm1 }
 0x765   : > { %v2917_v16 = vsel %vm520_vm2, %v2826_v23, %v2829_v10  ;;  %v3129_v10 = vunpack.c.h.bf16 %v2770_v31  ;;  %v8510_v23 = vld [vmem:[#allocation121_spill] sm:$0xff]  ;;  %v2726_v36 = vsel %vm520_vm2, %v2535_v24, %v2549_v50  ;;  %v8516_v31 = vld [vmem:[#allocation110_spill] sm:$0xff]  ;;  %v2551_v14 = vsel %vm8518_vm15, %v6823_v8, %v6869_v2  ;;  %v8519_v50 = vld [vmem:[#allocation64_spill] sm:$0xff] }
 0x766   : > { %3563 = vrot.lane.b32.xlu2 %v3379_v4, %s4333_s14  ;;  %2983 = vrot.lane.b32.xlu1 %v2917_v16, %s4330_s11  ;;  %v3253_v4 = vmul.f32 %v8510_v23, %v3118_v48  ;;  %v8515_v16 = vld [vmem:[#allocation112_spill] sm:$0xff]  ;;  %v3275_v22 = vmul.f32 %v3140_v38, %v8516_v31  ;;  %v3103_v27 = vunpack.c.l.bf16 %v2726_v36  ;;  %v3108_v33 = vunpack.c.h.bf16 %v2726_v36  ;;  %s224_s11 = scalar_lea.vmem %s7799_s5, %s4004_s8 }
 0x767   : > { %v3264_v54 = vmul.f32 %v3129_v10, %v8514_v28  ;;  %v3270_v11 = vmul.f32 %v3135_v39, %v8515_v16  ;;  %v3114_v3 = vunpack.c.l.bf16 %v2750_v18  ;;  %v3119_v21 = vunpack.c.h.bf16 %v2750_v18 }
 0x768   : > { %v3363_v29 = vpack.c.bf16 %v3253_v4, %v3248_v63  ;;  %v3125_v46 = vunpack.c.l.bf16 %v2774_v56  ;;  %v3130_v32 = vunpack.c.h.bf16 %v2774_v56  ;;  %v3238_v53 = vmul.f32 %v5615_v61, %v3103_v27  ;;  %v8525_v4 = vld [vmem:[#allocation29_spill] sm:$0xff] }
 0x769   : > { %v3369_v48 = vpack.c.bf16 %v3264_v54, %v3259_v12  ;;  %v3243_v19 = vmul.f32 %v8519_v50, %v3108_v33  ;;  %v2710_v10 = vsel %vm520_vm2, %v7059_v9, %v2522_v41  ;;  %v2537_v39 = vsel %vm8520_vm1, %v6845_v60, %v6774_v37  ;;  %v8524_v9 = vld [vmem:[#allocation48_spill] sm:$0xff]  ;;  %v2643_v12 = vpop.permute.xlu1 %2642  ;;  %v8535_v50 = vld [vmem:[#allocation51_spill] sm:$0xff] }
 0x76a   : > { %v2734_v61 = vsel %vm520_vm2, %v2537_v39, %v2551_v14  ;;  %v3254_v63 = vmul.f32 %v3119_v21, %v8523_v42  ;;  %v3260_v23 = vmul.f32 %v3125_v46, %v8524_v9  ;;  %v3265_v36 = vmul.f32 %v3130_v32, %v8525_v4  ;;  %v8532_v46 = vld [vmem:[#allocation18_spill] sm:$0xff] }
 0x76b   : > { %3541 = vrot.lane.b32.xlu0 %v3368_v6, %s4333_s14  ;;  %v3375_v6 = vpack.c.bf16 %v3275_v22, %v3270_v11  ;;  %v2657_v38 = vpop.permute.xlu0 %2656  ;;  %v3094_v1 = vunpack.c.l.bf16 %v2710_v10  ;;  %v3099_v43 = vunpack.c.h.bf16 %v2710_v10  ;;  %v3358_v49 = vpack.c.bf16 %v3243_v19, %v3238_v53 }
 0x76c   : > { %v7216_v28 = vpop.permute.xlu2 %3021  ;;  %v3105_v54 = vunpack.c.l.bf16 %v2734_v61  ;;  %v3110_v16 = vunpack.c.h.bf16 %v2734_v61  ;;  %v2662_v11 = vsel %vm515_vm14, %v7112_v51, %v2657_v38  ;;  %v3370_v33 = vpack.c.bf16 %v3265_v36, %v3260_v23 }
 0x76d   : > { %vm8529_vm9 = vcmask 441344   ;;  %v2536_v51 = vsel %vm8531_vm10, %v6799_v0, %v6845_v60  ;;  %v2550_v21 = vsel %vm8507_vm8, %v6787_v45, %v6823_v8  ;;  %v8537_v8 = vld [vmem:[#allocation150_spill] sm:$0xff]  ;;  %vm8543_vm6 = vcmask 982016   ;;  %vm8629_vm10 = vmmov %vm8507_vm8 }
 0x76e   : > { %3553 = vrot.lane.b32.xlu2 %v3374_v57, %s4333_s14  ;;  %3565 = vrot.lane.b32.xlu1 %v3380_v30, %s4333_s14  ;;  %v2565_v57 = vsel %vm8521_vm3, %v6813_v35, %v6847_v52  ;;  %v8522_v30 = vld [vmem:[#allocation68_spill] sm:$0xff]  ;;  %v2521_v35 = vsel %vm8526_vm7, %v6772_v5, %v6821_v40  ;;  %v2648_v14 = vsel %vm8529_vm9, %v7100_v44, %v2643_v12  ;;  %v8530_v40 = vld [vmem:[#allocation154_spill] sm:$0xff]  ;;  %vm8539_vm5 = vmmov %vm8529_vm9  ;;  %vm8562_vm15 = vcmask 1039360  }
 0x76f   : > { %v3249_v24 = vmul.f32 %v3114_v3, %v8522_v30  ;;  %v2754_v18 = vsel %vm520_vm2, %v2565_v57, %v6969_v34  ;;  %v8527_v34 = vld [vmem:[#allocation129_spill] sm:$0xff]  ;;  %v2507_v5 = vsel %vm351_vm0, %v8530_v40, %v6726_v25  ;;  %v2818_v3 = vsel %vm520_vm2, %v2648_v14, %v2662_v11  ;;  %v8536_v30 = vld [vmem:[#allocation151_spill] sm:$0xff]  ;;  %vm8564_vm1 = vmmov %vm8562_vm15 }
 0x770   : > { %v3115_v31 = vunpack.c.l.bf16 %v2754_v18  ;;  %v3120_v22 = vunpack.c.h.bf16 %v2754_v18  ;;  %v3229_v56 = vmul.f32 %v3094_v1, %v8527_v34  ;;  %v2706_v44 = vsel %vm520_vm2, %v2507_v5, %v2521_v35  ;;  %v8548_v34 = vld [vmem:[#allocation26_spill] sm:$0xff]  ;;  %vm8576_vm3 = vmmov %vm8564_vm1 }
 0x771   : > { %v3364_v27 = vpack.c.bf16 %v3254_v63, %v3249_v24  ;;  %v3240_v32 = vmul.f32 %v3105_v54, %v8532_v46  ;;  %v2730_v19 = vsel %vm520_vm2, %v2536_v51, %v2550_v21  ;;  %v3146_v10 = vunpack.c.l.bf16 %v2818_v3  ;;  %v8542_v54 = vld [vmem:[#allocation144_spill] sm:$0xff] }
 0x772   : > { %v3255_v60 = vmul.f32 %v3120_v22, %v8535_v50  ;;  %v3151_v39 = vunpack.c.h.bf16 %v2818_v3  ;;  %vm8538_vm0 = vcmask 1031168   ;;  %v3093_v24 = vunpack.c.l.bf16 %v2706_v44 }
 0x773   : > { %3531 = vrot.lane.b32.xlu0 %v3363_v29, %s4333_s14  ;;  %v8528_v29 = vld [vmem:[#allocation61_spill] sm:$0xff]  ;;  %v2645_v0 = vpop.permute.xlu0 %2644  ;;  %v2479_v45 = vsel %vm8538_vm0, %v8537_v8, %v8536_v30  ;;  %v3098_v42 = vunpack.c.h.bf16 %v2706_v44  ;;  %v3104_v9 = vunpack.c.l.bf16 %v2730_v19  ;;  %v3109_v23 = vunpack.c.h.bf16 %v2730_v19  ;;  %vm8555_vm13 = vmmov %vm8538_vm0  ;;  %v8557_v8 = vld [vmem:[#allocation87_spill] sm:$0xff] }
 0x774   : > { %v3234_v41 = vmul.f32 %v3099_v43, %v8528_v29  ;;  %v7246_v61 = vpop.permute.xlu2 %3013  ;;  %v2649_v63 = vsel %vm8539_vm5, %v2643_v12, %v2645_v0  ;;  %v2663_v1 = vsel %vm515_vm14, %v2657_v38, %v7188_v47  ;;  %v8540_v43 = vld [vmem:[#allocation5_spill] sm:$0xff]  ;;  %v8546_v38 = vld [vmem:[#allocation76_spill] sm:$0xff]  ;;  %vm8552_vm14 = vmmov %vm8538_vm0  ;;  %vm8578_vm7 = vcmask 506880  }
 0x775   : > { %v3281_v18 = vmul.f32 %v3146_v10, %v8540_v43  ;;  %v2822_v11 = vsel %vm520_vm2, %v2649_v63, %v2663_v1  ;;  %v3228_v22 = vmul.f32 %v8546_v38, %v3093_v24  ;;  %v8549_v29 = vld [vmem:[#allocation16_spill] sm:$0xff]  ;;  %v8560_v43 = vld [vmem:[#allocation147_spill] sm:$0xff]  ;;  %vm8624_vm9 = vcmask 900096   ;;  %vm8650_vm0 = vmmov %vm8545_vm12 }
 0x776   : > { %3543 = vrot.lane.b32.xlu2 %v3369_v48, %s4333_s14  ;;  %3555 = vrot.lane.b32.xlu1 %v3375_v6, %s4333_s14  ;;  %v8533_v48 = vld [vmem:[#allocation25_spill] sm:$0xff]  ;;  %v8534_v6 = vld [vmem:[#allocation122_spill] sm:$0xff]  ;;  %v3354_v57 = vpack.c.bf16 %v3234_v41, %v3229_v56  ;;  %v3239_v56 = vmul.f32 %v3104_v9, %v8548_v34  ;;  %v3147_v14 = vunpack.c.l.bf16 %v2822_v11  ;;  %v3152_v40 = vunpack.c.h.bf16 %v2822_v11  ;;  %vm8667_vm5 = vmmov %vm8555_vm13 }
 0x777   : > { %v3245_v25 = vmul.f32 %v3110_v16, %v8533_v48  ;;  %v3250_v53 = vmul.f32 %v3115_v31, %v8534_v6  ;;  %v2493_v16 = vsel %vm8543_vm6, %v8542_v54, %v6736_v17  ;;  %v8544_v31 = vld [vmem:[#allocation153_spill] sm:$0xff]  ;;  %v3244_v17 = vmul.f32 %v3109_v23, %v8549_v29  ;;  %v8550_v48 = vld [vmem:[#allocation148_spill] sm:$0xff]  ;;  %v8565_v11 = vld [vmem:[#allocation162_spill] sm:$0xff] }
 0x778   : > { %v2686_v12 = vsel %vm520_vm2, %v2479_v45, %v2493_v16  ;;  %v2523_v47 = vsel %vm8545_vm12, %v6750_v13, %v8544_v31  ;;  %v8559_v9 = vld [vmem:[#allocation77_spill] sm:$0xff]  ;;  %v8568_v29 = vld [vmem:[#allocation4_spill] sm:$0xff]  ;;  %vm8636_vm8 = vcmask 916480  }
 0x779   : > { %v3365_v4 = vpack.c.bf16 %v3255_v60, %v3250_v53  ;;  %v3360_v36 = vpack.c.bf16 %v3245_v25, %v3240_v32  ;;  %v2714_v41 = vsel %vm520_vm2, %v7054_v62, %v2523_v47  ;;  %v3083_v51 = vunpack.c.l.bf16 %v2686_v12  ;;  %v8551_v25 = vld [vmem:[#allocation143_spill] sm:$0xff]  ;;  %v8554_v62 = vld [vmem:[#allocation38_spill] sm:$0xff] }
 0x77a   : > { %v3088_v3 = vunpack.c.h.bf16 %v2686_v12  ;;  %v3095_v21 = vunpack.c.l.bf16 %v2714_v41  ;;  %v3100_v13 = vunpack.c.h.bf16 %v2714_v41  ;;  %v3359_v46 = vpack.c.bf16 %v3244_v17, %v3239_v56  ;;  %v8553_v53 = vld [vmem:[#allocation67_spill] sm:$0xff] }
 0x77b   : > { %3521 = vrot.lane.b32.xlu0 %v3358_v49, %s4333_s14  ;;  %v8541_v49 = vld [vmem:[#allocation70_spill] sm:$0xff]  ;;  %v2481_v6 = vsel %vm8552_vm14, %v8551_v25, %v8550_v48  ;;  %v3282_v50 = vmul.f32 %v8553_v53, %v3147_v14  ;;  %v3287_v60 = vmul.f32 %v8554_v62, %v3152_v40  ;;  %v7281_v0 = vpop.permute.xlu0 %3019  ;;  %v2480_v10 = vsel %vm8555_vm13, %v8536_v30, %v8551_v25  ;;  %v8569_v41 = vld [vmem:[#allocation131_spill] sm:$0xff]  ;;  %v8574_v53 = vld [vmem:[#allocation161_spill] sm:$0xff] }
 0x77c   : > { %v3286_v35 = vmul.f32 %v3151_v39, %v8541_v49  ;;  %v7274_v44 = vpop.permute.xlu2 %3001  ;;  %v2694_v19 = vsel %vm520_vm2, %v2481_v6, %v7064_v15  ;;  %v8556_v39 = vld [vmem:[#allocation89_spill] sm:$0xff]  ;;  %v3223_v45 = vmul.f32 %v8557_v8, %v3088_v3  ;;  %v2690_v24 = vsel %vm520_vm2, %v2480_v10, %v7049_v59  ;;  %v7296_v15 = vpop.permute.xlu1 %3017  ;;  %v8563_v49 = vld [vmem:[#allocation142_spill] sm:$0xff]  ;;  %v8571_v3 = vld [vmem:[#allocation91_spill] sm:$0xff] }
 0x77d   : > { %v3235_v23 = vmul.f32 %v3100_v13, %v8559_v9  ;;  %v3382_v1 = vpack.c.bf16 %v3287_v60, %v3282_v50  ;;  %v3084_v54 = vunpack.c.l.bf16 %v2690_v24  ;;  %v3089_v16 = vunpack.c.h.bf16 %v2690_v24  ;;  %v8572_v13 = vld [vmem:[#allocation113_spill] sm:$0xff] }
 0x77e   : > { %3533 = vrot.lane.b32.xlu2 %v3364_v27, %s4333_s14  ;;  %3545 = vrot.lane.b32.xlu1 %v3370_v33, %s4333_s14  ;;  %v8547_v27 = vld [vmem:[#allocation123_spill] sm:$0xff]  ;;  %v3381_v5 = vpack.c.bf16 %v3286_v35, %v3281_v18  ;;  %v8561_v18 = vld [vmem:[#allocation145_spill] sm:$0xff]  ;;  %v2466_v35 = vsel %vm8564_vm1, %v8560_v43, %v8563_v49  ;;  %v3136_v12 = vunpack.c.l.bf16 %v8565_v11  ;;  %v3141_v47 = vunpack.c.h.bf16 %v8565_v11 }
 0x77f   : > { %v3233_v33 = vmul.f32 %v8547_v27, %v3098_v42  ;;  %v8558_v42 = vld [vmem:[#allocation133_spill] sm:$0xff]  ;;  %v2465_v30 = vsel %vm8562_vm15, %v8561_v18, %v8560_v43  ;;  %v2670_v14 = vsel %vm520_vm2, %v8569_v41, %v2466_v35  ;;  %v3137_v50 = vunpack.c.l.bf16 %v8574_v53 }
 0x780   : > { %v3230_v63 = vmul.f32 %v3095_v21, %v8558_v42  ;;  %v2666_v17 = vsel %vm520_vm2, %v8568_v29, %v2465_v30  ;;  %v3224_v21 = vmul.f32 %v3089_v16, %v8571_v3  ;;  %v3142_v62 = vunpack.c.h.bf16 %v8574_v53  ;;  %v8581_v43 = vld [vmem:[#allocation69_spill] sm:$0xff]  ;;  %v8584_v16 = vld [vmem:[#allocation80_spill] sm:$0xff] }
 0x781   : > { %v3353_v32 = vpack.c.bf16 %v3233_v33, %v3228_v22  ;;  %v8566_v22 = vld [vmem:[#allocation94_spill] sm:$0xff]  ;;  %v8567_v33 = vld [vmem:[#allocation92_spill] sm:$0xff]  ;;  %v3078_v8 = vunpack.c.h.bf16 %v2666_v17 }
 0x782   : > { %v3355_v38 = vpack.c.bf16 %v3235_v23, %v3230_v63  ;;  %v8577_v63 = vld [vmem:[#allocation160_spill] sm:$0xff]  ;;  %v8579_v23 = vld [vmem:[#allocation117_spill] sm:$0xff] }
 0x783   : > { %3513 = vrot.lane.b32.xlu0 %v3354_v57, %s4333_s14  ;;  %v3218_v57 = vmul.f32 %v8556_v39, %v3083_v51  ;;  %v7317_v40 = vpop.permute.xlu0 %3011  ;;  %v3073_v39 = vunpack.c.l.bf16 %v2666_v17  ;;  %v2608_v9 = vsel %vm8578_vm7, %v6903_v26, %v8577_v63  ;;  %v3213_v11 = vmul.f32 %v8584_v16, %v3078_v8  ;;  %v8585_v26 = vld [vmem:[#allocation84_spill] sm:$0xff] }
 0x784   : > { %v7309_v56 = vpop.permute.xlu2 %2993  ;;  %v7323_v6 = vpop.permute.xlu1 %3023 }
 0x785   : > { %v3348_v59 = vpack.c.bf16 %v3223_v45, %v3218_v57  ;;  %v3074_v57 = vunpack.c.l.bf16 %v2670_v14  ;;  %v3079_v45 = vunpack.c.h.bf16 %v2670_v14 }
 0x786   : > { %3535 = vrot.lane.b32.xlu2 %v3365_v4, %s4333_s14  ;;  %3525 = vrot.lane.b32.xlu1 %v3360_v36, %s4333_s14  ;;  %v3085_v4 = vunpack.c.l.bf16 %v2694_v19  ;;  %v3090_v36 = vunpack.c.h.bf16 %v2694_v19  ;;  %v8575_v19 = vld [vmem:[#allocation146_spill] sm:$0xff] }
 0x787   : > { %v2467_v10 = vsel %vm8576_vm3, %v8563_v49, %v8575_v19  ;;  %v8582_v49 = vld [vmem:[#allocation79_spill] sm:$0xff] }
 0x788   : > { %v3220_v27 = vmul.f32 %v3085_v4, %v8566_v22  ;;  %v3225_v34 = vmul.f32 %v3090_v36, %v8567_v33  ;;  %v3272_v4 = vmul.f32 %v8579_v23, %v3137_v50  ;;  %v8580_v36 = vld [vmem:[#allocation115_spill] sm:$0xff]  ;;  %v2674_v18 = vsel %vm520_vm2, %v8581_v43, %v2467_v10  ;;  %v8589_v50 = vld [vmem:[#allocation74_spill] sm:$0xff] }
 0x789   : > { %v3208_v35 = vmul.f32 %v8582_v49, %v3073_v39  ;;  %v3075_v22 = vunpack.c.l.bf16 %v2674_v18  ;;  %v2782_v33 = vsel %vm520_vm2, %v6861_v55, %v8577_v63  ;;  %v8591_v39 = vld [vmem:[#allocation37_spill] sm:$0xff]  ;;  %v3183_v23 = vunpack.c.l.bf16 %v7274_v44 }
 0x78a   : > { %v3350_v60 = vpack.c.bf16 %v3225_v34, %v3220_v27  ;;  %v3080_v27 = vunpack.c.h.bf16 %v2674_v18  ;;  %v3127_v14 = vunpack.c.l.bf16 %v2782_v33  ;;  %v8593_v18 = vld [vmem:[#allocation20_spill] sm:$0xff] }
 0x78b   : > { %3567 = vrot.lane.b32.xlu0 %v3381_v5, %s4333_s14  ;;  %v8570_v5 = vld [vmem:[#allocation93_spill] sm:$0xff]  ;;  %v7353_v34 = vpop.permute.xlu0 %3005 }
 0x78c   : > { %v3219_v51 = vmul.f32 %v3084_v54, %v8570_v5  ;;  %v7338_v30 = vpop.permute.xlu2 %3015  ;;  %v8583_v54 = vld [vmem:[#allocation82_spill] sm:$0xff]  ;;  %v3132_v5 = vunpack.c.h.bf16 %v2782_v33 }
 0x78e   : > { %3523 = vrot.lane.b32.xlu2 %v3359_v46, %s4333_s14  ;;  %3511 = vrot.lane.b32.xlu1 %v3353_v32, %s4333_s14  ;;  %v3271_v46 = vmul.f32 %v3136_v12, %v8572_v13  ;;  %v8573_v32 = vld [vmem:[#allocation104_spill] sm:$0xff]  ;;  %v3349_v42 = vpack.c.bf16 %v3224_v21, %v3219_v51  ;;  %v3214_v12 = vmul.f32 %v3079_v45, %v8585_v26  ;;  %v8587_v13 = vld [vmem:[#allocation81_spill] sm:$0xff] }
 0x78f   : > { %v3276_v25 = vmul.f32 %v3141_v47, %v8573_v32  ;;  %v2778_v47 = vsel %vm520_vm2, %v7003_v58, %v2608_v9  ;;  %v3343_v51 = vpack.c.bf16 %v3213_v11, %v3208_v35  ;;  %v8586_v58 = vld [vmem:[#allocation83_spill] sm:$0xff]  ;;  %v3040_v32 = vsel %vm484_vm11, %v7296_v15, %v7281_v0  ;;  %v8594_v35 = vld [vmem:[#allocation125_spill] sm:$0xff] }
 0x790   : > { %v3126_v17 = vunpack.c.l.bf16 %v2778_v47  ;;  %v3131_v41 = vunpack.c.h.bf16 %v2778_v47  ;;  %v3210_v21 = vmul.f32 %v3075_v22, %v8586_v58  ;;  %v3204_v8 = vunpack.c.l.bf16 %v3040_v32 }
 0x791   : > { %v3376_v24 = vpack.c.bf16 %v3276_v25, %v3271_v46  ;;  %v3215_v46 = vmul.f32 %v3080_v27, %v8587_v13  ;;  %v8588_v25 = vld [vmem:[#allocation96_spill] sm:$0xff]  ;;  %v3203_v9 = vunpack.c.l.bf16 %v7296_v15  ;;  %v3207_v22 = vunpack.c.l.bf16 %v7323_v6 }
 0x792   : > { %v3261_v53 = vmul.f32 %v3126_v17, %v8588_v25  ;;  %v3202_v17 = vunpack.c.h.bf16 %v7338_v30  ;;  %v3042_v58 = vsel %vm484_vm11, %v7216_v28, %v7323_v6  ;;  %v8600_v25 = vld [vmem:[#allocation72_spill] sm:$0xff] }
 0x793   : > { %3569 = vrot.lane.b32.xlu0 %v3382_v1, %s4333_s14  ;;  %v3277_v1 = vmul.f32 %v8580_v36, %v3142_v62  ;;  %v3266_v62 = vmul.f32 %v3131_v41, %v8589_v50  ;;  %v3338_v49 = vmul.f32 %v8593_v18, %v3203_v9 }
 0x795   : > { %v3377_v29 = vpack.c.bf16 %v3277_v1, %v3272_v4  ;;  %v3371_v63 = vpack.c.bf16 %v3266_v62, %v3261_v53  ;;  %v3188_v4 = vunpack.c.h.bf16 %v7274_v44  ;;  %v8592_v1 = vld [vmem:[#allocation14_spill] sm:$0xff]  ;;  %v3408_v27 = vpack.c.bf16 %v3338_v49, %v3338_v49  ;;  %v8604_v49 = vld [vmem:[#allocation21_spill] sm:$0xff] }
 0x796   : > { %3501 = vrot.lane.b32.xlu2 %v3348_v59, %s4333_s14  ;;  %3515 = vrot.lane.b32.xlu1 %v3355_v38, %s4333_s14  ;;  %v3209_v59 = vmul.f32 %v3074_v57, %v8583_v54  ;;  %v7348_v38 = vpop.permute.xlu1 %3009  ;;  %v3267_v57 = vmul.f32 %v8591_v39, %v3132_v5  ;;  %v3339_v43 = vmul.f32 %v3204_v8, %v8592_v1  ;;  %v3206_v62 = vunpack.c.l.bf16 %v3042_v58 }
 0x797   : > { %v3318_v54 = vmul.f32 %v8594_v35, %v3183_v23  ;;  %v3193_v15 = vunpack.c.l.bf16 %v7348_v38  ;;  %v3198_v26 = vunpack.c.h.bf16 %v7348_v38  ;;  %v3337_v53 = vmul.f32 %v8600_v25, %v3202_v17  ;;  %v8601_v23 = vld [vmem:[#allocation22_spill] sm:$0xff] }
 0x798   : > { %v3344_v3 = vpack.c.bf16 %v3214_v12, %v3209_v59  ;;  %v7361_v55 = vpop.permute.xlu2 %2989  ;;  %v7369_v45 = vpop.permute.xlu0 %2997  ;;  %v8595_v59 = vld [vmem:[#allocation124_spill] sm:$0xff]  ;;  %v3409_v12 = vpack.c.bf16 %v3339_v43, %v3339_v43  ;;  %v3037_v6 = vsel %vm484_vm11, %v7348_v38, %v7317_v40  ;;  %v8602_v38 = vld [vmem:[#allocation13_spill] sm:$0xff]  ;;  %v3038_v1 = vsel %vm484_vm11, %v7317_v40, %v7246_v61  ;;  %v8605_v40 = vld [vmem:[#allocation7_spill] sm:$0xff] }
 0x799   : > { %v3323_v16 = vmul.f32 %v8595_v59, %v3188_v4  ;;  %v3341_v4 = vmul.f32 %v3206_v62, %v8601_v23  ;;  %v8603_v43 = vld [vmem:[#allocation120_spill] sm:$0xff] }
 0x79b   : > { %3505 = vrot.lane.b32.xlu0 %v3350_v60, %s4333_s14  ;;  %v8590_v60 = vld [vmem:[#allocation34_spill] sm:$0xff]  ;;  %v3398_v41 = vpack.c.bf16 %v3323_v16, %v3318_v54  ;;  %v3411_v59 = vpack.c.bf16 %v3341_v4, %v3341_v4 }
 0x79c   : > { %v3262_v10 = vmul.f32 %v8590_v60, %v3127_v14  ;;  %v8596_v14 = vld [vmem:[#allocation119_spill] sm:$0xff]  ;;  %v3041_v60 = vsel %vm484_vm11, %v7281_v0, %v7216_v28 }
 0x79d   : > { %v3328_v5 = vmul.f32 %v8596_v14, %v3193_v15  ;;  %v3205_v8 = vunpack.c.l.bf16 %v3041_v60  ;;  %v8606_v14 = vld [vmem:[#allocation44_spill] sm:$0xff] }
 0x79e   : > { %3557 = vrot.lane.b32.xlu2 %v3376_v24, %s4333_s14  ;;  %3503 = vrot.lane.b32.xlu1 %v3349_v42, %s4333_s14  ;;  %v3345_v24 = vpack.c.bf16 %v3215_v46, %v3210_v21  ;;  %v7371_v42 = vpop.permute.xlu1 %3003  ;;  %v3372_v36 = vpack.c.bf16 %v3267_v57, %v3262_v10  ;;  %v8598_v21 = vld [vmem:[#allocation39_spill] sm:$0xff] }
 0x79f   : > { %v3342_v13 = vmul.f32 %v8598_v21, %v3207_v22  ;;  %v8599_v46 = vld [vmem:[#allocation59_spill] sm:$0xff]  ;;  %v3195_v22 = vunpack.c.l.bf16 %v3038_v1 }
 0x7a0   : > { %v7383_v11 = vpop.permute.xlu2 %2979 }
 0x7a1   : > { %v3412_v39 = vpack.c.bf16 %v3342_v13, %v3342_v13  ;;  %v8608_v13 = vld [vmem:[#allocation45_spill] sm:$0xff] }
 0x7a3   : > { %3559 = vrot.lane.b32.xlu0 %v3377_v29, %s4333_s14  ;;  %v3197_v29 = vunpack.c.l.bf16 %v7338_v30 }
 0x7a5   : > { %v3332_v32 = vmul.f32 %v8599_v46, %v3197_v29 }
 0x7a6   : > { %3491 = vrot.lane.b32.xlu2 %v3343_v51, %s4333_s14  ;;  %3493 = vrot.lane.b32.xlu1 %v3344_v3, %s4333_s14  ;;  %v7391_v33 = vpop.permute.xlu1 %2995  ;;  %v8597_v51 = vld [vmem:[#allocation71_spill] sm:$0xff] }
 0x7a7   : > { %v3333_v3 = vmul.f32 %v8597_v51, %v3198_v26  ;;  %v3407_v9 = vpack.c.bf16 %v3337_v53, %v3332_v32  ;;  %v3031_v28 = vsel %vm484_vm11, %v7309_v56, %v7391_v33  ;;  %v3173_v26 = vunpack.c.l.bf16 %v7309_v56  ;;  %v8609_v32 = vld [vmem:[#allocation28_spill] sm:$0xff]  ;;  %v8610_v53 = vld [vmem:[#allocation27_spill] sm:$0xff] }
 0x7a8   : > { %v3174_v16 = vunpack.c.l.bf16 %v3031_v28  ;;  %v3179_v15 = vunpack.c.h.bf16 %v3031_v28  ;;  %v3330_v25 = vmul.f32 %v3195_v22, %v8609_v32 }
 0x7a9   : > { %v3403_v10 = vpack.c.bf16 %v3333_v3, %v3328_v5 }
 0x7aa   : > { %v3314_v5 = vmul.f32 %v3179_v15, %v8606_v14  ;;  %v8614_v15 = vld [vmem:[#allocation127_spill] sm:$0xff] }
 0x7ab   : > { %3495 = vrot.lane.b32.xlu0 %v3345_v24, %s4333_s14  ;;  %v3194_v24 = vunpack.c.l.bf16 %v3037_v6 }
 0x7ad   : > { %v3329_v18 = vmul.f32 %v3194_v24, %v8603_v43 }
 0x7ae   : > { %3547 = vrot.lane.b32.xlu2 %v3371_v63, %s4333_s14  ;;  %3549 = vrot.lane.b32.xlu1 %v3372_v36, %s4333_s14  ;;  %v3199_v63 = vunpack.c.h.bf16 %v3037_v6  ;;  %v2986_v0 = vpop.permute.xlu1 %2985  ;;  %v3340_v36 = vmul.f32 %v3205_v8, %v8602_v38  ;;  %v8611_v38 = vld [vmem:[#allocation57_spill] sm:$0xff] }
 0x7af   : > { %v3163_v4 = vunpack.c.l.bf16 %v2986_v0  ;;  %v3168_v28 = vunpack.c.h.bf16 %v2986_v0 }
 0x7b0   : > { %v7387_v47 = vpop.permute.xlu0 %2987  ;;  %v3334_v35 = vmul.f32 %v3199_v63, %v8604_v49  ;;  %v3410_v29 = vpack.c.bf16 %v3340_v36, %v3340_v36 }
 0x7b1   : > { %v3028_v3 = vsel %vm484_vm11, %v2986_v0, %v7387_v47  ;;  %v3029_v49 = vsel %vm484_vm11, %v7387_v47, %v7361_v55  ;;  %v3034_v0 = vsel %vm484_vm11, %v7274_v44, %v7371_v42 }
 0x7b2   : > { %v3404_v17 = vpack.c.bf16 %v3334_v35, %v3329_v18  ;;  %v3169_v8 = vunpack.c.h.bf16 %v3028_v3  ;;  %v3170_v14 = vunpack.c.h.bf16 %v3029_v49 }
 0x7b3   : > { %3623 = vrot.lane.b32.xlu0 %v3409_v12, %s4333_s14  ;;  %v3178_v12 = vunpack.c.h.bf16 %v7309_v56  ;;  %v8607_v56 = vld [vmem:[#allocation46_spill] sm:$0xff] }
 0x7b4   : > { %v3308_v21 = vmul.f32 %v8607_v56, %v3173_v26 }
 0x7b5   : > { %v3313_v46 = vmul.f32 %v8608_v13, %v3178_v12  ;;  %v8615_v12 = vld [vmem:[#allocation8_spill] sm:$0xff] }
 0x7b6   : > { %3601 = vrot.lane.b32.xlu2 %v3398_v41, %s4333_s14  ;;  %3621 = vrot.lane.b32.xlu1 %v3408_v27, %s4333_s14  ;;  %v3200_v27 = vunpack.c.h.bf16 %v3038_v1  ;;  %v3309_v41 = vmul.f32 %v3174_v16, %v8605_v40  ;;  %v8612_v1 = vld [vmem:[#allocation60_spill] sm:$0xff]  ;;  %v3298_v22 = vmul.f32 %v8615_v12, %v3163_v4  ;;  %v3032_v40 = vsel %vm484_vm11, %v7391_v33, %v7369_v45  ;;  %v8626_v12 = vld [vmem:[#allocation102_spill] sm:$0xff] }
 0x7b7   : > { %v3393_v63 = vpack.c.bf16 %v3313_v46, %v3308_v21  ;;  %v3304_v43 = vmul.f32 %v3169_v8, %v8612_v1  ;;  %v3175_v56 = vunpack.c.l.bf16 %v3032_v40  ;;  %v3180_v21 = vunpack.c.h.bf16 %v3032_v40  ;;  %v8617_v46 = vld [vmem:[#allocation111_spill] sm:$0xff] }
 0x7b8   : > { %v7405_v50 = vpop.permute.xlu2 %2991  ;;  %v7413_v57 = vpop.permute.xlu0 %2977  ;;  %v3335_v62 = vmul.f32 %v3200_v27, %v8610_v53  ;;  %v3394_v6 = vpack.c.bf16 %v3314_v5, %v3309_v41  ;;  %v8616_v27 = vld [vmem:[#allocation10_spill] sm:$0xff]  ;;  %v3165_v41 = vunpack.c.l.bf16 %v3029_v49  ;;  %v3189_v5 = vunpack.c.h.bf16 %v3034_v0  ;;  %v8623_v49 = vld [vmem:[#allocation159_spill] sm:$0xff] }
 0x7b9   : > { %v7439_v58 = vpop.permute.xlu1 %3007  ;;  %v3303_v47 = vmul.f32 %v8616_v27, %v3168_v28  ;;  %v8627_v27 = vld [vmem:[#allocation65_spill] sm:$0xff] }
 0x7ba   : > { %v3405_v24 = vpack.c.bf16 %v3335_v62, %v3330_v25  ;;  %v3300_v32 = vmul.f32 %v3165_v41, %v8617_v46  ;;  %v8618_v25 = vld [vmem:[#allocation55_spill] sm:$0xff]  ;;  %v3036_v1 = vsel %vm484_vm11, %v7353_v34, %v7439_v58  ;;  %v8633_v46 = vld [vmem:[#allocation53_spill] sm:$0xff] }
 0x7bb   : > { %3611 = vrot.lane.b32.xlu0 %v3403_v10, %s4333_s14  ;;  %v3035_v10 = vsel %vm484_vm11, %v7371_v42, %v7353_v34  ;;  %v3184_v42 = vunpack.c.l.bf16 %v3034_v0  ;;  %v3388_v13 = vpack.c.bf16 %v3303_v47, %v3298_v22  ;;  %v3305_v53 = vmul.f32 %v3170_v14, %v8618_v25  ;;  %v8628_v41 = vld [vmem:[#allocation155_spill] sm:$0xff]  ;;  %v8634_v25 = vld [vmem:[#allocation98_spill] sm:$0xff] }
 0x7bc   : > { %v3190_v23 = vunpack.c.h.bf16 %v3035_v10  ;;  %v3191_v34 = vunpack.c.h.bf16 %v3036_v1  ;;  %v2552_v14 = vsel %vm8629_vm10, %v6869_v2, %v8628_v41  ;;  %v3025_v2 = vsel %vm484_vm11, %v7413_v57, %v7383_v11 }
 0x7be   : > { %3619 = vrot.lane.b32.xlu2 %v3407_v9, %s4333_s14  ;;  %3629 = vrot.lane.b32.xlu1 %v3412_v39, %s4333_s14  ;;  %v3164_v39 = vunpack.c.l.bf16 %v3028_v3  ;;  %v3185_v9 = vunpack.c.l.bf16 %v3035_v10  ;;  %v3325_v26 = vmul.f32 %v3190_v23, %v8614_v15  ;;  %v8622_v23 = vld [vmem:[#allocation56_spill] sm:$0xff] }
 0x7bf   : > { %v3315_v4 = vmul.f32 %v3180_v21, %v8622_v23  ;;  %v8632_v21 = vld [vmem:[#allocation31_spill] sm:$0xff] }
 0x7c0   : > { %v7428_v54 = vpop.permute.xlu2 %3563  ;;  %v7435_v51 = vpop.permute.xlu0 %2999  ;;  %v3299_v36 = vmul.f32 %v3164_v39, %v8611_v38  ;;  %v8620_v39 = vld [vmem:[#allocation126_spill] sm:$0xff] }
 0x7c1   : > { %v3324_v8 = vmul.f32 %v3189_v5, %v8620_v39 }
 0x7c2   : > { %v3389_v44 = vpack.c.bf16 %v3304_v43, %v3299_v36  ;;  %v3390_v36 = vpack.c.bf16 %v3305_v53, %v3300_v32  ;;  %v3153_v43 = vunpack.c.l.bf16 %v7413_v57  ;;  %v3326_v53 = vmul.f32 %v3191_v34, %v8634_v25 }
 0x7c3   : > { %3627 = vrot.lane.b32.xlu0 %v3411_v59, %s4333_s14  ;;  %v8613_v59 = vld [vmem:[#allocation128_spill] sm:$0xff] }
 0x7c4   : > { %v3320_v16 = vmul.f32 %v3185_v9, %v8613_v59  ;;  %v3288_v22 = vmul.f32 %v8626_v12, %v3153_v43  ;;  %v8637_v43 = vld [vmem:[#allocation30_spill] sm:$0xff]  ;;  %v8642_v12 = vld [vmem:[#allocation52_spill] sm:$0xff] }
 0x7c6   : > { %3625 = vrot.lane.b32.xlu1 %v3410_v29, %s4333_s14  ;;  %3613 = vrot.lane.b32.xlu2 %v3404_v17, %s4333_s14  ;;  %v7469_v29 = vpop.permute.xlu1 %2981  ;;  %v3400_v3 = vpack.c.bf16 %v3325_v26, %v3320_v16  ;;  %v3186_v26 = vunpack.c.l.bf16 %v3036_v1 }
 0x7c8   : > { %v7447_v60 = vpop.permute.xlu2 %3553  ;;  %v3321_v32 = vmul.f32 %v3186_v26, %v8633_v46  ;;  %v8641_v26 = vld [vmem:[#allocation43_spill] sm:$0xff] }
 0x7cb   : > { %3593 = vrot.lane.b32.xlu0 %v3394_v6, %s4333_s14  ;;  %v8619_v6 = vld [vmem:[#allocation130_spill] sm:$0xff] }
 0x7cc   : > { %v3319_v10 = vmul.f32 %v3184_v42, %v8619_v6 }
 0x7cd   : > { %v3562_v18 = vpop.permute.xlu0 %3561 }
 0x7ce   : > { %v3659_v35 = vsel %vm697_vm4, %v3562_v18, %v7428_v54  ;;  %3591 = vrot.lane.b32.xlu1 %v3393_v63, %s4333_s14  ;;  %3615 = vrot.lane.b32.xlu2 %v3405_v24, %s4333_s14  ;;  %v3039_v24 = vsel %vm484_vm11, %v7246_v61, %v7338_v30  ;;  %v8621_v63 = vld [vmem:[#allocation132_spill] sm:$0xff]  ;;  %v3158_v18 = vunpack.c.h.bf16 %v7413_v57  ;;  %v2566_v61 = vsel %vm8624_vm9, %v6847_v52, %v8623_v49  ;;  %v8625_v30 = vld [vmem:[#allocation158_spill] sm:$0xff] }
 0x7cf   : > { %3754 = vmatpush.bf16.msra.mxu3 %v3659_v35  ;;  %v3310_v9 = vmul.f32 %v3175_v56, %v8621_v63  ;;  %v2762_v35 = vsel %vm520_vm2, %v8623_v49, %v8625_v30  ;;  %v3399_v0 = vpack.c.bf16 %v3324_v8, %v3319_v10  ;;  %v3196_v59 = vunpack.c.l.bf16 %v3039_v24  ;;  %v8635_v8 = vld [vmem:[#allocation156_spill] sm:$0xff] }
 0x7d0   : > { %v7471_v17 = vpop.permute.xlu2 %3543  ;;  %v3201_v16 = vunpack.c.h.bf16 %v3039_v24  ;;  %v3293_v47 = vmul.f32 %v8627_v27, %v3158_v18  ;;  %v3117_v5 = vunpack.c.l.bf16 %v2762_v35  ;;  %v3122_v6 = vunpack.c.h.bf16 %v2762_v35  ;;  %v8638_v49 = vld [vmem:[#allocation12_spill] sm:$0xff] }
 0x7d1   : > { %v3395_v15 = vpack.c.bf16 %v3315_v4, %v3310_v9  ;;  %v2538_v24 = vsel %vm8636_vm8, %v6774_v37, %v8635_v8  ;;  %v3154_v4 = vunpack.c.l.bf16 %v3025_v2  ;;  %v3401_v57 = vpack.c.bf16 %v3326_v53, %v3321_v32 }
 0x7d2   : > { %v3383_v39 = vpack.c.bf16 %v3293_v47, %v3288_v22  ;;  %v2738_v63 = vsel %vm520_vm2, %v2538_v24, %v2552_v14  ;;  %v3252_v18 = vmul.f32 %v8637_v43, %v3117_v5  ;;  %v3026_v14 = vsel %vm484_vm11, %v7383_v11, %v7469_v29  ;;  %v8644_v5 = vld [vmem:[#allocation35_spill] sm:$0xff] }
 0x7d3   : > { %3583 = vrot.lane.b32.xlu0 %v3389_v44, %s4333_s14  ;;  %v8630_v44 = vld [vmem:[#allocation163_spill] sm:$0xff]  ;;  %v3106_v30 = vunpack.c.l.bf16 %v2738_v63  ;;  %v3111_v35 = vunpack.c.h.bf16 %v2738_v63  ;;  %v3289_v34 = vmul.f32 %v3154_v4, %v8641_v26  ;;  %v3155_v32 = vunpack.c.l.bf16 %v3026_v14 }
 0x7d4   : > { %v2758_v42 = vsel %vm520_vm2, %v2566_v61, %v8630_v44  ;;  %v8643_v44 = vld [vmem:[#allocation23_spill] sm:$0xff]  ;;  %v3160_v25 = vunpack.c.h.bf16 %v3026_v14  ;;  %v8655_v14 = vld [vmem:[#allocation58_spill] sm:$0xff] }
 0x7d5   : > { %v3552_v62 = vpop.permute.xlu0 %3551  ;;  %v3116_v9 = vunpack.c.l.bf16 %v2758_v42  ;;  %v3121_v23 = vunpack.c.h.bf16 %v2758_v42  ;;  %v3241_v42 = vmul.f32 %v3106_v30, %v8643_v44  ;;  %v8652_v30 = vld [vmem:[#allocation63_spill] sm:$0xff] }
 0x7d6   : > { %3581 = vrot.lane.b32.xlu1 %v3388_v13, %s4333_s14  ;;  %3605 = vrot.lane.b32.xlu2 %v3400_v3, %s4333_s14  ;;  %v3655_v33 = vsel %vm697_vm4, %v3552_v62, %v7447_v60  ;;  %v8631_v3 = vld [vmem:[#allocation73_spill] sm:$0xff]  ;;  %v3336_v13 = vmul.f32 %v3201_v16, %v8632_v21  ;;  %v3187_v21 = vunpack.c.l.bf16 %v7439_v58 }
 0x7d7   : > { %3755 = vmatpush.bf16.msra.mxu3 %v3655_v33  ;;  %v3331_v56 = vmul.f32 %v3196_v59, %v8631_v3  ;;  %v8640_v16 = vld [vmem:[#allocation49_spill] sm:$0xff]  ;;  %v3246_v3 = vmul.f32 %v3111_v35, %v8644_v5 }
 0x7d8   : > { %v7490_v28 = vpop.permute.xlu2 %3533  ;;  %v7492_v38 = vpop.permute.xlu1 %2983 }
 0x7d9   : > { %v3406_v1 = vpack.c.bf16 %v3336_v13, %v3331_v56  ;;  %v3192_v13 = vunpack.c.h.bf16 %v7439_v58 }
 0x7db   : > { %3585 = vrot.lane.b32.xlu0 %v3390_v36, %s4333_s14  ;;  %v3159_v36 = vunpack.c.h.bf16 %v3025_v2  ;;  %v8645_v2 = vld [vmem:[#allocation116_spill] sm:$0xff] }
 0x7dd   : > { %v3542_v40 = vpop.permute.xlu0 %3541  ;;  %v3294_v22 = vmul.f32 %v3159_v36, %v8642_v12  ;;  %v8648_v36 = vld [vmem:[#allocation15_spill] sm:$0xff] }
 0x7de   : > { %3603 = vrot.lane.b32.xlu1 %v3399_v0, %s4333_s14  ;;  %3595 = vrot.lane.b32.xlu2 %v3395_v15, %s4333_s14  ;;  %v3651_v52 = vsel %vm697_vm4, %v3542_v40, %v7471_v17  ;;  %v8639_v0 = vld [vmem:[#allocation134_spill] sm:$0xff]  ;;  %v3256_v15 = vmul.f32 %v3121_v23, %v8640_v16 }
 0x7df   : > { %3756 = vmatpush.bf16.msra.mxu3 %v3651_v52  ;;  %v3251_v59 = vmul.f32 %v3116_v9, %v8639_v0  ;;  %v3384_v46 = vpack.c.bf16 %v3294_v22, %v3289_v34  ;;  %v3361_v9 = vpack.c.bf16 %v3246_v3, %v3241_v42  ;;  %v8647_v23 = vld [vmem:[#allocation54_spill] sm:$0xff]  ;;  %v8653_v34 = vld [vmem:[#allocation164_spill] sm:$0xff]  ;;  %v8656_v3 = vld [vmem:[#allocation11_spill] sm:$0xff] }
 0x7e0   : > { %v7521_v62 = vpop.permute.xlu2 %3535  ;;  %v7523_v33 = vpop.permute.xlu1 %3565  ;;  %v3290_v4 = vmul.f32 %v3155_v32, %v8647_v23 }
 0x7e1   : > { %v3660_v10 = vsel %vm697_vm4, %v7428_v54, %v7523_v33  ;;  %v3257_v54 = vmul.f32 %v8638_v49, %v3122_v6  ;;  %v3366_v56 = vpack.c.bf16 %v3256_v15, %v3251_v59  ;;  %v3182_v15 = vunpack.c.h.bf16 %v7435_v51 }
 0x7e2   : > { %3780 = vmatpush.bf16.msra.mxu2 %v3660_v10  ;;  %v3322_v10 = vmul.f32 %v8645_v2, %v3187_v21  ;;  %v8657_v21 = vld [vmem:[#allocation136_spill] sm:$0xff] }
 0x7e3   : > { %3571 = vrot.lane.b32.xlu0 %v3383_v39, %s4333_s14  ;;  %v3367_v52 = vpack.c.bf16 %v3257_v54, %v3252_v18  ;;  %v8646_v39 = vld [vmem:[#allocation114_spill] sm:$0xff]  ;;  %v8649_v18 = vld [vmem:[#allocation157_spill] sm:$0xff] }
 0x7e4   : > { %v3327_v58 = vmul.f32 %v8646_v39, %v3192_v13  ;;  %v2524_v49 = vsel %vm8650_vm0, %v8544_v31, %v8649_v18  ;;  %v2722_v54 = vsel %vm520_vm2, %v6738_v20, %v8649_v18  ;;  %v3648_v20 = vsel %vm697_vm4, %v7490_v28, %v7521_v62 }
 0x7e5   : > { %v3532_v61 = vpop.permute.xlu0 %3531  ;;  %v2742_v31 = vsel %vm520_vm2, %v8635_v8, %v8628_v41  ;;  %v2718_v12 = vsel %vm520_vm2, %v8653_v34, %v2524_v49  ;;  %v3097_v22 = vunpack.c.l.bf16 %v2722_v54  ;;  %v3317_v41 = vmul.f32 %v8657_v21, %v3182_v15  ;;  %v8669_v34 = vld [vmem:[#allocation62_spill] sm:$0xff]  ;;  %v8673_v21 = vld [vmem:[#allocation3_spill] sm:$0xff] }
 0x7e6   : > { %3617 = vrot.lane.b32.xlu1 %v3406_v1, %s4333_s14  ;;  %3607 = vrot.lane.b32.xlu2 %v3401_v57, %s4333_s14  ;;  %v3647_v37 = vsel %vm697_vm4, %v3532_v61, %v7490_v28  ;;  %v3295_v1 = vmul.f32 %v3160_v25, %v8648_v36  ;;  %v3033_v57 = vsel %vm484_vm11, %v7369_v45, %v7435_v51  ;;  %v8651_v61 = vld [vmem:[#allocation135_spill] sm:$0xff]  ;;  %v3096_v32 = vunpack.c.l.bf16 %v2718_v12 }
 0x7e7   : > { %3757 = vmatpush.bf16.msra.mxu3 %v3647_v37  ;;  %v3176_v45 = vunpack.c.l.bf16 %v3033_v57  ;;  %v3181_v0 = vunpack.c.h.bf16 %v3033_v57  ;;  %v3402_v59 = vpack.c.bf16 %v3327_v58, %v3322_v10  ;;  %v3101_v25 = vunpack.c.h.bf16 %v2718_v12 }
 0x7e8   : > { %v3524_v27 = vpop.permute.xlu2 %3523  ;;  %v3556_v47 = vpop.permute.xlu1 %3555  ;;  %v3385_v16 = vpack.c.bf16 %v3295_v1, %v3290_v4  ;;  %v8662_v4 = vld [vmem:[#allocation40_spill] sm:$0xff]  ;;  %v8663_v1 = vld [vmem:[#allocation139_spill] sm:$0xff] }
 0x7e9   : > { %v3656_v40 = vsel %vm697_vm4, %v7447_v60, %v3556_v47  ;;  %v3030_v60 = vsel %vm484_vm11, %v7361_v55, %v7405_v50  ;;  %v3316_v44 = vmul.f32 %v3181_v0, %v8655_v14  ;;  %v3231_v36 = vmul.f32 %v3096_v32, %v8662_v4  ;;  %v8666_v0 = vld [vmem:[#allocation152_spill] sm:$0xff]  ;;  %v8670_v14 = vld [vmem:[#allocation165_spill] sm:$0xff] }
 0x7ea   : > { %3781 = vmatpush.bf16.msra.mxu2 %v3656_v40  ;;  %v3166_v6 = vunpack.c.l.bf16 %v3030_v60  ;;  %v3171_v24 = vunpack.c.h.bf16 %v3030_v60  ;;  %v8654_v40 = vld [vmem:[#allocation137_spill] sm:$0xff]  ;;  %v3107_v60 = vunpack.c.l.bf16 %v2742_v31  ;;  %v3236_v57 = vmul.f32 %v3101_v25, %v8663_v1 }
 0x7eb   : > { %3539 = vrot.lane.b32.xlu0 %v3367_v52, %s4333_s14  ;;  %v3311_v52 = vmul.f32 %v3176_v45, %v8654_v40 }
 0x7ec   : > { %v3301_v37 = vmul.f32 %v3166_v6, %v8651_v61  ;;  %v3306_v35 = vmul.f32 %v3171_v24, %v8652_v30  ;;  %v8659_v6 = vld [vmem:[#allocation24_spill] sm:$0xff]  ;;  %v3162_v61 = vunpack.c.h.bf16 %v7492_v38  ;;  %v8664_v30 = vld [vmem:[#allocation149_spill] sm:$0xff] }
 0x7ed   : > { %v3522_v11 = vpop.permute.xlu0 %3521  ;;  %v3396_v10 = vpack.c.bf16 %v3316_v44, %v3311_v52  ;;  %v8671_v44 = vld [vmem:[#allocation19_spill] sm:$0xff] }
 0x7ee   : > { %3537 = vrot.lane.b32.xlu1 %v3366_v56, %s4333_s14  ;;  %3573 = vrot.lane.b32.xlu2 %v3384_v46, %s4333_s14  ;;  %v3643_v53 = vsel %vm697_vm4, %v3522_v11, %v3524_v27  ;;  %v3391_v5 = vpack.c.bf16 %v3306_v35, %v3301_v37  ;;  %v3112_v46 = vunpack.c.h.bf16 %v2742_v31  ;;  %v8658_v11 = vld [vmem:[#allocation17_spill] sm:$0xff]  ;;  %v3297_v12 = vmul.f32 %v8669_v34, %v3162_v61  ;;  %v8684_v34 = vld [vmem:[#allocation88_spill] sm:$0xff] }
 0x7ef   : > { %3758 = vmatpush.bf16.msra.mxu3 %v3643_v53  ;;  %v3232_v53 = vmul.f32 %v8658_v11, %v3097_v22  ;;  %v8665_v35 = vld [vmem:[#allocation141_spill] sm:$0xff] }
 0x7f0   : > { %v7564_v63 = vpop.permute.xlu2 %3501  ;;  %v7566_v55 = vpop.permute.xlu1 %3545  ;;  %v2682_v45 = vsel %vm520_vm2, %v8665_v35, %v8664_v30  ;;  %v8682_v35 = vld [vmem:[#allocation78_spill] sm:$0xff] }
 0x7f1   : > { %v3652_v43 = vsel %vm697_vm4, %v7471_v17, %v7566_v55  ;;  %v3177_v17 = vunpack.c.l.bf16 %v7435_v51  ;;  %v3102_v51 = vunpack.c.h.bf16 %v2722_v54  ;;  %v3157_v54 = vunpack.c.l.bf16 %v7492_v38 }
 0x7f2   : > { %3782 = vmatpush.bf16.msra.mxu2 %v3652_v43  ;;  %v3082_v52 = vunpack.c.h.bf16 %v2682_v45 }
 0x7f3   : > { %3527 = vrot.lane.b32.xlu0 %v3361_v9, %s4333_s14  ;;  %v3312_v56 = vmul.f32 %v8656_v3, %v3177_v17  ;;  %v3237_v2 = vmul.f32 %v8659_v6, %v3102_v51  ;;  %v8661_v9 = vld [vmem:[#allocation47_spill] sm:$0xff]  ;;  %v3356_v51 = vpack.c.bf16 %v3236_v57, %v3231_v36  ;;  %v8672_v3 = vld [vmem:[#allocation33_spill] sm:$0xff]  ;;  %v2702_v6 = vsel %vm520_vm2, %v8666_v0, %v6748_v7  ;;  %v8678_v7 = vld [vmem:[#allocation66_spill] sm:$0xff] }
 0x7f4   : > { %v3247_v23 = vmul.f32 %v8661_v9, %v3112_v46  ;;  %v8674_v46 = vld [vmem:[#allocation75_spill] sm:$0xff]  ;;  %v8679_v57 = vld [vmem:[#allocation140_spill] sm:$0xff] }
 0x7f5   : > { %v7587_v26 = vpop.permute.xlu0 %3513  ;;  %v3397_v58 = vpack.c.bf16 %v3317_v41, %v3312_v56  ;;  %v3357_v49 = vpack.c.bf16 %v3237_v2, %v3232_v53  ;;  %v8675_v2 = vld [vmem:[#allocation86_spill] sm:$0xff] }
 0x7f6   : > { %3783 = vmatpush.bf16.msra.mxu2 %v3648_v20  ;;  %3609 = vrot.lane.b32.xlu1 %v3402_v59, %s4333_s14  ;;  %v2482_v59 = vsel %vm8667_vm5, %v8550_v48, %v8666_v0  ;;  %v8668_v20 = vld [vmem:[#allocation138_spill] sm:$0xff]  ;;  %v3077_v48 = vunpack.c.l.bf16 %v2682_v45 }
 0x7f7   : > { %3575 = vrot.lane.b32.xlu2 %v3385_v16, %s4333_s14  ;;  %v3172_v16 = vunpack.c.h.bf16 %v7405_v50  ;;  %v3292_v31 = vmul.f32 %v8668_v20, %v3157_v54 }
 0x7f8   : > { %v7601_v42 = vpop.permute.xlu2 %3557  ;;  %v7603_v28 = vpop.permute.xlu1 %3525 }
 0x7f9   : > { %v3644_v8 = vsel %vm697_vm4, %v3524_v27, %v7603_v28  ;;  %v7611_v13 = vsel %vm697_vm4, %v3556_v47, %v7601_v42  ;;  %v8660_v47 = vld [vmem:[#allocation95_spill] sm:$0xff]  ;;  %v3307_v56 = vmul.f32 %v8672_v3, %v3172_v16  ;;  %v3387_v11 = vpack.c.bf16 %v3297_v12, %v3292_v31 }
 0x7fa   : > { %3784 = vmatpush.bf16.msra.mxu2 %v3644_v8  ;;  %v3242_v24 = vmul.f32 %v8660_v47, %v3107_v60 }
 0x7fb   : > { %3587 = vrot.lane.b32.xlu0 %v3391_v5, %s4333_s14 }
 0x7fd   : > { %v3568_v39 = vpop.permute.xlu0 %3567 }
 0x7fe   : > { %v7618_v27 = vsel %vm697_vm4, %v7523_v33, %v3568_v39  ;;  %3597 = vrot.lane.b32.xlu1 %v3396_v10, %s4333_s14  ;;  %v3027_v33 = vsel %vm484_vm11, %v7469_v29, %v7492_v38  ;;  %v3167_v29 = vunpack.c.l.bf16 %v7405_v50  ;;  %v3362_v38 = vpack.c.bf16 %v3247_v23, %v3242_v24  ;;  %vm8677_vm11 = vmmov %vm8564_vm1 }
 0x7ff   : > { %3599 = vrot.lane.b32.xlu2 %v3397_v58, %s4333_s14  ;;  %v3156_v17 = vunpack.c.l.bf16 %v3027_v33  ;;  %v3161_v15 = vunpack.c.h.bf16 %v3027_v33  ;;  %v2698_v50 = vsel %vm520_vm2, %v2482_v59, %v8670_v14  ;;  %v3212_v10 = vmul.f32 %v8675_v2, %v3077_v48 }
 0x800   : > { %v7626_v43 = vpop.permute.xlu2 %3491  ;;  %v3512_v18 = vpop.permute.xlu1 %3511  ;;  %v3302_v5 = vmul.f32 %v8671_v44, %v3167_v29  ;;  %v3086_v47 = vunpack.c.l.bf16 %v2698_v50  ;;  %v3091_v24 = vunpack.c.h.bf16 %v2698_v50  ;;  %v3092_v23 = vunpack.c.h.bf16 %v2702_v6 }
 0x801   : > { %v3639_v37 = vsel %vm697_vm4, %v3512_v18, %v7587_v26  ;;  %v3291_v41 = vmul.f32 %v3156_v17, %v8673_v21  ;;  %v3296_v32 = vmul.f32 %v3161_v15, %v8674_v46 }
 0x802   : > { %3759 = vmatpush.bf16.msra.mxu3 %v3639_v37  ;;  %v3392_v9 = vpack.c.bf16 %v3307_v56, %v3302_v5  ;;  %v3221_v18 = vmul.f32 %v3086_v47, %v8679_v57  ;;  %v8681_v37 = vld [vmem:[#allocation6_spill] sm:$0xff]  ;;  %v3227_v45 = vmul.f32 %v8682_v35, %v3092_v23  ;;  %v3995_v35 = vld [vmem:[%s7795_s1 + $0x8] sm:$0xff] }
 0x803   : > { %3519 = vrot.lane.b32.xlu0 %v3357_v49, %s4333_s14  ;;  %v3386_v36 = vpack.c.bf16 %v3296_v32, %v3291_v41  ;;  %v8680_v49 = vld [vmem:[#allocation42_spill] sm:$0xff] }
 0x804   : > { %v3226_v33 = vmul.f32 %v3091_v24, %v8680_v49 }
 0x805   : > { %v3570_v22 = vpop.permute.xlu0 %3569 }
 0x806   : > { %v7647_v40 = vsel %vm697_vm4, %v3568_v39, %v3570_v22  ;;  %3529 = vrot.lane.b32.xlu1 %v3362_v38, %s4333_s14  ;;  %v8676_v39 = vld [vmem:[#allocation85_spill] sm:$0xff]  ;;  %v3351_v17 = vpack.c.bf16 %v3226_v33, %v3221_v18 }
 0x807   : > { %3517 = vrot.lane.b32.xlu2 %v3356_v51, %s4333_s14  ;;  %v3217_v58 = vmul.f32 %v8676_v39, %v3082_v52 }
 0x808   : > { %v3548_v8 = vpop.permute.xlu2 %3547  ;;  %v7656_v60 = vpop.permute.xlu1 %3515 }
 0x809   : > { %v3640_v25 = vsel %vm697_vm4, %v7587_v26, %v7656_v60  ;;  %v7664_v53 = vsel %vm697_vm4, %v7566_v55, %v3548_v8  ;;  %v2468_v26 = vsel %vm8677_vm11, %v8575_v19, %v8664_v30  ;;  %v3087_v55 = vunpack.c.l.bf16 %v2702_v6 }
 0x80a   : > { %3785 = vmatpush.bf16.msra.mxu2 %v3640_v25  ;;  %v2678_v1 = vsel %vm520_vm2, %v8678_v7, %v2468_v26  ;;  %v3347_v19 = vpack.c.bf16 %v3217_v58, %v3212_v10 }
 0x80b   : > { %3579 = vrot.lane.b32.xlu0 %v3387_v11, %s4333_s14  ;;  %v3222_v30 = vmul.f32 %v8681_v37, %v3087_v55  ;;  %v3076_v29 = vunpack.c.l.bf16 %v2678_v1  ;;  %v3081_v16 = vunpack.c.h.bf16 %v2678_v1 }
 0x80d   : > { %v7675_v4 = vpop.permute.xlu0 %3505  ;;  %v3352_v15 = vpack.c.bf16 %v3227_v45, %v3222_v30  ;;  %v3216_v12 = vmul.f32 %v3081_v16, %v8684_v34  ;;  %v3416_v45 = vunpack.c.l.b16 %v3995_v35 }
 0x80e   : > { %3589 = vrot.lane.b32.xlu1 %v3392_v9, %s4333_s14 }
 0x80f   : > { %3577 = vrot.lane.b32.xlu2 %v3386_v36, %s4333_s14 }
 0x810   : > { %v7683_v54 = vpop.permute.xlu2 %3601  ;;  %v3504_v61 = vpop.permute.xlu1 %3503 }
 0x811   : > { %v3635_v0 = vsel %vm697_vm4, %v7564_v63, %v3504_v61  ;;  %v3636_v59 = vsel %vm697_vm4, %v3504_v61, %v7675_v4  ;;  %v8683_v63 = vld [vmem:[#allocation90_spill] sm:$0xff] }
 0x812   : > { %3760 = vmatpush.bf16.msra.mxu3 %v3635_v0  ;;  %3786 = vmatpush.bf16.msra.mxu2 %v3636_v59  ;;  %v3211_v31 = vmul.f32 %v3076_v29, %v8683_v63 }
 0x813   : > { %3499 = vrot.lane.b32.xlu0 %v3347_v19, %s4333_s14 }
 0x814   : > { %v3346_v52 = vpack.c.bf16 %v3216_v12, %v3211_v31 }
 0x815   : > { %v3560_v38 = vpop.permute.xlu0 %3559 }
 0x816   : > { %3507 = vrot.lane.b32.xlu1 %v3351_v17, %s4333_s14  ;;  %v7695_v20 = vsel %vm697_vm4, %v7601_v42, %v3560_v38  ;;  %v3417_v38 = vunpack.c.h.b16 %v3995_v35 }
 0x817   : > { %3509 = vrot.lane.b32.xlu2 %v3352_v15, %s4333_s14  ;;  %v7738_v15 = vpack.c.b16 %v3416_v45, %v3416_v45 }
 0x818   : > { %v3620_v22 = vpop.permute.xlu2 %3619  ;;  %v3494_v51 = vpop.permute.xlu1 %3493  ;;  %v3419_v12 = vpack.c.b16 %v3417_v38, %v3417_v38 }
 0x819   : > { %v3631_v48 = vsel %vm697_vm4, %v7626_v43, %v3494_v51 }
 0x81a   : > { %3761 = vmatpush.bf16.msra.mxu3 %v3631_v48 }
 0x81d   : > { %v7702_v14 = vpop.permute.xlu0 %3495  ;;  %3762 = vmatmul.bf16.vlgmr.msra.gmra.mxu3 %v7738_v15 }
 0x81e   : > { %3497 = vrot.lane.b32.xlu1 %v3346_v52, %s4333_s14  ;;  %v3632_v42 = vsel %vm697_vm4, %v3494_v51, %v7702_v14 }
 0x81f   : > { %3787 = vmatpush.bf16.msra.mxu2 %v3632_v42 }
 0x820   : > { %v3550_v50 = vpop.permute.xlu1 %3549  ;;  %v3614_v44 = vpop.permute.xlu2 %3613 }
 0x821   : > { %v7708_v5 = vsel %vm697_vm4, %v3548_v8, %v3550_v50 }
 0x822   : > { %3788 = vmatmul.bf16.vlgmr.msra.gmra.mxu2 %v7738_v15 }
 0x825   : > { %v3624_v3 = vpop.permute.xlu0 %3623 }
 0x828   : > { %v3622_v56 = vpop.permute.xlu1 %3621  ;;  %v3616_v21 = vpop.permute.xlu2 %3615 }
 0x829   : > { %v3683_v43 = vsel %vm697_vm4, %v3622_v56, %v3624_v3  ;;  %v3680_v55 = vsel %vm697_vm4, %v3614_v44, %v3616_v21 }
 0x82a   : > { %v3743_v41 = vsel %vm520_vm2, %v3683_v43, 0 }
 0x82b   : > { %3769 = vmatpush.bf16.msra.mxu1 %v3743_v41 }
 0x82d   : > { %v3612_v46 = vpop.permute.xlu0 %3611 }
 0x82e   : > { %v3679_v32 = vsel %vm697_vm4, %v3612_v46, %v3614_v44 }
 0x82f   : > { %3770 = vmatpush.bf16.msra.mxu1 %v3679_v32 }
 0x830   : > { %v3630_v25 = vpop.permute.xlu1 %3629  ;;  %v3606_v11 = vpop.permute.xlu2 %3605 }
 0x835   : > { %v3628_v6 = vpop.permute.xlu0 %3627 }
 0x836   : > { %v3686_v2 = vsel %vm697_vm4, %v3628_v6, %v3630_v25 }
 0x837   : > { %v3752_v8 = vsel %vm520_vm2, %v3686_v2, 0 }
 0x838   : > { %v3626_v10 = vpop.permute.xlu1 %3625  ;;  %3847 = vmatpush.bf16.msrb.mxu2 %v3752_v8  ;;  %v7719_v9 = vpop.permute.xlu2 %3595 }
 0x839   : > { %v3684_v39 = vsel %vm697_vm4, %v3624_v3, %v3626_v10  ;;  %v3685_v58 = vsel %vm697_vm4, %v3626_v10, %v3628_v6 }
 0x83a   : > { %v3746_v47 = vsel %vm520_vm2, %v3684_v39, 0  ;;  %v3749_v24 = vsel %vm520_vm2, %v3685_v58, 0  ;;  %vm8685_vm2 = vcmask 719872  }
 0x83b   : > { %3795 = vmatpush.bf16.msra.mxu0 %v3746_v47  ;;  %3821 = vmatpush.bf16.msrb.mxu3 %v3749_v24  ;;  %vm8686_vm6 = vmmov %vm8685_vm2 }
 0x83c   : > { %vm8687_vm12 = vmmov %vm8685_vm2 }
 0x83d   : > { %v3594_v26 = vpop.permute.xlu0 %3593  ;;  %vm8688_vm14 = vmmov %vm8685_vm2 }
 0x83e   : > { %v3672_v30 = vsel %vm697_vm4, %v3594_v26, %v7719_v9 }
 0x83f   : > { %3796 = vmatpush.bf16.msra.mxu0 %v3680_v55 }
 0x840   : > { %v3592_v23 = vpop.permute.xlu1 %3591  ;;  %v3608_v36 = vpop.permute.xlu2 %3607 }
 0x841   : > { %v3671_v37 = vsel %vm697_vm4, %v3592_v23, %v3594_v26 }
 0x845   : > { %v3584_v7 = vpop.permute.xlu0 %3583 }
 0x848   : > { %v3582_v1 = vpop.permute.xlu1 %3581  ;;  %v3574_v18 = vpop.permute.xlu2 %3573 }
 0x84d   : > { %v7722_v57 = vpop.permute.xlu0 %3585 }
 0x84e   : > { %v3668_v29 = vsel %vm697_vm4, %v3584_v7, %v7722_v57 }
 0x850   : > { %v3604_v49 = vpop.permute.xlu1 %3603 }
 0x851   : > { %v3675_v33 = vsel %vm697_vm4, %v7683_v54, %v3604_v49  ;;  %v3676_v61 = vsel %vm697_vm4, %v3604_v49, %v3606_v11  ;;  %v3576_v0 = vpop.permute.xlu2 %3575  ;;  %v3667_v54 = vsel %vm697_vm4, %v3582_v1, %v3584_v7 }
 0x852   : > { %3771 = vmatpush.bf16.msra.mxu1 %v3675_v33  ;;  %3797 = vmatpush.bf16.msra.mxu0 %v3676_v61  ;;  %v3664_v34 = vsel %vm697_vm4, %v3574_v18, %v3576_v0 }
 0x855   : > { %v3572_v19 = vpop.permute.xlu0 %3571 }
 0x856   : > { %3772 = vmatpush.bf16.msra.mxu1 %v3671_v37  ;;  %3798 = vmatpush.bf16.msra.mxu0 %v3672_v30  ;;  %v3663_v31 = vsel %vm697_vm4, %v3572_v19, %v3574_v18 }
 0x858   : > { %v3618_v59 = vpop.permute.xlu1 %3617 }
 0x859   : > { %v3681_v16 = vsel %vm697_vm4, %v3616_v21, %v3618_v59  ;;  %v3682_v17 = vsel %vm697_vm4, %v3618_v59, %v3620_v22  ;;  %v3677_v22 = vsel %vm697_vm4, %v3606_v11, %v3608_v36  ;;  %v3600_v48 = vpop.permute.xlu2 %3599 }
 0x85a   : > { %3773 = vmatpush.bf16.msra.mxu1 %v3667_v54  ;;  %3799 = vmatpush.bf16.msra.mxu0 %v3668_v29 }
 0x85b   : > { %3822 = vmatpush.bf16.msrb.mxu3 %v3681_v16  ;;  %3848 = vmatpush.bf16.msrb.mxu2 %v3682_v17 }
 0x85d   : > { %v3540_v63 = vpop.permute.xlu0 %3539 }
 0x85e   : > { %3774 = vmatpush.bf16.msra.mxu1 %v3663_v31  ;;  %3800 = vmatpush.bf16.msra.mxu0 %v3664_v34 }
 0x85f   : > { %3823 = vmatpush.bf16.msrb.mxu3 %v3677_v22 }
 0x860   : > { %v3538_v51 = vpop.permute.xlu1 %3537 }
 0x861   : > { %3996 = vmatmul.msk.bf16.vlgmr.msra.gmra.mxu1 %vm8685_vm2, %v3419_v12  ;;  %3997 = vmatmul.msk.bf16.vlgmr.msra.gmra.mxu0 %vm8686_vm6, %v3419_v12  ;;  %v3650_v50 = vsel %vm697_vm4, %v3538_v51, %v3540_v63  ;;  %v3518_v44 = vpop.permute.xlu2 %3517 }
 0x862   : > { %3806 = vmatpush.bf16.msrb.mxu1 %v7618_v27  ;;  %3832 = vmatpush.bf16.msrb.mxu0 %v7647_v40  ;;  %v3649_v40 = vsel %vm697_vm4, %v7521_v62, %v3538_v51  ;;  %v3641_v62 = vsel %vm697_vm4, %v7656_v60, %v3518_v44 }
 0x865   : > { %v3528_v52 = vpop.permute.xlu0 %3527 }
 0x866   : > { %3807 = vmatpush.bf16.msrb.mxu1 %v7611_v13  ;;  %3833 = vmatpush.bf16.msrb.mxu0 %v7695_v20  ;;  %v3645_v20 = vsel %vm697_vm4, %v7603_v28, %v3528_v52 }
 0x868   : > { %v3610_v42 = vpop.permute.xlu1 %3609 }
 0x869   : > { %v3678_v27 = vsel %vm697_vm4, %v3608_v36, %v3610_v42  ;;  %v3578_v21 = vpop.permute.xlu2 %3577 }
 0x86a   : > { %3808 = vmatpush.bf16.msrb.mxu1 %v7664_v53  ;;  %3834 = vmatpush.bf16.msrb.mxu0 %v7708_v5  ;;  %v3665_v41 = vsel %vm697_vm4, %v3576_v0, %v3578_v21 }
 0x86b   : > { %3849 = vmatpush.bf16.msrb.mxu2 %v3678_v27 }
 0x86d   : > { %v3588_v13 = vpop.permute.xlu0 %3587 }
 0x86e   : > { %3809 = vmatpush.bf16.msrb.mxu1 %v3649_v40  ;;  %3835 = vmatpush.bf16.msrb.mxu0 %v3650_v50  ;;  %v3669_v56 = vsel %vm697_vm4, %v7722_v57, %v3588_v13 }
 0x870   : > { %v3598_v53 = vpop.permute.xlu1 %3597 }
 0x871   : > { %v3673_v5 = vsel %vm697_vm4, %v7719_v9, %v3598_v53  ;;  %v3674_v3 = vsel %vm697_vm4, %v3598_v53, %v3600_v48  ;;  %v3510_v2 = vpop.permute.xlu2 %3509 }
 0x872   : > { %3810 = vmatpush.bf16.msrb.mxu1 %v3645_v20  ;;  %3824 = vmatpush.bf16.msrb.mxu3 %v3673_v5 }
 0x873   : > { %3850 = vmatpush.bf16.msrb.mxu2 %v3674_v3 }
 0x875   : > { %v3520_v43 = vpop.permute.xlu0 %3519 }
 0x876   : > { %3811 = vmatpush.bf16.msrb.mxu1 %v3641_v62  ;;  %3825 = vmatpush.bf16.msrb.mxu3 %v3669_v56  ;;  %v3642_v32 = vsel %vm697_vm4, %v3518_v44, %v3520_v43  ;;  %v4000_v56 = vld [vmem:[%s7796_s2 + $0x8] sm:$0xff] }
 0x878   : > { %v3530_v28 = vpop.permute.xlu1 %3529 }
 0x879   : > { %v3646_v46 = vsel %vm697_vm4, %v3528_v52, %v3530_v28  ;;  %v4001_v28 = vld [vmem:[%s7797_s3 + $0x8] sm:$0xff] }
 0x87a   : > { %3826 = vmatpush.bf16.msrb.mxu3 %v3665_v41  ;;  %3836 = vmatpush.bf16.msrb.mxu0 %v3646_v46 }
 0x87d   : > { %3998 = vmatmul.msk.bf16.vlgmr.msrb.gmra.mxu3 %vm8687_vm12, %v3419_v12  ;;  %v3580_v11 = vpop.permute.xlu0 %3579 }
 0x87e   : > { %3837 = vmatpush.bf16.msrb.mxu0 %v3642_v32  ;;  %v3666_v6 = vsel %vm697_vm4, %v3578_v21, %v3580_v11 }
 0x880   : > { %v3590_v60 = vpop.permute.xlu1 %3589 }
 0x881   : > { %v3670_v25 = vsel %vm697_vm4, %v3588_v13, %v3590_v60 }
 0x882   : > { %3851 = vmatpush.bf16.msrb.mxu2 %v3670_v25 }
 0x885   : > { %v3500_v58 = vpop.permute.xlu0 %3499 }
 0x886   : > { %3852 = vmatpush.bf16.msrb.mxu2 %v3666_v6 }
 0x888   : > { %v3508_v8 = vpop.permute.xlu1 %3507 }
 0x889   : > { %3999 = vmatmul.msk.bf16.vlgmr.msrb.gmra.mxu2 %vm8688_vm14, %v3419_v12  ;;  %v3637_v10 = vsel %vm697_vm4, %v7675_v4, %v3508_v8  ;;  %v3638_v39 = vsel %vm697_vm4, %v3508_v8, %v3510_v2 }
 0x88a   : > { %3812 = vmatpush.bf16.msrb.mxu1 %v3637_v10  ;;  %3838 = vmatpush.bf16.msrb.mxu0 %v3638_v39 }
 0x890   : > { %v3498_v47 = vpop.permute.xlu1 %3497 }
 0x891   : > { %v3633_v24 = vsel %vm697_vm4, %v7702_v14, %v3498_v47  ;;  %v3634_v9 = vsel %vm697_vm4, %v3498_v47, %v3500_v58 }
 0x892   : > { %3813 = vmatpush.bf16.msrb.mxu1 %v3633_v24  ;;  %3839 = vmatpush.bf16.msrb.mxu0 %v3634_v9 }
 0x895   : > { %3814 = vmatmul.bf16.vlgmr.msrb.gmra.mxu1 %v7738_v15  ;;  %3840 = vmatmul.bf16.vlgmr.msrb.gmra.mxu0 %v7738_v15 }
 0x8a0   : > { %v3763_v4 = vpop.f32.mrf.mxu3 }
 0x8a5   : > { %v3789_v23 = vpop.f32.mrf.mxu2 }
 0x8a8   : > { %v3765_v1 = vpop.f32.mrf.mxu3 }
 0x8ad   : > { %v3791_v57 = vpop.f32.mrf.mxu2 }
 0x8de   : > { %v3776_v26 = vpop.f32.mrf.mxu1  ;;  %v3802_v55 = vpop.f32.mrf.mxu0 }
 0x8df   : > { %v3777_v14 = vadd.f32 %v3776_v26, %v3763_v4  ;;  %v3803_v61 = vadd.f32 %v3802_v55, %v3789_v23 }
 0x8e1   : > { %v3858_v30 = vadd.f32 %v3803_v61, %v3777_v14 }
 0x8e6   : > { %v3778_v36 = vpop.f32.mrf.mxu1  ;;  %v3804_v7 = vpop.f32.mrf.mxu0 }
 0x900   : > { %v3828_v18 = vpop.f32.mrf.mxu3 }
 0x908   : > { %v3830_v49 = vpop.f32.mrf.mxu3 }
 0x90c   : > { %v3854_v33 = vpop.f32.mrf.mxu2 }
 0x912   : > { %v3815_v19 = vpop.f32.mrf.mxu1  ;;  %v3841_v37 = vpop.f32.mrf.mxu0 }
 0x913   : > { %v3829_v35 = vadd.f32 %v3828_v18, %v3815_v19  ;;  %v3855_v45 = vadd.f32 %v3854_v33, %v3841_v37 }
 0x914   : > { %v3856_v0 = vpop.f32.mrf.mxu2 }
 0x915   : > { %v3859_v59 = vadd.f32 %v3858_v30, %v3829_v35 }
 0x917   : > { %v3860_v54 = vadd.f32 %v3859_v59, %v3855_v45 }
 0x919   : > { %3861 = vadd.xlane.f32.xlu2 %v3860_v54 }
 0x91a   : > { %v3817_v29 = vpop.f32.mrf.mxu1  ;;  %v3843_v16 = vpop.f32.mrf.mxu0 }
 0x98c   : > { %v3862_v17 = vpop.xlane.xlu2 %3861 }
 0x98d   : > { %v3863_v38 = vmul.f32 0.001953125, %v3862_v17 }
 0x98f   : > { %v3864_v15 = vsub.f32 %v3777_v14, %v3863_v38  ;;  %v3865_v63 = vsub.f32 %v3803_v61, %v3863_v38  ;;  %v3866_v31 = vsub.f32 %v3829_v35, %v3863_v38  ;;  %v3867_v34 = vsub.f32 %v3855_v45, %v3863_v38 }
 0x991   : > { %v3868_v12 = vmul.f32 %v3864_v15, %v3864_v15  ;;  %v3869_v22 = vmul.f32 %v3865_v63, %v3865_v63  ;;  %v3870_v51 = vmul.f32 %v3866_v31, %v3866_v31  ;;  %v3871_v52 = vmul.f32 %v3867_v34, %v3867_v34 }
 0x993   : > { %v3872_v48 = vadd.f32 %v3869_v22, %v3868_v12 }
 0x995   : > { %v3873_v42 = vadd.f32 %v3872_v48, %v3870_v51 }
 0x997   : > { %v3874_v27 = vadd.f32 %v3873_v42, %v3871_v52 }
 0x999   : > { %3875 = vadd.xlane.f32.xlu1 %v3874_v27 }
 0xa0c   : > { %v3876_v40 = vpop.xlane.xlu1 %3875 }
 0xa0d   : > { %v3877_v50 = vmul.f32 0.001953125, %v3876_v40 }
 0xa0f   : > { %v3880_v44 = vadd.f32 1e-05, %v3877_v50 }
 0xa11   : > { %4308 = vrsqrt.f32 %v3880_v44  ;;  %vm3887_vm13 = vweird.f32 %v3880_v44 }
 0xa17   : > { %v4309_v13 = vpop.eup %4308 }
 0xa18   : > { %v3882_v20 = vmul.f32 %v4309_v13, %v3880_v44  ;;  %vm3888_vm4 = vweird.f32 %v4309_v13 }
 0xa19   : > { %vm3889_vm15 = vmor %vm3887_vm13, %vm3888_vm4 }
 0xa1a   : > { %v3883_v53 = vmul.f32 %v4309_v13, %v3882_v20 }
 0xa1c   : > { %v3884_v5 = vmul.f32 0.5, %v3883_v53 }
 0xa1e   : > { %v3885_v3 = vsub.f32 1.5, %v3884_v5 }
 0xa20   : > { %v3886_v62 = vmul.f32 %v4309_v13, %v3885_v3 }
 0xa22   : > { %v3890_v21 = vsel %vm3889_vm15, %v4309_v13, %v3886_v62 }
 0xa23   : > { %v3891_v43 = vmul.f32 %v4000_v56, %v3890_v21 }
 0xa25   : > { %3894 = vperm.xlu0 %4305, %v3891_v43  }
 0xa2d   : > { %3905 = vperm.xlu0 %4305, %v4001_v28  }
 0xa97   : > { %v3895_v41 = vpop.permute.xlu0 %3894 }
 0xa98   : > { %v3897_v46 = vmul.f32 %v3895_v41, %v3864_v15  ;;  %v3898_v32 = vmul.f32 %v3895_v41, %v3865_v63  ;;  %v3899_v60 = vmul.f32 %v3895_v41, %v3866_v31  ;;  %v3900_v25 = vmul.f32 %v3895_v41, %v3867_v34 }
 0xa9f   : > { %v3906_v11 = vpop.permute.xlu0 %3905 }
 0xaa0   : > { %v3908_v6 = vadd.f32 %v3906_v11, %v3897_v46  ;;  %v3909_v2 = vadd.f32 %v3906_v11, %v3898_v32  ;;  %v3910_v8 = vadd.f32 %v3906_v11, %v3899_v60  ;;  %v3911_v10 = vadd.f32 %v3906_v11, %v3900_v25 }
 0xaa2   : > { %vm3912_vm1 = vcmp.ge.f32.partialorder %v3908_v6, 0.0  ;;  %vm3913_vm3 = vcmp.ge.f32.partialorder %v3909_v2, 0.0  ;;  %vm3914_vm7 = vcmp.ge.f32.partialorder %v3910_v8, 0.0  ;;  %vm3915_vm9 = vcmp.ge.f32.partialorder %v3911_v10, 0.0 }
 0xaa3   : > { %v3916_v39 = vmul.f32 0.01, %v3908_v6  ;;  %v3917_v58 = vmul.f32 0.01, %v3909_v2  ;;  %v3918_v47 = vmul.f32 0.01, %v3910_v8 }
 0xaa4   : > { %v3919_v24 = vmul.f32 0.01, %v3911_v10 }
 0xaa5   : > { %v3920_v9 = vsel %vm3912_vm1, %v3908_v6, %v3916_v39  ;;  %v3921_v26 = vsel %vm3913_vm3, %v3909_v2, %v3917_v58  ;;  %v3922_v55 = vsel %vm3914_vm7, %v3910_v8, %v3918_v47 }
 0xaa6   : > { %v3923_v4 = vsel %vm3915_vm9, %v3911_v10, %v3919_v24  ;;  %3924 = vst [vmem:[%s224_s11] sm:$0x1f] %v3920_v9 }
 0xaa7   : > { %3925 = vst [vmem:[%s224_s11 + $0x8] sm:$0x1f] %v3921_v26 }
 0xaa8   : > { %3926 = vst [vmem:[%s224_s11 + $0x10] sm:$0x1f] %v3922_v55 }
 0xaa9   : > { %3927 = vst [vmem:[%s224_s11 + $0x18] sm:$0x1f] %v3923_v4 }
 0xaaa PF: > { %s15_s18 = sadd.s32 1, %s4316_s18  }
 0xaab   : > { %p12_p4 = scmp.ge.s32.totalorder %s15_s18, 4  }
 0xaad   :  { %14 = sbr.rel (!%p12_p4) target bundleno = 1 (0x1), region = 73 }

</bundles_post_ra>
